<compile_context>
chip_gen: v6e
topology: v6e:2x2x1
jax: 0.10.0
libtpu: 0.0.40
codegen_flags: <defaults>
</compile_context>

<pallas_src>
import jax
import jax.numpy as jnp
from jax.experimental import pallas as pl
from jax.experimental.pallas import tpu as pltpu


def _leaky_relu(x, slope=0.2):
    # Elementwise in f32 (inputs are the f32 accumulator outputs).
    return jnp.where(x > 0, x, slope * x)


def disc_kernel(x_ref, w1_ref, b1_ref, w2_ref, b2_ref, w3_ref, b3_ref, o_ref):
    # x_ref: (tm, D) batch tile in f32; cast to the MXU compute dtype in-VMEM
    # (free on the VPU, hidden under MXU work) instead of paying an extra
    # HBM pass in the wrapper.
    x = x_ref[...].astype(w1_ref.dtype)

    h1 = jnp.dot(x, w1_ref[...], preferred_element_type=jnp.float32) + b1_ref[...]
    h1 = _leaky_relu(h1).astype(w2_ref.dtype)

    h2 = jnp.dot(h1, w2_ref[...], preferred_element_type=jnp.float32) + b2_ref[...]
    h2 = _leaky_relu(h2).astype(w3_ref.dtype)

    # Last layer: W3 padded to N=128 -> lane-dense matmul and lane-dense store.
    h3 = jnp.dot(h2, w3_ref[...], preferred_element_type=jnp.float32) + b3_ref[...]
    o_ref[...] = jax.nn.sigmoid(h3).astype(o_ref.dtype)


def discriminator_forward(x, params, *, tm=256, compute_dtype=jnp.bfloat16):
    """x: (B, img_dim) f32.  params: (w1,b1,w2,b2,w3,b3) with W stored (in,out)."""
    w1, b1, w2, b2, w3, b3 = params
    B, D = x.shape
    H1 = w1.shape[1]
    H2 = w2.shape[1]
    NO = 128  # padded output width (lane-dense stores)

    # ---- batch tiling (only the batch axis is padded; features stay at 784) ----
    B_128 = 128 * pl.cdiv(B, 128)          # batch rounded up to >=128 rows
    tm_eff = min(tm, B_128)                # don't over-tile tiny batches
    B_pad = tm_eff * pl.cdiv(B, tm_eff)

    x_p = x.astype(jnp.float32)
    if B_pad != B:
        x_p = jnp.pad(x_p, ((0, B_pad - B), (0, 0)))

    # Weights: MXU feeds in compute_dtype (bf16 on v5e/v6e/v7x), accumulate f32.
    w1_c = w1.astype(compute_dtype)
    w2_c = w2.astype(compute_dtype)
    w3_p = jnp.pad(w3, ((0, 0), (0, NO - w3.shape[1]))).astype(compute_dtype)
    b1_f = b1.astype(jnp.float32)
    b2_f = b2.astype(jnp.float32)
    b3_f = jnp.pad(b3, ((0, 0), (0, NO - b3.shape[1]))).astype(jnp.float32)

    out = pl.pallas_call(
        disc_kernel,
        out_shape=jax.ShapeDtypeStruct((B_pad, NO), jnp.float32),
        grid=(B_pad // tm_eff,),
        in_specs=[
            pl.BlockSpec((tm_eff, D), lambda i: (i, 0)),   # x batch tile (f32)
            pl.BlockSpec((D, H1), lambda i: (0, 0)),       # W1 (resident)
            pl.BlockSpec((1, H1), lambda i: (0, 0)),       # b1
            pl.BlockSpec((H1, H2), lambda i: (0, 0)),      # W2 (resident)
            pl.BlockSpec((1, H2), lambda i: (0, 0)),       # b2
            pl.BlockSpec((H2, NO), lambda i: (0, 0)),      # W3 padded to N=128
            pl.BlockSpec((1, NO), lambda i: (0, 0)),       # b3 padded
        ],
        out_specs=pl.BlockSpec((tm_eff, NO), lambda i: (i, 0)),
        compiler_params=pltpu.CompilerParams(
            dimension_semantics=("parallel",),
        ),
    )(x_p, w1_c, b1_f, w2_c, b2_f, w3_p, b3_f)

    # Slice away batch padding and the 127 padded output lanes.
    return out[:B, :1]


def init_params(key, img_dim=28 * 28):
    """Deterministic init matching PyTorch nn.Linear's default U(-1/sqrt(fan_in), ...)."""
    dims = [(img_dim, 512), (512, 256), (256, 1)]
    params = []
    for (fan_in, fan_out) in dims:
        key, kw, kb = jax.random.split(key, 3)
        bound = 1.0 / jnp.sqrt(fan_in)
        w = jax.random.uniform(kw, (fan_in, fan_out), jnp.float32, -bound, bound)
        b = jax.random.uniform(kb, (1, fan_out), jnp.float32, -bound, bound)
        params += [w, b]
    return tuple(params)


def reference_forward(x, params):
    w1, b1, w2, b2, w3, b3 = params
    h = x @ w1 + b1
    h = jnp.where(h > 0, h, 0.2 * h)
    h = h @ w2 + b2
    h = jnp.where(h > 0, h, 0.2 * h)
    return jax.nn.sigmoid(h @ w3 + b3)


if __name__ == "__main__":
    img_dim = 28 * 28
    batch = 16

    key = jax.random.PRNGKey(0)
    key, kx = jax.random.split(key)
    x = jax.random.normal(kx, (batch, img_dim), jnp.float32)
    params = init_params(key, img_dim)

    ref = reference_forward(x, params)

    # f32 path: exact check against the reference.
    out_f32 = jax.block_until_ready(
        discriminator_forward(x, params, compute_dtype=jnp.float32)
    )
    assert out_f32.shape == (batch, 1)
    assert jnp.allclose(out_f32, ref, atol=1e-5, rtol=1e-5), "f32 mismatch vs reference"

    # bf16 MXU path (default / recommended on v5e/v6e/v7x): looser tolerance.
    out_bf16 = jax.block_until_ready(
        discriminator_forward(x, params, compute_dtype=jnp.bfloat16)
    )
    assert out_bf16.shape == (batch, 1)
    assert jnp.allclose(out_bf16, ref, atol=2e-2, rtol=2e-2), "bf16 mismatch vs reference"

    print("KERNEL_OK")
</pallas_src>

<mosaic_0001>
module attributes {stable_mosaic.version = 11 : i64} {
  func.func @disc_kernel(%arg0: i32, %arg1: memref<128x784xf32, #tpu.memory_space<vmem>>, %arg2: memref<784x512xf32, #tpu.memory_space<vmem>>, %arg3: memref<1x512xf32, #tpu.memory_space<vmem>>, %arg4: memref<512x256xf32, #tpu.memory_space<vmem>>, %arg5: memref<1x256xf32, #tpu.memory_space<vmem>>, %arg6: memref<256x128xf32, #tpu.memory_space<vmem>>, %arg7: memref<1x128xf32, #tpu.memory_space<vmem>>, %arg8: memref<128x128xf32, #tpu.memory_space<vmem>>) attributes {dimension_semantics = [#tpu.dimension_semantics<parallel>], iteration_bounds = array<i64: 1>, scalar_prefetch = 0 : i64, scratch_operands = 0 : i64, tpu.core_type = #tpu.core_type<tc>, window_params = [{transform_indices = @transform_0, window_bounds = array<i64: 128, 784>}, {pipeline_mode = #tpu.pipeline_mode<synchronous>, transform_indices = @transform_1, window_bounds = array<i64: 784, 512>}, {pipeline_mode = #tpu.pipeline_mode<synchronous>, transform_indices = @transform_2, window_bounds = array<i64: 1, 512>}, {pipeline_mode = #tpu.pipeline_mode<synchronous>, transform_indices = @transform_3, window_bounds = array<i64: 512, 256>}, {pipeline_mode = #tpu.pipeline_mode<synchronous>, transform_indices = @transform_4, window_bounds = array<i64: 1, 256>}, {pipeline_mode = #tpu.pipeline_mode<synchronous>, transform_indices = @transform_5, window_bounds = array<i64: 256, 128>}, {pipeline_mode = #tpu.pipeline_mode<synchronous>, transform_indices = @transform_6, window_bounds = array<i64: 1, 128>}, {transform_indices = @transform_7, window_bounds = array<i64: 128, 128>}]} {
    %c0 = arith.constant 0 : index
    %c0_0 = arith.constant 0 : index
    %0 = vector.load %arg1[%c0, %c0_0] : memref<128x784xf32, #tpu.memory_space<vmem>>, vector<128x784xf32>
    %c0_1 = arith.constant 0 : index
    %c0_2 = arith.constant 0 : index
    %1 = vector.load %arg2[%c0_1, %c0_2] : memref<784x512xf32, #tpu.memory_space<vmem>>, vector<784x512xf32>
    %cst = arith.constant dense<0.000000e+00> : vector<128x512xf32>
    %2 = tpu.matmul %0, %1, %cst {dimension_numbers = #tpu.dot_dimension_numbers<[1], [0], [0], [1], [0, 0, 1, 1], [], []>} : vector<128x784xf32>, vector<784x512xf32>, vector<128x512xf32> -> vector<128x512xf32>
    %c0_3 = arith.constant 0 : index
    %c0_4 = arith.constant 0 : index
    %3 = vector.load %arg3[%c0_3, %c0_4] : memref<1x512xf32, #tpu.memory_space<vmem>>, vector<1x512xf32>
    %4 = vector.broadcast %3 : vector<1x512xf32> to vector<128x512xf32>
    %5 = arith.addf %2, %4 : vector<128x512xf32>
    %cst_5 = arith.constant 0.000000e+00 : f32
    %6 = vector.broadcast %cst_5 : f32 to vector<128x512xf32>
    %7 = arith.cmpf ogt, %5, %6 : vector<128x512xf32>
    %cst_6 = arith.constant 2.000000e-01 : f32
    %8 = vector.broadcast %cst_6 : f32 to vector<128x512xf32>
    %9 = arith.mulf %8, %5 : vector<128x512xf32>
    %10 = arith.select %7, %5, %9 : vector<128x512xi1>, vector<128x512xf32>
    %c0_7 = arith.constant 0 : index
    %c0_8 = arith.constant 0 : index
    %11 = vector.load %arg4[%c0_7, %c0_8] : memref<512x256xf32, #tpu.memory_space<vmem>>, vector<512x256xf32>
    %cst_9 = arith.constant dense<0.000000e+00> : vector<128x256xf32>
    %12 = tpu.matmul %10, %11, %cst_9 {dimension_numbers = #tpu.dot_dimension_numbers<[1], [0], [0], [1], [0, 0, 1, 1], [], []>} : vector<128x512xf32>, vector<512x256xf32>, vector<128x256xf32> -> vector<128x256xf32>
    %c0_10 = arith.constant 0 : index
    %c0_11 = arith.constant 0 : index
    %13 = vector.load %arg5[%c0_10, %c0_11] : memref<1x256xf32, #tpu.memory_space<vmem>>, vector<1x256xf32>
    %14 = vector.broadcast %13 : vector<1x256xf32> to vector<128x256xf32>
    %15 = arith.addf %12, %14 : vector<128x256xf32>
    %cst_12 = arith.constant 0.000000e+00 : f32
    %16 = vector.broadcast %cst_12 : f32 to vector<128x256xf32>
    %17 = arith.cmpf ogt, %15, %16 : vector<128x256xf32>
    %cst_13 = arith.constant 2.000000e-01 : f32
    %18 = vector.broadcast %cst_13 : f32 to vector<128x256xf32>
    %19 = arith.mulf %18, %15 : vector<128x256xf32>
    %20 = arith.select %17, %15, %19 : vector<128x256xi1>, vector<128x256xf32>
    %c0_14 = arith.constant 0 : index
    %c0_15 = arith.constant 0 : index
    %21 = vector.load %arg6[%c0_14, %c0_15] : memref<256x128xf32, #tpu.memory_space<vmem>>, vector<256x128xf32>
    %cst_16 = arith.constant dense<0.000000e+00> : vector<128x128xf32>
    %22 = tpu.matmul %20, %21, %cst_16 {dimension_numbers = #tpu.dot_dimension_numbers<[1], [0], [0], [1], [0, 0, 1, 1], [], []>} : vector<128x256xf32>, vector<256x128xf32>, vector<128x128xf32> -> vector<128x128xf32>
    %c0_17 = arith.constant 0 : index
    %c0_18 = arith.constant 0 : index
    %23 = vector.load %arg7[%c0_17, %c0_18] : memref<1x128xf32, #tpu.memory_space<vmem>>, vector<1x128xf32>
    %24 = vector.broadcast %23 : vector<1x128xf32> to vector<128x128xf32>
    %25 = arith.addf %22, %24 : vector<128x128xf32>
    %26 = arith.negf %25 : vector<128x128xf32>
    %27 = math.exp %26 : vector<128x128xf32>
    %cst_19 = arith.constant 1.000000e+00 : f32
    %28 = vector.broadcast %cst_19 : f32 to vector<128x128xf32>
    %29 = arith.addf %28, %27 : vector<128x128xf32>
    %30 = arith.divf %28, %29 : vector<128x128xf32>
    %c0_20 = arith.constant 0 : index
    %c0_21 = arith.constant 0 : index
    %31 = vector.load %arg8[%c0_20, %c0_21] : memref<128x128xf32, #tpu.memory_space<vmem>>, vector<128x128xf32>
    tpu.vector_store %arg8[%c0_20, %c0_21], %30 {strides = array<i32>} : memref<128x128xf32, #tpu.memory_space<vmem>>, vector<128x128xf32>,
    return
  }
  func.func @transform_0(%arg0: i32) -> (i32, i32) {
    %c0_i32 = arith.constant 0 : i32
    %c0_i32_0 = arith.constant 0 : i32
    return %arg0, %c0_i32 : i32, i32
  }
  func.func @transform_1(%arg0: i32) -> (i32, i32) {
    %c0_i32 = arith.constant 0 : i32
    %c0_i32_0 = arith.constant 0 : i32
    %c0_i32_1 = arith.constant 0 : i32
    return %c0_i32, %c0_i32_0 : i32, i32
  }
  func.func @transform_2(%arg0: i32) -> (i32, i32) {
    %c0_i32 = arith.constant 0 : i32
    %c0_i32_0 = arith.constant 0 : i32
    %c0_i32_1 = arith.constant 0 : i32
    return %c0_i32, %c0_i32_0 : i32, i32
  }
  func.func @transform_3(%arg0: i32) -> (i32, i32) {
    %c0_i32 = arith.constant 0 : i32
    %c0_i32_0 = arith.constant 0 : i32
    %c0_i32_1 = arith.constant 0 : i32
    return %c0_i32, %c0_i32_0 : i32, i32
  }
  func.func @transform_4(%arg0: i32) -> (i32, i32) {
    %c0_i32 = arith.constant 0 : i32
    %c0_i32_0 = arith.constant 0 : i32
    %c0_i32_1 = arith.constant 0 : i32
    return %c0_i32, %c0_i32_0 : i32, i32
  }
  func.func @transform_5(%arg0: i32) -> (i32, i32) {
    %c0_i32 = arith.constant 0 : i32
    %c0_i32_0 = arith.constant 0 : i32
    %c0_i32_1 = arith.constant 0 : i32
    return %c0_i32, %c0_i32_0 : i32, i32
  }
  func.func @transform_6(%arg0: i32) -> (i32, i32) {
    %c0_i32 = arith.constant 0 : i32
    %c0_i32_0 = arith.constant 0 : i32
    %c0_i32_1 = arith.constant 0 : i32
    return %c0_i32, %c0_i32_0 : i32, i32
  }
  func.func @transform_7(%arg0: i32) -> (i32, i32) {
    %c0_i32 = arith.constant 0 : i32
    %c0_i32_0 = arith.constant 0 : i32
    return %arg0, %c0_i32 : i32, i32
  }
}

</mosaic_0001>

<bundles_post_ra>
// kernel: tpu_custom_call.1
= control target key start
LH: loop header
LB: loop body
LE: loop exit
PB: predicated region body
PF: predicated region fallthrough
CT: control target
= control target key end

     0   :  { %12 = vsyncpa [#allocation3], 0  ;;  %s5021_s0 = inlined_call_operand.vmem [shape: f32[128,784], index: 0, kind: input, shape index: {}]   ;;  %s5022_s1 = inlined_call_operand.hbm [shape: f32[784,512], index: 1, kind: input, shape index: {}]   ;;  %s5023_s2 = inlined_call_operand.hbm [shape: f32[1,512], index: 2, kind: input, shape index: {}]   ;;  %s5024_s3 = inlined_call_operand.hbm [shape: f32[512,256], index: 3, kind: input, shape index: {}]   ;;  %s5025_s4 = inlined_call_operand.hbm [shape: f32[1,256], index: 4, kind: input, shape index: {}]   ;;  %s5026_s5 = inlined_call_operand.hbm [shape: f32[256,128], index: 5, kind: input, shape index: {}]   ;;  %s5027_s6 = inlined_call_operand.hbm [shape: f32[1,128], index: 6, kind: input, shape index: {}]   ;;  %s5028_s7 = inlined_call_operand.hbm [shape: f32[128,128], index: 7, kind: output, shape index: {}]  }
   0x1   :  { %13 = vsyncpa [#allocation6], 0 }
   0x2   :  { %14 = vsyncpa [#allocation9], 0 }
   0x3   :  { %15 = vsyncpa [#allocation12], 0 }
   0x4   :  { %16 = vsyncpa [#allocation4], 0  ;;  %s3534_s24 = smov [#allocation5]   ;;  %s3535_s26 = smov [#allocation8]  }
   0x5   :  { %s37_s25 = sshll.u32 %s3534_s24, 4  ;;  %s59_s27 = sshll.u32 %s3535_s26, 4  ;;  %s38_s25 = int_to_ptr.vmem [resolvable:$true] %s37_s25  ;;  %s60_s27 = int_to_ptr.vmem [resolvable:$true] %s59_s27 }
   0x6   :  { %s3392_s28 = scalar_lea.vmem %s38_s25, 64  ;;  %p3397_p1 = scmp.lt.s32.totalorder %s38_s25, %s38_s25 }
   0x7   :  { %p3393_p0 = scmp.ne.s32.totalorder %s38_s25, %s3392_s28  ;;  %p3398_p2 = scmp.lt.s32.totalorder %s3392_s28, %s3392_s28 }
   0x9   :  { %p3399_p3 = por %p3398_p2, %p3397_p1 }
   0xb   :  { %p3400_p4 = pnand %p3399_p3, %p3393_p0 }
   0xd   :  { %3403 = shalt.err (!%p3400_p4)
}
   0xe   :  { %40 = dma.hbm_to_vmem [thread:$0]  %s5023_s2, 64, %s38_s25, [#allocation6]  }
   0xf   :  { %s3412_s8 = scalar_lea.vmem %s60_s27, 32  ;;  %p3417_p6 = scmp.lt.s32.totalorder %s60_s27, %s60_s27 }
  0x10   :  { %p3413_p5 = scmp.ne.s32.totalorder %s60_s27, %s3412_s8  ;;  %p3418_p7 = scmp.lt.s32.totalorder %s3412_s8, %s3412_s8 }
  0x12   :  { %p3419_p8 = por %p3418_p7, %p3417_p6 }
  0x14   :  { %p3420_p9 = pnand %p3419_p8, %p3413_p5 }
  0x16   :  { %3423 = shalt.err (!%p3420_p9)
}
  0x17   :  { %62 = dma.hbm_to_vmem [thread:$0]  %s5025_s4, 32, %s60_s27, [#allocation9]  }
  0x18   :  { %s3536_s11 = smov [#allocation2]  }
  0x19   :  { %s24_s12 = sshll.u32 %s3536_s11, 4  ;;  %s25_s12 = int_to_ptr.vmem [resolvable:$true] %s24_s12 }
  0x1a   :  { %s3432_s13 = scalar_lea.vmem %s25_s12, 50176  ;;  %p3437_p11 = scmp.lt.s32.totalorder %s25_s12, %s25_s12 }
  0x1b   :  { %p3433_p10 = scmp.ne.s32.totalorder %s25_s12, %s3432_s13  ;;  %p3438_p12 = scmp.lt.s32.totalorder %s3432_s13, %s3432_s13 }
  0x1d   :  { %p3439_p13 = por %p3438_p12, %p3437_p11 }
  0x1f   :  { %p3440_p0 = pnand %p3439_p13, %p3433_p10 }
  0x21   :  { %3443 = shalt.err (!%p3440_p0)
}
  0x22   :  { %s3537_s2 = smov 512   ;;  %s3538_s14 = smov 32  }
  0x23   :  { %30 = dma.hbm_to_vmem [thread:$0]  %s5022_s1, 50176, %s25_s12, [#allocation3], %s3537_s2, %s3537_s2, %s3538_s14  }
  0x24   :  { %s3539_s17 = smov [#allocation7]  }
  0x25   :  { %s46_s18 = sshll.u32 %s3539_s17, 4  ;;  %s47_s18 = int_to_ptr.vmem [resolvable:$true] %s46_s18 }
  0x26   :  { %s3452_s4 = scalar_lea.vmem %s47_s18, 16384  ;;  %p3457_p2 = scmp.lt.s32.totalorder %s47_s18, %s47_s18 }
  0x27   :  { %p3453_p1 = scmp.ne.s32.totalorder %s47_s18, %s3452_s4  ;;  %p3458_p3 = scmp.lt.s32.totalorder %s3452_s4, %s3452_s4 }
  0x29   :  { %p3459_p4 = por %p3458_p3, %p3457_p2 }
  0x2b   :  { %p3460_p5 = pnand %p3459_p4, %p3453_p1 }
  0x2d   :  { %3463 = shalt.err (!%p3460_p5)
}
  0x2e   :  { %s3540_s19 = smov 256   ;;  %s3541_s20 = smov 16  }
  0x2f   :  { %52 = dma.hbm_to_vmem [thread:$0]  %s5024_s3, 16384, %s47_s18, [#allocation6], %s3540_s19, %s3540_s19, %s3541_s20  }
  0x30   :  { %s3542_s23 = smov [#allocation10]  }
  0x31   :  { %s68_s24 = sshll.u32 %s3542_s23, 4  ;;  %s69_s24 = int_to_ptr.vmem [resolvable:$true] %s68_s24 }
  0x32   :  { %s3472_s1 = scalar_lea.vmem %s69_s24, 4096  ;;  %p3477_p7 = scmp.lt.s32.totalorder %s69_s24, %s69_s24 }
  0x33   :  { %p3473_p6 = scmp.ne.s32.totalorder %s69_s24, %s3472_s1  ;;  %p3478_p8 = scmp.lt.s32.totalorder %s3472_s1, %s3472_s1 }
  0x35   :  { %p3479_p9 = por %p3478_p8, %p3477_p7 }
  0x37   :  { %p3480_p10 = pnand %p3479_p9, %p3473_p6 }
  0x39   :  { %3483 = shalt.err (!%p3480_p10)
}
  0x3a   :  { %s3543_s25 = smov 128   ;;  %s3544_s26 = smov 8  }
  0x3b   :  { %74 = dma.hbm_to_vmem [thread:$0]  %s5026_s5, 4096, %s69_s24, [#allocation9], %s3543_s25, %s3543_s25, %s3544_s26  }
  0x3c   :  { %s3545_s3 = smov [#allocation11]  }
  0x3d   :  { %s81_s29 = sshll.u32 %s3545_s3, 4  ;;  %s82_s29 = int_to_ptr.vmem [resolvable:$true] %s81_s29 }
  0x3e   :  { %s3492_s30 = scalar_lea.vmem %s82_s29, 16  ;;  %s3496_s8 = scalar_lea.vmem %s82_s29, 32 }
  0x3f   :  { %p3493_p11 = scmp.ne.s32.totalorder %s82_s29, %s3492_s30  ;;  %p3497_p12 = scmp.lt.s32.totalorder %s82_s29, %s82_s29 }
  0x40   :  { %p3498_p13 = scmp.lt.s32.totalorder %s3496_s8, %s3492_s30 }
  0x42   :  { %p3499_p0 = por %p3498_p13, %p3497_p12 }
  0x44   :  { %p3500_p1 = pnand %p3499_p0, %p3493_p11 }
  0x46   :  { %3503 = shalt.err (!%p3500_p1)
}
  0x47   :  { %84 = dma.hbm_to_vmem [thread:$0]  %s5027_s6, 16, %s82_s29, [#allocation12]  }
  0x48   :  { %3524 = dma.done.wait [#allocation3], 50176  }
  0x49   :  { %3525 = vsyncadd [#allocation3], 4294917120 }
  0x4a   :  { %3526 = dma.done.wait [#allocation6], 16448  }
  0x4b   :  { %3527 = vsyncadd [#allocation6], 4294950848 }
  0x4c   :  { %3528 = dma.done.wait [#allocation9], 4128  }
  0x4d   :  { %3529 = vsyncadd [#allocation9], 4294963168 }
  0x4e   :  { %3530 = dma.done.wait [#allocation12], 16  }
  0x4f   :  { %3531 = vsyncadd [#allocation12], 4294967280  ;;  %v276_v0 = vld [vmem:[#allocation2 + $0x1e8] sm:$0xff]  ;;  %v275_v1 = vld [vmem:[#allocation2 + $0x1e0] sm:$0xff]  ;;  %vm629_vm0 = vcmask 130048  }
  0x50   :  { %v404_v2 = vld [vmem:[#allocation2 + $0x5e8] sm:$0xff]  ;;  %678 = vmatprep.subr.mxu0 %v276_v0  ;;  %v403_v4 = vld [vmem:[#allocation2 + $0x5e0] sm:$0xff] }
  0x51   :  { %839 = vmatprep.subr.mxu1 %v404_v2  ;;  %v272_v3 = vld [vmem:[#allocation2 + $0x1c8] sm:$0xff]  ;;  %v271_v5 = vld [vmem:[#allocation2 + $0x1c0] sm:$0xff]  ;;  %679 = vmatpush1.msra.mxu0 %v275_v1 }
  0x52   :  { %840 = vmatpush1.msra.mxu1 %v403_v4  ;;  %v400_v6 = vld [vmem:[#allocation2 + $0x5c8] sm:$0xff]  ;;  %v399_v8 = vld [vmem:[#allocation2 + $0x5c0] sm:$0xff]  ;;  %680 = vmatprep.subr.mxu0 %v272_v3 }
  0x53   :  { %v268_v7 = vld [vmem:[#allocation2 + $0x1a8] sm:$0xff]  ;;  %841 = vmatprep.subr.mxu1 %v400_v6  ;;  %v267_v9 = vld [vmem:[#allocation2 + $0x1a0] sm:$0xff]  ;;  %681 = vmatpush1.msra.mxu0 %v271_v5 }
  0x54   :  { %v396_v10 = vld [vmem:[#allocation2 + $0x5a8] sm:$0xff]  ;;  %842 = vmatpush1.msra.mxu1 %v399_v8  ;;  %v395_v12 = vld [vmem:[#allocation2 + $0x5a0] sm:$0xff]  ;;  %682 = vmatprep.subr.mxu0 %v268_v7 }
  0x55   :  { %v264_v11 = vld [vmem:[#allocation2 + $0x188] sm:$0xff]  ;;  %843 = vmatprep.subr.mxu1 %v396_v10  ;;  %v263_v14 = vld [vmem:[#allocation2 + $0x180] sm:$0xff]  ;;  %683 = vmatpush1.msra.mxu0 %v267_v9 }
  0x56   :  { %v392_v13 = vld [vmem:[#allocation2 + $0x588] sm:$0xff]  ;;  %v391_v15 = vld [vmem:[#allocation2 + $0x580] sm:$0xff]  ;;  %844 = vmatpush1.msra.mxu1 %v395_v12  ;;  %684 = vmatprep.subr.mxu0 %v264_v11 }
  0x57   :  { %v260_v16 = vld [vmem:[#allocation2 + $0x168] sm:$0xff]  ;;  %845 = vmatprep.subr.mxu1 %v392_v13  ;;  %v259_v18 = vld [vmem:[#allocation2 + $0x160] sm:$0xff]  ;;  %685 = vmatpush1.msra.mxu0 %v263_v14 }
  0x58   :  { %v388_v17 = vld [vmem:[#allocation2 + $0x568] sm:$0xff]  ;;  %v387_v19 = vld [vmem:[#allocation2 + $0x560] sm:$0xff]  ;;  %846 = vmatpush1.msra.mxu1 %v391_v15  ;;  %686 = vmatprep.subr.mxu0 %v260_v16 }
  0x59   :  { %v256_v20 = vld [vmem:[#allocation2 + $0x148] sm:$0xff]  ;;  %847 = vmatprep.subr.mxu1 %v388_v17  ;;  %v255_v22 = vld [vmem:[#allocation2 + $0x140] sm:$0xff]  ;;  %687 = vmatpush1.msra.mxu0 %v259_v18 }
  0x5a   :  { %v384_v21 = vld [vmem:[#allocation2 + $0x548] sm:$0xff]  ;;  %v383_v23 = vld [vmem:[#allocation2 + $0x540] sm:$0xff]  ;;  %848 = vmatpush1.msra.mxu1 %v387_v19  ;;  %688 = vmatprep.subr.mxu0 %v256_v20 }
  0x5b   :  { %v252_v24 = vld [vmem:[#allocation2 + $0x128] sm:$0xff]  ;;  %849 = vmatprep.subr.mxu1 %v384_v21  ;;  %v251_v26 = vld [vmem:[#allocation2 + $0x120] sm:$0xff]  ;;  %689 = vmatpush1.msra.mxu0 %v255_v22 }
  0x5c   :  { %v380_v25 = vld [vmem:[#allocation2 + $0x528] sm:$0xff]  ;;  %v379_v27 = vld [vmem:[#allocation2 + $0x520] sm:$0xff]  ;;  %850 = vmatpush1.msra.mxu1 %v383_v23  ;;  %690 = vmatprep.subr.mxu0 %v252_v24 }
  0x5d   :  { %v248_v28 = vld [vmem:[#allocation2 + $0x108] sm:$0xff]  ;;  %851 = vmatprep.subr.mxu1 %v380_v25  ;;  %v247_v30 = vld [vmem:[#allocation2 + $0x100] sm:$0xff]  ;;  %691 = vmatpush1.msra.mxu0 %v251_v26 }
  0x5e   :  { %v376_v29 = vld [vmem:[#allocation2 + $0x508] sm:$0xff]  ;;  %v375_v31 = vld [vmem:[#allocation2 + $0x500] sm:$0xff]  ;;  %852 = vmatpush1.msra.mxu1 %v379_v27  ;;  %692 = vmatprep.subr.mxu0 %v248_v28 }
  0x5f   :  { %v244_v32 = vld [vmem:[#allocation2 + $0xe8] sm:$0xff]  ;;  %853 = vmatprep.subr.mxu1 %v376_v29  ;;  %v243_v34 = vld [vmem:[#allocation2 + $0xe0] sm:$0xff]  ;;  %693 = vmatpush1.msra.mxu0 %v247_v30 }
  0x60   :  { %v372_v33 = vld [vmem:[#allocation2 + $0x4e8] sm:$0xff]  ;;  %v371_v35 = vld [vmem:[#allocation2 + $0x4e0] sm:$0xff]  ;;  %854 = vmatpush1.msra.mxu1 %v375_v31  ;;  %694 = vmatprep.subr.mxu0 %v244_v32 }
  0x61   :  { %v240_v36 = vld [vmem:[#allocation2 + $0xc8] sm:$0xff]  ;;  %855 = vmatprep.subr.mxu1 %v372_v33  ;;  %v239_v38 = vld [vmem:[#allocation2 + $0xc0] sm:$0xff]  ;;  %695 = vmatpush1.msra.mxu0 %v243_v34 }
  0x62   :  { %v368_v37 = vld [vmem:[#allocation2 + $0x4c8] sm:$0xff]  ;;  %v367_v39 = vld [vmem:[#allocation2 + $0x4c0] sm:$0xff]  ;;  %856 = vmatpush1.msra.mxu1 %v371_v35  ;;  %696 = vmatprep.subr.mxu0 %v240_v36 }
  0x63   :  { %v236_v40 = vld [vmem:[#allocation2 + $0xa8] sm:$0xff]  ;;  %857 = vmatprep.subr.mxu1 %v368_v37  ;;  %v235_v42 = vld [vmem:[#allocation2 + $0xa0] sm:$0xff]  ;;  %697 = vmatpush1.msra.mxu0 %v239_v38 }
  0x64   :  { %v364_v41 = vld [vmem:[#allocation2 + $0x4a8] sm:$0xff]  ;;  %v363_v43 = vld [vmem:[#allocation2 + $0x4a0] sm:$0xff]  ;;  %858 = vmatpush1.msra.mxu1 %v367_v39  ;;  %698 = vmatprep.subr.mxu0 %v236_v40 }
  0x65   :  { %v232_v44 = vld [vmem:[#allocation2 + $0x88] sm:$0xff]  ;;  %859 = vmatprep.subr.mxu1 %v364_v41  ;;  %v231_v46 = vld [vmem:[#allocation2 + $0x80] sm:$0xff]  ;;  %699 = vmatpush1.msra.mxu0 %v235_v42 }
  0x66   :  { %v360_v45 = vld [vmem:[#allocation2 + $0x488] sm:$0xff]  ;;  %v359_v47 = vld [vmem:[#allocation2 + $0x480] sm:$0xff]  ;;  %860 = vmatpush1.msra.mxu1 %v363_v43  ;;  %700 = vmatprep.subr.mxu0 %v232_v44 }
  0x67   :  { %v228_v48 = vld [vmem:[#allocation2 + $0x68] sm:$0xff]  ;;  %861 = vmatprep.subr.mxu1 %v360_v45  ;;  %v227_v50 = vld [vmem:[#allocation2 + $0x60] sm:$0xff]  ;;  %701 = vmatpush1.msra.mxu0 %v231_v46 }
  0x68   :  { %v356_v49 = vld [vmem:[#allocation2 + $0x468] sm:$0xff]  ;;  %v355_v51 = vld [vmem:[#allocation2 + $0x460] sm:$0xff]  ;;  %862 = vmatpush1.msra.mxu1 %v359_v47  ;;  %702 = vmatprep.subr.mxu0 %v228_v48 }
  0x69   :  { %v224_v52 = vld [vmem:[#allocation2 + $0x48] sm:$0xff]  ;;  %863 = vmatprep.subr.mxu1 %v356_v49  ;;  %v223_v54 = vld [vmem:[#allocation2 + $0x40] sm:$0xff]  ;;  %703 = vmatpush1.msra.mxu0 %v227_v50 }
  0x6a   :  { %v352_v53 = vld [vmem:[#allocation2 + $0x448] sm:$0xff]  ;;  %v351_v55 = vld [vmem:[#allocation2 + $0x440] sm:$0xff]  ;;  %864 = vmatpush1.msra.mxu1 %v355_v51  ;;  %704 = vmatprep.subr.mxu0 %v224_v52 }
  0x6b   :  { %v220_v56 = vld [vmem:[#allocation2 + $0x28] sm:$0xff]  ;;  %865 = vmatprep.subr.mxu1 %v352_v53  ;;  %v219_v58 = vld [vmem:[#allocation2 + $0x20] sm:$0xff]  ;;  %705 = vmatpush1.msra.mxu0 %v223_v54 }
  0x6c   :  { %v348_v57 = vld [vmem:[#allocation2 + $0x428] sm:$0xff]  ;;  %v347_v59 = vld [vmem:[#allocation2 + $0x420] sm:$0xff]  ;;  %866 = vmatpush1.msra.mxu1 %v351_v55  ;;  %706 = vmatprep.subr.mxu0 %v220_v56 }
  0x6d   :  { %v216_v60 = vld [vmem:[#allocation2 + $0x8] sm:$0xff]  ;;  %867 = vmatprep.subr.mxu1 %v348_v57  ;;  %v215_v62 = vld [vmem:[#allocation2] sm:$0xff]  ;;  %707 = vmatpush1.msra.mxu0 %v219_v58 }
  0x6e   :  { %v344_v61 = vld [vmem:[#allocation2 + $0x408] sm:$0xff]  ;;  %v343_v63 = vld [vmem:[#allocation2 + $0x400] sm:$0xff]  ;;  %868 = vmatpush1.msra.mxu1 %v347_v59  ;;  %708 = vmatprep.subr.mxu0 %v216_v60 }
  0x6f   :  { %v340_v0 = vld [vmem:[#allocation2 + $0x3e8] sm:$0xff]  ;;  %869 = vmatprep.subr.mxu1 %v344_v61  ;;  %v339_v2 = vld [vmem:[#allocation2 + $0x3e0] sm:$0xff]  ;;  %709 = vmatpush1.msra.mxu0 %v215_v62 }
  0x70   :  { %v468_v1 = vld [vmem:[#allocation2 + $0x7e8] sm:$0xff]  ;;  %v467_v3 = vld [vmem:[#allocation2 + $0x7e0] sm:$0xff]  ;;  %870 = vmatpush1.msra.mxu1 %v343_v63  ;;  %710 = vmatprep.subr.mxu0 %v340_v0 }
  0x71   :  { %v336_v4 = vld [vmem:[#allocation2 + $0x3c8] sm:$0xff]  ;;  %871 = vmatprep.subr.mxu1 %v468_v1  ;;  %v335_v6 = vld [vmem:[#allocation2 + $0x3c0] sm:$0xff]  ;;  %711 = vmatpush2.msra.mxu0 %v339_v2  ;;  %v106_v2 = vld [vmem:[%s5021_s0 + $0x18] sm:$0xff] }
  0x72   :  { %v464_v5 = vld [vmem:[#allocation2 + $0x7c8] sm:$0xff]  ;;  %v463_v7 = vld [vmem:[#allocation2 + $0x7c0] sm:$0xff]  ;;  %872 = vmatpush2.msra.mxu1 %v467_v3  ;;  %712 = vmatprep.subr.mxu0 %v336_v4  ;;  %v105_v4 = vld [vmem:[%s5021_s0 + $0x10] sm:$0xff] }
  0x73   :  { %v332_v8 = vld [vmem:[#allocation2 + $0x3a8] sm:$0xff]  ;;  %873 = vmatprep.subr.mxu1 %v464_v5  ;;  %v331_v10 = vld [vmem:[#allocation2 + $0x3a0] sm:$0xff]  ;;  %713 = vmatpush2.msra.mxu0 %v335_v6 }
  0x74   :  { %v460_v9 = vld [vmem:[#allocation2 + $0x7a8] sm:$0xff]  ;;  %v459_v11 = vld [vmem:[#allocation2 + $0x7a0] sm:$0xff]  ;;  %874 = vmatpush2.msra.mxu1 %v463_v7  ;;  %714 = vmatprep.subr.mxu0 %v332_v8 }
  0x75   :  { %v328_v12 = vld [vmem:[#allocation2 + $0x388] sm:$0xff]  ;;  %875 = vmatprep.subr.mxu1 %v460_v9  ;;  %v327_v14 = vld [vmem:[#allocation2 + $0x380] sm:$0xff]  ;;  %715 = vmatpush2.msra.mxu0 %v331_v10 }
  0x76   :  { %v456_v13 = vld [vmem:[#allocation2 + $0x788] sm:$0xff]  ;;  %v455_v15 = vld [vmem:[#allocation2 + $0x780] sm:$0xff]  ;;  %876 = vmatpush2.msra.mxu1 %v459_v11  ;;  %716 = vmatprep.subr.mxu0 %v328_v12  ;;  %v110_v11 = vld [vmem:[%s5021_s0 + $0x38] sm:$0xff] }
  0x77   :  { %v324_v16 = vld [vmem:[#allocation2 + $0x368] sm:$0xff]  ;;  %877 = vmatprep.subr.mxu1 %v456_v13  ;;  %v323_v18 = vld [vmem:[#allocation2 + $0x360] sm:$0xff]  ;;  %717 = vmatpush2.msra.mxu0 %v327_v14  ;;  %v113_v12 = vld [vmem:[%s5021_s0 + $0x50] sm:$0xff] }
  0x78   :  { %v452_v17 = vld [vmem:[#allocation2 + $0x768] sm:$0xff]  ;;  %v451_v19 = vld [vmem:[#allocation2 + $0x760] sm:$0xff]  ;;  %878 = vmatpush2.msra.mxu1 %v455_v15  ;;  %718 = vmatprep.subr.mxu0 %v324_v16 }
  0x79   :  { %v320_v20 = vld [vmem:[#allocation2 + $0x348] sm:$0xff]  ;;  %879 = vmatprep.subr.mxu1 %v452_v17  ;;  %v319_v22 = vld [vmem:[#allocation2 + $0x340] sm:$0xff]  ;;  %719 = vmatpush2.msra.mxu0 %v323_v18  ;;  %v118_v17 = vld [vmem:[%s5021_s0 + $0x78] sm:$0xff] }
  0x7a   :  { %v448_v21 = vld [vmem:[#allocation2 + $0x748] sm:$0xff]  ;;  %v447_v23 = vld [vmem:[#allocation2 + $0x740] sm:$0xff]  ;;  %880 = vmatpush2.msra.mxu1 %v451_v19  ;;  %720 = vmatprep.subr.mxu0 %v320_v20  ;;  %v117_v20 = vld [vmem:[%s5021_s0 + $0x70] sm:$0xff] }
  0x7b   :  { %v316_v24 = vld [vmem:[#allocation2 + $0x328] sm:$0xff]  ;;  %881 = vmatprep.subr.mxu1 %v448_v21  ;;  %v315_v26 = vld [vmem:[#allocation2 + $0x320] sm:$0xff]  ;;  %721 = vmatpush2.msra.mxu0 %v319_v22 }
  0x7c   :  { %v444_v25 = vld [vmem:[#allocation2 + $0x728] sm:$0xff]  ;;  %v443_v27 = vld [vmem:[#allocation2 + $0x720] sm:$0xff]  ;;  %882 = vmatpush2.msra.mxu1 %v447_v23  ;;  %722 = vmatprep.subr.mxu0 %v316_v24 }
  0x7d   :  { %v312_v28 = vld [vmem:[#allocation2 + $0x308] sm:$0xff]  ;;  %883 = vmatprep.subr.mxu1 %v444_v25  ;;  %v311_v30 = vld [vmem:[#allocation2 + $0x300] sm:$0xff]  ;;  %723 = vmatpush2.msra.mxu0 %v315_v26  ;;  %v125_v25 = vld [vmem:[%s5021_s0 + $0xb0] sm:$0xff] }
  0x7e   :  { %v440_v29 = vld [vmem:[#allocation2 + $0x708] sm:$0xff]  ;;  %v439_v31 = vld [vmem:[#allocation2 + $0x700] sm:$0xff]  ;;  %884 = vmatpush2.msra.mxu1 %v443_v27  ;;  %724 = vmatprep.subr.mxu0 %v312_v28 }
  0x7f   :  { %v308_v32 = vld [vmem:[#allocation2 + $0x2e8] sm:$0xff]  ;;  %885 = vmatprep.subr.mxu1 %v440_v29  ;;  %v307_v34 = vld [vmem:[#allocation2 + $0x2e0] sm:$0xff]  ;;  %725 = vmatpush2.msra.mxu0 %v311_v30  ;;  %v126_v30 = vld [vmem:[%s5021_s0 + $0xb8] sm:$0xff] }
  0x80   :  { %v436_v33 = vld [vmem:[#allocation2 + $0x6e8] sm:$0xff]  ;;  %v435_v35 = vld [vmem:[#allocation2 + $0x6e0] sm:$0xff]  ;;  %886 = vmatpush2.msra.mxu1 %v439_v31  ;;  %726 = vmatprep.subr.mxu0 %v308_v32 }
  0x81   :  { %v304_v36 = vld [vmem:[#allocation2 + $0x2c8] sm:$0xff]  ;;  %887 = vmatprep.subr.mxu1 %v436_v33  ;;  %v303_v38 = vld [vmem:[#allocation2 + $0x2c0] sm:$0xff]  ;;  %727 = vmatpush2.msra.mxu0 %v307_v34 }
  0x82   :  { %v432_v37 = vld [vmem:[#allocation2 + $0x6c8] sm:$0xff]  ;;  %v431_v39 = vld [vmem:[#allocation2 + $0x6c0] sm:$0xff]  ;;  %888 = vmatpush2.msra.mxu1 %v435_v35  ;;  %728 = vmatprep.subr.mxu0 %v304_v36  ;;  %v134_v35 = vld [vmem:[%s5021_s0 + $0xf8] sm:$0xff] }
  0x83   :  { %v300_v40 = vld [vmem:[#allocation2 + $0x2a8] sm:$0xff]  ;;  %889 = vmatprep.subr.mxu1 %v432_v37  ;;  %v299_v42 = vld [vmem:[#allocation2 + $0x2a0] sm:$0xff]  ;;  %729 = vmatpush2.msra.mxu0 %v303_v38  ;;  %v133_v38 = vld [vmem:[%s5021_s0 + $0xf0] sm:$0xff] }
  0x84   :  { %v428_v41 = vld [vmem:[#allocation2 + $0x6a8] sm:$0xff]  ;;  %v427_v43 = vld [vmem:[#allocation2 + $0x6a0] sm:$0xff]  ;;  %890 = vmatpush2.msra.mxu1 %v431_v39  ;;  %730 = vmatprep.subr.mxu0 %v300_v40 }
  0x85   :  { %v296_v44 = vld [vmem:[#allocation2 + $0x288] sm:$0xff]  ;;  %891 = vmatprep.subr.mxu1 %v428_v41  ;;  %v295_v46 = vld [vmem:[#allocation2 + $0x280] sm:$0xff]  ;;  %731 = vmatpush2.msra.mxu0 %v299_v42 }
  0x86   :  { %v424_v45 = vld [vmem:[#allocation2 + $0x688] sm:$0xff]  ;;  %v423_v47 = vld [vmem:[#allocation2 + $0x680] sm:$0xff]  ;;  %892 = vmatpush2.msra.mxu1 %v427_v43  ;;  %732 = vmatprep.subr.mxu0 %v296_v44  ;;  %v141_v43 = vld [vmem:[%s5021_s0 + $0x130] sm:$0xff] }
  0x87   :  { %v292_v48 = vld [vmem:[#allocation2 + $0x268] sm:$0xff]  ;;  %893 = vmatprep.subr.mxu1 %v424_v45  ;;  %v291_v50 = vld [vmem:[#allocation2 + $0x260] sm:$0xff]  ;;  %733 = vmatpush2.msra.mxu0 %v295_v46  ;;  %v138_v44 = vld [vmem:[%s5021_s0 + $0x118] sm:$0xff] }
  0x88   :  { %v420_v49 = vld [vmem:[#allocation2 + $0x668] sm:$0xff]  ;;  %v419_v51 = vld [vmem:[#allocation2 + $0x660] sm:$0xff]  ;;  %894 = vmatpush2.msra.mxu1 %v423_v47  ;;  %734 = vmatprep.subr.mxu0 %v292_v48 }
  0x89   :  { %v288_v52 = vld [vmem:[#allocation2 + $0x248] sm:$0xff]  ;;  %895 = vmatprep.subr.mxu1 %v420_v49  ;;  %v287_v54 = vld [vmem:[#allocation2 + $0x240] sm:$0xff]  ;;  %735 = vmatpush2.msra.mxu0 %v291_v50  ;;  %v146_v49 = vld [vmem:[%s5021_s0 + $0x158] sm:$0xff] }
  0x8a   :  { %v416_v53 = vld [vmem:[#allocation2 + $0x648] sm:$0xff]  ;;  %v415_v55 = vld [vmem:[#allocation2 + $0x640] sm:$0xff]  ;;  %896 = vmatpush2.msra.mxu1 %v419_v51  ;;  %736 = vmatprep.subr.mxu0 %v288_v52  ;;  %v145_v52 = vld [vmem:[%s5021_s0 + $0x150] sm:$0xff] }
  0x8b   :  { %v284_v56 = vld [vmem:[#allocation2 + $0x228] sm:$0xff]  ;;  %897 = vmatprep.subr.mxu1 %v416_v53  ;;  %v283_v58 = vld [vmem:[#allocation2 + $0x220] sm:$0xff]  ;;  %737 = vmatpush2.msra.mxu0 %v287_v54 }
  0x8c   :  { %v412_v57 = vld [vmem:[#allocation2 + $0x628] sm:$0xff]  ;;  %v411_v59 = vld [vmem:[#allocation2 + $0x620] sm:$0xff]  ;;  %898 = vmatpush2.msra.mxu1 %v415_v55  ;;  %738 = vmatprep.subr.mxu0 %v284_v56 }
  0x8d   :  { %v280_v60 = vld [vmem:[#allocation2 + $0x208] sm:$0xff]  ;;  %899 = vmatprep.subr.mxu1 %v412_v57  ;;  %v279_v62 = vld [vmem:[#allocation2 + $0x200] sm:$0xff]  ;;  %739 = vmatpush2.msra.mxu0 %v283_v58  ;;  %v153_v57 = vld [vmem:[%s5021_s0 + $0x190] sm:$0xff] }
  0x8e   :  { %v104_v61 = vld [vmem:[%s5021_s0 + $0x8] sm:$0xff]  ;;  %900 = vmatpush2.msra.mxu1 %v411_v59  ;;  %v103_v0 = vld [vmem:[%s5021_s0] sm:$0xff]  ;;  %740 = vmatprep.subr.mxu0 %v280_v60 }
  0x8f   :  { %v408_v63 = vld [vmem:[#allocation2 + $0x608] sm:$0xff]  ;;  %v407_v1 = vld [vmem:[#allocation2 + $0x600] sm:$0xff]  ;;  %742 = vmatprep.mubr.f32.mxu0 %v104_v61  ;;  %741 = vmatpush2.msra.mxu0 %v279_v62  ;;  %v154_v62 = vld [vmem:[%s5021_s0 + $0x198] sm:$0xff] }
  0x90   :  { %v532_v3 = vld [vmem:[#allocation2 + $0x9e8] sm:$0xff]  ;;  %901 = vmatprep.subr.mxu1 %v408_v63  ;;  %v531_v5 = vld [vmem:[#allocation2 + $0x9e0] sm:$0xff]  ;;  %743 = vmatmul.mubr.f32.vlgmr.msra.gmra.mxu0 %v103_v0 }
  0x91   :  { %902 = vmatpush2.msra.mxu1 %v407_v1  ;;  %v528_v6 = vld [vmem:[#allocation2 + $0x9c8] sm:$0xff]  ;;  %903 = vmatprep.mubr.f32.mxu1 %v106_v2  ;;  %v111_v8 = vld [vmem:[%s5021_s0 + $0x40] sm:$0xff] }
  0x92   :  { %v604_v7 = vld [vmem:[#allocation2 + $0xc28] sm:$0xff]  ;;  %1000 = vmatprep.subr.mxu0 %v532_v3  ;;  %v527_v9 = vld [vmem:[#allocation2 + $0x9c0] sm:$0xff]  ;;  %904 = vmatmul.mubr.f32.vlgmr.msra.gmra.mxu1 %v105_v4  ;;  %v162_v3 = vld [vmem:[%s5021_s0 + $0x1d8] sm:$0xff] }
  0x93   :  { %1001 = vmatpush1.msra.mxu0 %v531_v5  ;;  %v603_v10 = vld [vmem:[#allocation2 + $0xc20] sm:$0xff]  ;;  %1189 = vmatprep.subr.mxu1 %v604_v7  ;;  %v524_v13 = vld [vmem:[#allocation2 + $0x9a8] sm:$0xff] }
  0x94   :  { %1002 = vmatprep.subr.mxu0 %v528_v6  ;;  %748 = vmatprep.mubr.f32.mxu0 %v111_v8  ;;  %v112_v14 = vld [vmem:[%s5021_s0 + $0x48] sm:$0xff]  ;;  %v523_v15 = vld [vmem:[#allocation2 + $0x9a0] sm:$0xff]  ;;  %v161_v6 = vld [vmem:[%s5021_s0 + $0x1d0] sm:$0xff] }
  0x95   :  { %1003 = vmatpush1.msra.mxu0 %v527_v9  ;;  %1190 = vmatpush1.msra.mxu1 %v603_v10  ;;  %v520_v16 = vld [vmem:[#allocation2 + $0x988] sm:$0xff]  ;;  %v519_v18 = vld [vmem:[#allocation2 + $0x980] sm:$0xff] }
  0x96   :  { %749 = vmatmul.mubr.f32.gmra.mxu0 %v110_v11  ;;  %909 = vmatprep.mubr.f32.mxu1 %v113_v12  ;;  %v120_v19 = vld [vmem:[%s5021_s0 + $0x88] sm:$0xff]  ;;  %v119_v22 = vld [vmem:[%s5021_s0 + $0x80] sm:$0xff] }
  0x97   :  { %1004 = vmatprep.subr.mxu0 %v524_v13  ;;  %910 = vmatmul.mubr.f32.gmra.mxu1 %v112_v14  ;;  %v516_v21 = vld [vmem:[#allocation2 + $0x968] sm:$0xff]  ;;  %v515_v23 = vld [vmem:[#allocation2 + $0x960] sm:$0xff]  ;;  %v166_v13 = vld [vmem:[%s5021_s0 + $0x1f8] sm:$0xff] }
  0x98   :  { %1005 = vmatpush1.msra.mxu0 %v523_v15  ;;  %754 = vmatprep.mubr.f32.mxu0 %v118_v17  ;;  %v512_v24 = vld [vmem:[#allocation2 + $0x948] sm:$0xff]  ;;  %v511_v26 = vld [vmem:[#allocation2 + $0x940] sm:$0xff]  ;;  %v169_v14 = vld [vmem:[%s5021_s0 + $0x210] sm:$0xff] }
  0x99   :  { %1006 = vmatprep.subr.mxu0 %v520_v16  ;;  %915 = vmatprep.mubr.f32.mxu1 %v120_v19  ;;  %v127_v27 = vld [vmem:[%s5021_s0 + $0xc0] sm:$0xff]  ;;  %v124_v28 = vld [vmem:[%s5021_s0 + $0xa8] sm:$0xff]  ;;  %v174_v19 = vld [vmem:[%s5021_s0 + $0x238] sm:$0xff] }
  0x9a   :  { %1007 = vmatpush1.msra.mxu0 %v519_v18  ;;  %v508_v29 = vld [vmem:[#allocation2 + $0x928] sm:$0xff]  ;;  %v507_v31 = vld [vmem:[#allocation2 + $0x920] sm:$0xff] }
  0x9b   :  { %755 = vmatmul.mubr.f32.gmra.mxu0 %v117_v20  ;;  %1008 = vmatprep.subr.mxu0 %v516_v21  ;;  %v504_v32 = vld [vmem:[#allocation2 + $0x908] sm:$0xff]  ;;  %v503_v34 = vld [vmem:[#allocation2 + $0x900] sm:$0xff] }
  0x9c   :  { %916 = vmatmul.mubr.f32.gmra.mxu1 %v119_v22  ;;  %1009 = vmatpush1.msra.mxu0 %v515_v23  ;;  %v132_v33 = vld [vmem:[%s5021_s0 + $0xe8] sm:$0xff]  ;;  %v131_v36 = vld [vmem:[%s5021_s0 + $0xe0] sm:$0xff]  ;;  %v173_v22 = vld [vmem:[%s5021_s0 + $0x230] sm:$0xff] }
  0x9d   :  { %1010 = vmatprep.subr.mxu0 %v512_v24  ;;  %760 = vmatprep.mubr.f32.mxu0 %v125_v25  ;;  %v500_v37 = vld [vmem:[#allocation2 + $0x8e8] sm:$0xff]  ;;  %v499_v39 = vld [vmem:[#allocation2 + $0x8e0] sm:$0xff] }
  0x9e   :  { %1011 = vmatpush1.msra.mxu0 %v511_v26  ;;  %921 = vmatprep.mubr.f32.mxu1 %v127_v27  ;;  %v496_v40 = vld [vmem:[#allocation2 + $0x8c8] sm:$0xff]  ;;  %v139_v41 = vld [vmem:[%s5021_s0 + $0x120] sm:$0xff]  ;;  %v181_v27 = vld [vmem:[%s5021_s0 + $0x270] sm:$0xff] }
  0x9f   :  { %761 = vmatmul.mubr.f32.gmra.mxu0 %v124_v28  ;;  %1012 = vmatprep.subr.mxu0 %v508_v29  ;;  %v495_v42 = vld [vmem:[#allocation2 + $0x8c0] sm:$0xff]  ;;  %v492_v45 = vld [vmem:[#allocation2 + $0x8a8] sm:$0xff] }
  0xa0   :  { %922 = vmatmul.mubr.f32.gmra.mxu1 %v126_v30  ;;  %1013 = vmatpush1.msra.mxu0 %v507_v31  ;;  %v140_v46 = vld [vmem:[%s5021_s0 + $0x128] sm:$0xff]  ;;  %v491_v47 = vld [vmem:[#allocation2 + $0x8a0] sm:$0xff] }
  0xa1   :  { %1014 = vmatprep.subr.mxu0 %v504_v32  ;;  %766 = vmatprep.mubr.f32.mxu0 %v132_v33  ;;  %v488_v48 = vld [vmem:[#allocation2 + $0x888] sm:$0xff]  ;;  %v487_v50 = vld [vmem:[#allocation2 + $0x880] sm:$0xff]  ;;  %v182_v32 = vld [vmem:[%s5021_s0 + $0x278] sm:$0xff] }
  0xa2   :  { %1015 = vmatpush1.msra.mxu0 %v503_v34  ;;  %927 = vmatprep.mubr.f32.mxu1 %v134_v35  ;;  %v148_v51 = vld [vmem:[%s5021_s0 + $0x168] sm:$0xff]  ;;  %v147_v54 = vld [vmem:[%s5021_s0 + $0x160] sm:$0xff] }
  0xa3   :  { %767 = vmatmul.mubr.f32.gmra.mxu0 %v131_v36  ;;  %1016 = vmatprep.subr.mxu0 %v500_v37  ;;  %v484_v53 = vld [vmem:[#allocation2 + $0x868] sm:$0xff]  ;;  %v483_v55 = vld [vmem:[#allocation2 + $0x860] sm:$0xff]  ;;  %v190_v37 = vld [vmem:[%s5021_s0 + $0x2b8] sm:$0xff] }
  0xa4   :  { %928 = vmatmul.mubr.f32.gmra.mxu1 %v133_v38  ;;  %1017 = vmatpush1.msra.mxu0 %v499_v39  ;;  %v480_v56 = vld [vmem:[#allocation2 + $0x848] sm:$0xff]  ;;  %v479_v58 = vld [vmem:[#allocation2 + $0x840] sm:$0xff] }
  0xa5   :  { %1018 = vmatprep.subr.mxu0 %v496_v40  ;;  %772 = vmatprep.mubr.f32.mxu0 %v139_v41  ;;  %v155_v59 = vld [vmem:[%s5021_s0 + $0x1a0] sm:$0xff]  ;;  %v152_v60 = vld [vmem:[%s5021_s0 + $0x188] sm:$0xff]  ;;  %v189_v40 = vld [vmem:[%s5021_s0 + $0x2b0] sm:$0xff] }
  0xa6   :  { %1019 = vmatpush1.msra.mxu0 %v495_v42  ;;  %933 = vmatprep.mubr.f32.mxu1 %v141_v43  ;;  %v476_v61 = vld [vmem:[#allocation2 + $0x828] sm:$0xff]  ;;  %v475_v63 = vld [vmem:[#allocation2 + $0x820] sm:$0xff] }
  0xa7   :  { %773 = vmatmul.mubr.f32.gmra.mxu0 %v138_v44  ;;  %1020 = vmatprep.subr.mxu0 %v492_v45  ;;  %v472_v0 = vld [vmem:[#allocation2 + $0x808] sm:$0xff]  ;;  %v471_v2 = vld [vmem:[#allocation2 + $0x800] sm:$0xff]  ;;  %v197_v45 = vld [vmem:[%s5021_s0 + $0x2f0] sm:$0xff] }
  0xa8   :  { %934 = vmatmul.mubr.f32.gmra.mxu1 %v140_v46  ;;  %1021 = vmatpush1.msra.mxu0 %v491_v47  ;;  %v160_v1 = vld [vmem:[%s5021_s0 + $0x1c8] sm:$0xff]  ;;  %v159_v4 = vld [vmem:[%s5021_s0 + $0x1c0] sm:$0xff]  ;;  %v194_v46 = vld [vmem:[%s5021_s0 + $0x2d8] sm:$0xff] }
  0xa9   :  { %1022 = vmatprep.subr.mxu0 %v488_v48  ;;  %778 = vmatprep.mubr.f32.mxu0 %v146_v49  ;;  %v596_v5 = vld [vmem:[#allocation2 + $0xbe8] sm:$0xff]  ;;  %v595_v7 = vld [vmem:[#allocation2 + $0xbe0] sm:$0xff] }
  0xaa   :  { %1023 = vmatpush1.msra.mxu0 %v487_v50  ;;  %939 = vmatprep.mubr.f32.mxu1 %v148_v51  ;;  %v592_v8 = vld [vmem:[#allocation2 + $0xbc8] sm:$0xff]  ;;  %v167_v10 = vld [vmem:[%s5021_s0 + $0x200] sm:$0xff]  ;;  %v202_v51 = vld [vmem:[%s5021_s0 + $0x318] sm:$0xff] }
  0xab   :  { %779 = vmatmul.mubr.f32.gmra.mxu0 %v145_v52  ;;  %1024 = vmatprep.subr.mxu0 %v484_v53  ;;  %v600_v9 = vld [vmem:[#allocation2 + $0xc08] sm:$0xff]  ;;  %v591_v11 = vld [vmem:[#allocation2 + $0xbc0] sm:$0xff] }
  0xac   :  { %940 = vmatmul.mubr.f32.gmra.mxu1 %v147_v54  ;;  %1025 = vmatpush1.msra.mxu0 %v483_v55  ;;  %v599_v12 = vld [vmem:[#allocation2 + $0xc00] sm:$0xff]  ;;  %v588_v15 = vld [vmem:[#allocation2 + $0xba8] sm:$0xff]  ;;  %v201_v54 = vld [vmem:[%s5021_s0 + $0x310] sm:$0xff] }
  0xad   :  { %1026 = vmatprep.subr.mxu0 %v480_v56  ;;  %784 = vmatprep.mubr.f32.mxu0 %v153_v57  ;;  %v168_v16 = vld [vmem:[%s5021_s0 + $0x208] sm:$0xff]  ;;  %v587_v17 = vld [vmem:[#allocation2 + $0xba0] sm:$0xff] }
  0xae   :  { %1027 = vmatpush1.msra.mxu0 %v479_v58  ;;  %945 = vmatprep.mubr.f32.mxu1 %v155_v59  ;;  %v584_v18 = vld [vmem:[#allocation2 + $0xb88] sm:$0xff]  ;;  %v583_v20 = vld [vmem:[#allocation2 + $0xb80] sm:$0xff]  ;;  %v209_v59 = vld [vmem:[%s5021_s0 + $0x350] sm:$0xff] }
  0xaf   :  { %785 = vmatmul.mubr.f32.gmra.mxu0 %v152_v60  ;;  %1028 = vmatprep.subr.mxu0 %v476_v61  ;;  %v176_v21 = vld [vmem:[%s5021_s0 + $0x248] sm:$0xff]  ;;  %v175_v24 = vld [vmem:[%s5021_s0 + $0x240] sm:$0xff] }
  0xb0   :  { %946 = vmatmul.mubr.f32.gmra.mxu1 %v154_v62  ;;  %1029 = vmatpush1.msra.mxu0 %v475_v63  ;;  %v580_v23 = vld [vmem:[#allocation2 + $0xb68] sm:$0xff]  ;;  %v579_v25 = vld [vmem:[#allocation2 + $0xb60] sm:$0xff] }
  0xb1   :  { %1030 = vmatprep.subr.mxu0 %v472_v0  ;;  %790 = vmatprep.mubr.f32.mxu0 %v160_v1  ;;  %v576_v26 = vld [vmem:[#allocation2 + $0xb48] sm:$0xff]  ;;  %v575_v28 = vld [vmem:[#allocation2 + $0xb40] sm:$0xff]  ;;  %v210_v0 = vld [vmem:[%s5021_s0 + $0x358] sm:$0xff] }
  0xb2   :  { %1031 = vmatpush1.msra.mxu0 %v471_v2  ;;  %951 = vmatprep.mubr.f32.mxu1 %v162_v3  ;;  %v183_v29 = vld [vmem:[%s5021_s0 + $0x280] sm:$0xff]  ;;  %v180_v30 = vld [vmem:[%s5021_s0 + $0x268] sm:$0xff] }
  0xb3   :  { %791 = vmatmul.mubr.f32.gmra.mxu0 %v159_v4  ;;  %1032 = vmatprep.subr.mxu0 %v596_v5  ;;  %v572_v31 = vld [vmem:[#allocation2 + $0xb28] sm:$0xff]  ;;  %v571_v33 = vld [vmem:[#allocation2 + $0xb20] sm:$0xff] }
  0xb4   :  { %952 = vmatmul.mubr.f32.gmra.mxu1 %v161_v6  ;;  %1033 = vmatpush2.msra.mxu0 %v595_v7  ;;  %v568_v34 = vld [vmem:[#allocation2 + $0xb08] sm:$0xff]  ;;  %v567_v36 = vld [vmem:[#allocation2 + $0xb00] sm:$0xff]  ;;  %v278_v6 = vld [vmem:[#allocation2 + $0x1f8] sm:$0xff] }
  0xb5   :  { %1034 = vmatprep.subr.mxu0 %v592_v8  ;;  %1191 = vmatprep.subr.mxu1 %v600_v9  ;;  %v188_v35 = vld [vmem:[%s5021_s0 + $0x2a8] sm:$0xff]  ;;  %v187_v38 = vld [vmem:[%s5021_s0 + $0x2a0] sm:$0xff]  ;;  %v109_v7 = vld [vmem:[%s5021_s0 + $0x30] sm:$0xff]  ;;  %v5031_v9 = vmov 0.0  }
  0xb6   :  { %796 = vmatprep.mubr.f32.mxu0 %v167_v10  ;;  %1035 = vmatpush2.msra.mxu0 %v591_v11  ;;  %v564_v39 = vld [vmem:[#allocation2 + $0xae8] sm:$0xff]  ;;  %v563_v41 = vld [vmem:[#allocation2 + $0xae0] sm:$0xff]  ;;  %v277_v8 = vld [vmem:[#allocation2 + $0x1f0] sm:$0xff] }
  0xb7   :  { %1192 = vmatpush1.msra.mxu1 %v599_v12  ;;  %797 = vmatmul.mubr.f32.gmra.mxu0 %v166_v13  ;;  %v560_v42 = vld [vmem:[#allocation2 + $0xac8] sm:$0xff]  ;;  %v195_v43 = vld [vmem:[%s5021_s0 + $0x2e0] sm:$0xff]  ;;  %v406_v10 = vld [vmem:[#allocation2 + $0x5f8] sm:$0xff] }
  0xb8   :  { %957 = vmatprep.mubr.f32.mxu1 %v169_v14  ;;  %1036 = vmatprep.subr.mxu0 %v588_v15  ;;  %v559_v44 = vld [vmem:[#allocation2 + $0xac0] sm:$0xff]  ;;  %v556_v47 = vld [vmem:[#allocation2 + $0xaa8] sm:$0xff]  ;;  %v274_v11 = vld [vmem:[#allocation2 + $0x1d8] sm:$0xff] }
  0xb9   :  { %958 = vmatmul.mubr.f32.gmra.mxu1 %v168_v16  ;;  %1037 = vmatpush2.msra.mxu0 %v587_v17  ;;  %v196_v48 = vld [vmem:[%s5021_s0 + $0x2e8] sm:$0xff]  ;;  %v555_v49 = vld [vmem:[#allocation2 + $0xaa0] sm:$0xff]  ;;  %v405_v12 = vld [vmem:[#allocation2 + $0x5f0] sm:$0xff] }
  0xba   :  { %1038 = vmatprep.subr.mxu0 %v584_v18  ;;  %802 = vmatprep.mubr.f32.mxu0 %v174_v19  ;;  %v552_v50 = vld [vmem:[#allocation2 + $0xa88] sm:$0xff]  ;;  %v551_v52 = vld [vmem:[#allocation2 + $0xa80] sm:$0xff]  ;;  %v273_v14 = vld [vmem:[#allocation2 + $0x1d0] sm:$0xff] }
  0xbb   :  { %1039 = vmatpush2.msra.mxu0 %v583_v20  ;;  %963 = vmatprep.mubr.f32.mxu1 %v176_v21  ;;  %v204_v53 = vld [vmem:[%s5021_s0 + $0x328] sm:$0xff]  ;;  %v203_v56 = vld [vmem:[%s5021_s0 + $0x320] sm:$0xff]  ;;  %v402_v15 = vld [vmem:[#allocation2 + $0x5d8] sm:$0xff] }
  0xbc   :  { %803 = vmatmul.mubr.f32.gmra.mxu0 %v173_v22  ;;  %1040 = vmatprep.subr.mxu0 %v580_v23  ;;  %v548_v55 = vld [vmem:[#allocation2 + $0xa68] sm:$0xff]  ;;  %v547_v57 = vld [vmem:[#allocation2 + $0xa60] sm:$0xff]  ;;  %v114_v16 = vld [vmem:[%s5021_s0 + $0x58] sm:$0xff] }
  0xbd   :  { %964 = vmatmul.mubr.f32.gmra.mxu1 %v175_v24  ;;  %1041 = vmatpush2.msra.mxu0 %v579_v25  ;;  %v544_v58 = vld [vmem:[#allocation2 + $0xa48] sm:$0xff]  ;;  %v543_v60 = vld [vmem:[#allocation2 + $0xa40] sm:$0xff]  ;;  %v270_v17 = vld [vmem:[#allocation2 + $0x1b8] sm:$0xff] }
  0xbe   :  { %1042 = vmatprep.subr.mxu0 %v576_v26  ;;  %808 = vmatprep.mubr.f32.mxu0 %v181_v27  ;;  %v211_v61 = vld [vmem:[%s5021_s0 + $0x360] sm:$0xff]  ;;  %v208_v62 = vld [vmem:[%s5021_s0 + $0x348] sm:$0xff]  ;;  %v401_v18 = vld [vmem:[#allocation2 + $0x5d0] sm:$0xff] }
  0xbf   :  { %1043 = vmatpush2.msra.mxu0 %v575_v28  ;;  %969 = vmatprep.mubr.f32.mxu1 %v183_v29  ;;  %v540_v63 = vld [vmem:[#allocation2 + $0xa28] sm:$0xff]  ;;  %v539_v1 = vld [vmem:[#allocation2 + $0xa20] sm:$0xff]  ;;  %v269_v20 = vld [vmem:[#allocation2 + $0x1b0] sm:$0xff] }
  0xc0   :  { %809 = vmatmul.mubr.f32.gmra.mxu0 %v180_v30  ;;  %1044 = vmatprep.subr.mxu0 %v572_v31  ;;  %v536_v2 = vld [vmem:[#allocation2 + $0xa08] sm:$0xff]  ;;  %v535_v4 = vld [vmem:[#allocation2 + $0xa00] sm:$0xff]  ;;  %v398_v21 = vld [vmem:[#allocation2 + $0x5b8] sm:$0xff] }
  0xc1   :  { %970 = vmatmul.mubr.f32.gmra.mxu1 %v182_v32  ;;  %1045 = vmatpush2.msra.mxu0 %v571_v33  ;;  %v108_v3 = vld [vmem:[%s5021_s0 + $0x28] sm:$0xff]  ;;  %v107_v5 = vld [vmem:[%s5021_s0 + $0x20] sm:$0xff]  ;;  %v266_v22 = vld [vmem:[#allocation2 + $0x198] sm:$0xff] }
  0xc2   :  { %1046 = vmatprep.subr.mxu0 %v568_v34  ;;  %814 = vmatprep.mubr.f32.mxu0 %v188_v35  ;;  %v115_v13 = vld [vmem:[%s5021_s0 + $0x60] sm:$0xff]  ;;  %v116_v19 = vld [vmem:[%s5021_s0 + $0x68] sm:$0xff]  ;;  %v397_v23 = vld [vmem:[#allocation2 + $0x5b0] sm:$0xff] }
  0xc3   :  { %1047 = vmatpush2.msra.mxu0 %v567_v36  ;;  %975 = vmatprep.mubr.f32.mxu1 %v190_v37  ;;  %v122_v24 = vld [vmem:[%s5021_s0 + $0x98] sm:$0xff]  ;;  %v265_v25 = vld [vmem:[#allocation2 + $0x190] sm:$0xff]  ;;  %v123_v30 = vld [vmem:[%s5021_s0 + $0xa0] sm:$0xff] }
  0xc4   :  { %815 = vmatmul.mubr.f32.gmra.mxu0 %v187_v38  ;;  %1048 = vmatprep.subr.mxu0 %v564_v39  ;;  %v394_v26 = vld [vmem:[#allocation2 + $0x598] sm:$0xff]  ;;  %v121_v27 = vld [vmem:[%s5021_s0 + $0x90] sm:$0xff]  ;;  %v128_v38 = vld [vmem:[%s5021_s0 + $0xc8] sm:$0xff] }
  0xc5   :  { %976 = vmatmul.mubr.f32.gmra.mxu1 %v189_v40  ;;  %1049 = vmatpush2.msra.mxu0 %v563_v41  ;;  %v262_v28 = vld [vmem:[#allocation2 + $0x178] sm:$0xff]  ;;  %v393_v29 = vld [vmem:[#allocation2 + $0x590] sm:$0xff] }
  0xc6   :  { %1050 = vmatprep.subr.mxu0 %v560_v42  ;;  %820 = vmatprep.mubr.f32.mxu0 %v195_v43  ;;  %v261_v31 = vld [vmem:[#allocation2 + $0x170] sm:$0xff]  ;;  %v390_v32 = vld [vmem:[#allocation2 + $0x578] sm:$0xff] }
  0xc7   :  { %1051 = vmatpush2.msra.mxu0 %v559_v44  ;;  %981 = vmatprep.mubr.f32.mxu1 %v197_v45  ;;  %v258_v33 = vld [vmem:[#allocation2 + $0x158] sm:$0xff]  ;;  %v389_v34 = vld [vmem:[#allocation2 + $0x570] sm:$0xff] }
  0xc8   :  { %821 = vmatmul.mubr.f32.gmra.mxu0 %v194_v46  ;;  %1052 = vmatprep.subr.mxu0 %v556_v47  ;;  %v129_v35 = vld [vmem:[%s5021_s0 + $0xd0] sm:$0xff]  ;;  %v386_v37 = vld [vmem:[#allocation2 + $0x558] sm:$0xff]  ;;  %v136_v46 = vld [vmem:[%s5021_s0 + $0x108] sm:$0xff] }
  0xc9   :  { %982 = vmatmul.mubr.f32.gmra.mxu1 %v196_v48  ;;  %1053 = vmatpush2.msra.mxu0 %v555_v49  ;;  %v257_v36 = vld [vmem:[#allocation2 + $0x150] sm:$0xff]  ;;  %v254_v39 = vld [vmem:[#allocation2 + $0x138] sm:$0xff]  ;;  %v135_v49 = vld [vmem:[%s5021_s0 + $0x100] sm:$0xff] }
  0xca   :  { %1054 = vmatprep.subr.mxu0 %v552_v50  ;;  %826 = vmatprep.mubr.f32.mxu0 %v202_v51  ;;  %v385_v40 = vld [vmem:[#allocation2 + $0x550] sm:$0xff]  ;;  %v130_v41 = vld [vmem:[%s5021_s0 + $0xd8] sm:$0xff] }
  0xcb   :  { %1055 = vmatpush2.msra.mxu0 %v551_v52  ;;  %987 = vmatprep.mubr.f32.mxu1 %v204_v53  ;;  %v253_v42 = vld [vmem:[#allocation2 + $0x130] sm:$0xff]  ;;  %v382_v43 = vld [vmem:[#allocation2 + $0x538] sm:$0xff] }
  0xcc   :  { %827 = vmatmul.mubr.f32.gmra.mxu0 %v201_v54  ;;  %1056 = vmatprep.subr.mxu0 %v548_v55  ;;  %v250_v44 = vld [vmem:[#allocation2 + $0x118] sm:$0xff]  ;;  %v381_v45 = vld [vmem:[#allocation2 + $0x530] sm:$0xff] }
  0xcd   :  { %988 = vmatmul.mubr.f32.gmra.mxu1 %v203_v56  ;;  %1057 = vmatpush2.msra.mxu0 %v547_v57  ;;  %v249_v47 = vld [vmem:[#allocation2 + $0x110] sm:$0xff]  ;;  %v378_v48 = vld [vmem:[#allocation2 + $0x518] sm:$0xff]  ;;  %v143_v57 = vld [vmem:[%s5021_s0 + $0x140] sm:$0xff] }
  0xce   :  { %1058 = vmatprep.subr.mxu0 %v544_v58  ;;  %832 = vmatprep.mubr.f32.mxu0 %v209_v59  ;;  %v246_v50 = vld [vmem:[#allocation2 + $0xf8] sm:$0xff]  ;;  %v377_v51 = vld [vmem:[#allocation2 + $0x510] sm:$0xff] }
  0xcf   :  { %1059 = vmatpush2.msra.mxu0 %v543_v60  ;;  %993 = vmatprep.mubr.f32.mxu1 %v211_v61  ;;  %v137_v52 = vld [vmem:[%s5021_s0 + $0x110] sm:$0xff]  ;;  %v374_v54 = vld [vmem:[#allocation2 + $0x4f8] sm:$0xff] }
  0xd0   :  { %833 = vmatmul.mubr.f32.gmra.mxu0 %v208_v62  ;;  %1060 = vmatprep.subr.mxu0 %v540_v63  ;;  %v245_v53 = vld [vmem:[#allocation2 + $0xf0] sm:$0xff]  ;;  %v242_v55 = vld [vmem:[#allocation2 + $0xd8] sm:$0xff]  ;;  %v144_v63 = vld [vmem:[%s5021_s0 + $0x148] sm:$0xff] }
  0xd1   :  { %994 = vmatmul.mubr.f32.gmra.mxu1 %v210_v0  ;;  %1061 = vmatpush2.msra.mxu0 %v539_v1  ;;  %v373_v56 = vld [vmem:[#allocation2 + $0x4f0] sm:$0xff]  ;;  %v370_v59 = vld [vmem:[#allocation2 + $0x4d8] sm:$0xff] }
  0xd2   :  { %1062 = vmatprep.subr.mxu0 %v536_v2  ;;  %1064 = vmatprep.mubr.f32.mxu0 %v108_v3  ;;  %v241_v58 = vld [vmem:[#allocation2 + $0xd0] sm:$0xff]  ;;  %v142_v60 = vld [vmem:[%s5021_s0 + $0x138] sm:$0xff] }
  0xd3   :  { %1063 = vmatpush2.msra.mxu0 %v535_v4  ;;  %1225 = vmatprep.mubr.f32.mxu1 %v5031_v9  ;;  %v238_v61 = vld [vmem:[#allocation2 + $0xb8] sm:$0xff]  ;;  %v369_v62 = vld [vmem:[#allocation2 + $0x4d0] sm:$0xff] }
  0xd4   :  { %1065 = vmatmul.mubr.f32.vlgmr.msra.gmra.mxu0 %v107_v5  ;;  %1322 = vmatprep.subr.mxu0 %v278_v6  ;;  %v237_v0 = vld [vmem:[#allocation2 + $0xb0] sm:$0xff]  ;;  %v366_v1 = vld [vmem:[#allocation2 + $0x4b8] sm:$0xff] }
  0xd5   :  { %3032 = vmatmul.mubr.msk.f32.vlgmr.msra.gmra.mxu1 %vm629_vm0, %v109_v7  ;;  %1323 = vmatpush1.msra.mxu0 %v277_v8  ;;  %v234_v2 = vld [vmem:[#allocation2 + $0x98] sm:$0xff]  ;;  %v365_v3 = vld [vmem:[#allocation2 + $0x4b0] sm:$0xff] }
  0xd6   :  { %1483 = vmatprep.subr.mxu1 %v406_v10  ;;  %1324 = vmatprep.subr.mxu0 %v274_v11  ;;  %v150_v4 = vld [vmem:[%s5021_s0 + $0x178] sm:$0xff]  ;;  %v233_v5 = vld [vmem:[#allocation2 + $0x90] sm:$0xff]  ;;  %v151_v11 = vld [vmem:[%s5021_s0 + $0x180] sm:$0xff] }
  0xd7   :  { %1484 = vmatpush1.msra.mxu1 %v405_v12  ;;  %1070 = vmatprep.mubr.f32.mxu0 %v115_v13  ;;  %v362_v6 = vld [vmem:[#allocation2 + $0x498] sm:$0xff]  ;;  %v149_v7 = vld [vmem:[%s5021_s0 + $0x170] sm:$0xff] }
  0xd8   :  { %1325 = vmatpush1.msra.mxu0 %v273_v14  ;;  %1485 = vmatprep.subr.mxu1 %v402_v15  ;;  %v230_v8 = vld [vmem:[#allocation2 + $0x78] sm:$0xff]  ;;  %v361_v10 = vld [vmem:[#allocation2 + $0x490] sm:$0xff] }
  0xd9   :  { %1071 = vmatmul.mubr.f32.gmra.mxu0 %v114_v16  ;;  %1231 = vmatprep.mubr.f32.mxu1 %v5031_v9  ;;  %v229_v12 = vld [vmem:[#allocation2 + $0x70] sm:$0xff]  ;;  %v358_v13 = vld [vmem:[#allocation2 + $0x478] sm:$0xff] }
  0xda   :  { %1326 = vmatprep.subr.mxu0 %v270_v17  ;;  %1486 = vmatpush1.msra.mxu1 %v401_v18  ;;  %v226_v14 = vld [vmem:[#allocation2 + $0x58] sm:$0xff]  ;;  %v357_v15 = vld [vmem:[#allocation2 + $0x470] sm:$0xff] }
  0xdb   :  { %3033 = vmatmul.mubr.msk.f32.gmra.mxu1 %vm629_vm0, %v116_v19  ;;  %1327 = vmatpush1.msra.mxu0 %v269_v20  ;;  %v157_v16 = vld [vmem:[%s5021_s0 + $0x1b0] sm:$0xff]  ;;  %v354_v18 = vld [vmem:[#allocation2 + $0x458] sm:$0xff]  ;;  %v156_v19 = vld [vmem:[%s5021_s0 + $0x1a8] sm:$0xff] }
  0xdc   :  { %1487 = vmatprep.subr.mxu1 %v398_v21  ;;  %1328 = vmatprep.subr.mxu0 %v266_v22  ;;  %v225_v17 = vld [vmem:[#allocation2 + $0x50] sm:$0xff]  ;;  %v222_v20 = vld [vmem:[#allocation2 + $0x38] sm:$0xff] }
  0xdd   :  { %1488 = vmatpush1.msra.mxu1 %v397_v23  ;;  %1076 = vmatprep.mubr.f32.mxu0 %v122_v24  ;;  %v353_v21 = vld [vmem:[#allocation2 + $0x450] sm:$0xff]  ;;  %v158_v22 = vld [vmem:[%s5021_s0 + $0x1b8] sm:$0xff] }
  0xde   :  { %1329 = vmatpush1.msra.mxu0 %v265_v25  ;;  %1489 = vmatprep.subr.mxu1 %v394_v26  ;;  %v221_v23 = vld [vmem:[#allocation2 + $0x30] sm:$0xff]  ;;  %v350_v24 = vld [vmem:[#allocation2 + $0x438] sm:$0xff] }
  0xdf   :  { %1077 = vmatmul.mubr.f32.gmra.mxu0 %v121_v27  ;;  %1237 = vmatprep.mubr.f32.mxu1 %v5031_v9  ;;  %v218_v25 = vld [vmem:[#allocation2 + $0x18] sm:$0xff]  ;;  %v349_v26 = vld [vmem:[#allocation2 + $0x430] sm:$0xff]  ;;  %v164_v27 = vld [vmem:[%s5021_s0 + $0x1e8] sm:$0xff] }
  0xe0   :  { %1330 = vmatprep.subr.mxu0 %v262_v28  ;;  %1490 = vmatpush1.msra.mxu1 %v393_v29  ;;  %v217_v28 = vld [vmem:[#allocation2 + $0x10] sm:$0xff]  ;;  %v346_v29 = vld [vmem:[#allocation2 + $0x418] sm:$0xff] }
  0xe1   :  { %3034 = vmatmul.mubr.msk.f32.gmra.mxu1 %vm629_vm0, %v123_v30  ;;  %1331 = vmatpush1.msra.mxu0 %v261_v31  ;;  %v163_v30 = vld [vmem:[%s5021_s0 + $0x1e0] sm:$0xff]  ;;  %v342_v31 = vld [vmem:[#allocation2 + $0x3f8] sm:$0xff] }
  0xe2   :  { %1491 = vmatprep.subr.mxu1 %v390_v32  ;;  %1332 = vmatprep.subr.mxu0 %v258_v33  ;;  %v345_v32 = vld [vmem:[#allocation2 + $0x410] sm:$0xff] }
  0xe3   :  { %1492 = vmatpush1.msra.mxu1 %v389_v34  ;;  %1082 = vmatprep.mubr.f32.mxu0 %v129_v35  ;;  %v165_v33 = vld [vmem:[%s5021_s0 + $0x1f0] sm:$0xff]  ;;  %v470_v35 = vld [vmem:[#allocation2 + $0x7f8] sm:$0xff] }
  0xe4   :  { %1333 = vmatpush1.msra.mxu0 %v257_v36  ;;  %1493 = vmatprep.subr.mxu1 %v386_v37  ;;  %v341_v34 = vld [vmem:[#allocation2 + $0x3f0] sm:$0xff]  ;;  %v338_v36 = vld [vmem:[#allocation2 + $0x3d8] sm:$0xff] }
  0xe5   :  { %1083 = vmatmul.mubr.f32.gmra.mxu0 %v128_v38  ;;  %1243 = vmatprep.mubr.f32.mxu1 %v5031_v9  ;;  %v469_v37 = vld [vmem:[#allocation2 + $0x7f0] sm:$0xff]  ;;  %v171_v38 = vld [vmem:[%s5021_s0 + $0x220] sm:$0xff] }
  0xe6   :  { %1334 = vmatprep.subr.mxu0 %v254_v39  ;;  %1494 = vmatpush1.msra.mxu1 %v385_v40  ;;  %v337_v39 = vld [vmem:[#allocation2 + $0x3d0] sm:$0xff]  ;;  %v466_v40 = vld [vmem:[#allocation2 + $0x7d8] sm:$0xff] }
  0xe7   :  { %3035 = vmatmul.mubr.msk.f32.gmra.mxu1 %vm629_vm0, %v130_v41  ;;  %1335 = vmatpush1.msra.mxu0 %v253_v42  ;;  %v170_v41 = vld [vmem:[%s5021_s0 + $0x218] sm:$0xff] }
  0xe8   :  { %1495 = vmatprep.subr.mxu1 %v382_v43  ;;  %1336 = vmatprep.subr.mxu0 %v250_v44  ;;  %v334_v42 = vld [vmem:[#allocation2 + $0x3b8] sm:$0xff]  ;;  %v465_v43 = vld [vmem:[#allocation2 + $0x7d0] sm:$0xff]  ;;  %v172_v44 = vld [vmem:[%s5021_s0 + $0x228] sm:$0xff] }
  0xe9   :  { %1496 = vmatpush1.msra.mxu1 %v381_v45  ;;  %1088 = vmatprep.mubr.f32.mxu0 %v136_v46  ;;  %v333_v45 = vld [vmem:[#allocation2 + $0x3b0] sm:$0xff]  ;;  %v462_v46 = vld [vmem:[#allocation2 + $0x7b8] sm:$0xff] }
  0xea   :  { %1337 = vmatpush1.msra.mxu0 %v249_v47  ;;  %1497 = vmatprep.subr.mxu1 %v378_v48  ;;  %v330_v47 = vld [vmem:[#allocation2 + $0x398] sm:$0xff]  ;;  %v461_v48 = vld [vmem:[#allocation2 + $0x7b0] sm:$0xff] }
  0xeb   :  { %1089 = vmatmul.mubr.f32.gmra.mxu0 %v135_v49  ;;  %1249 = vmatprep.mubr.f32.mxu1 %v5031_v9  ;;  %v178_v49 = vld [vmem:[%s5021_s0 + $0x258] sm:$0xff] }
  0xec   :  { %1338 = vmatprep.subr.mxu0 %v246_v50  ;;  %1498 = vmatpush1.msra.mxu1 %v377_v51  ;;  %v329_v50 = vld [vmem:[#allocation2 + $0x390] sm:$0xff]  ;;  %v458_v51 = vld [vmem:[#allocation2 + $0x798] sm:$0xff] }
  0xed   :  { %3036 = vmatmul.mubr.msk.f32.gmra.mxu1 %vm629_vm0, %v137_v52  ;;  %1339 = vmatpush1.msra.mxu0 %v245_v53  ;;  %v177_v52 = vld [vmem:[%s5021_s0 + $0x250] sm:$0xff]  ;;  %v326_v53 = vld [vmem:[#allocation2 + $0x378] sm:$0xff] }
  0xee   :  { %1499 = vmatprep.subr.mxu1 %v374_v54  ;;  %1340 = vmatprep.subr.mxu0 %v242_v55  ;;  %v457_v54 = vld [vmem:[#allocation2 + $0x790] sm:$0xff]  ;;  %v179_v55 = vld [vmem:[%s5021_s0 + $0x260] sm:$0xff] }
  0xef   :  { %1500 = vmatpush1.msra.mxu1 %v373_v56  ;;  %1094 = vmatprep.mubr.f32.mxu0 %v143_v57  ;;  %v325_v56 = vld [vmem:[#allocation2 + $0x370] sm:$0xff]  ;;  %v454_v57 = vld [vmem:[#allocation2 + $0x778] sm:$0xff] }
  0xf0   :  { %1341 = vmatpush1.msra.mxu0 %v241_v58  ;;  %1501 = vmatprep.subr.mxu1 %v370_v59  ;;  %v322_v58 = vld [vmem:[#allocation2 + $0x358] sm:$0xff]  ;;  %v453_v59 = vld [vmem:[#allocation2 + $0x770] sm:$0xff] }
  0xf1   :  { %1095 = vmatmul.mubr.f32.gmra.mxu0 %v142_v60  ;;  %1255 = vmatprep.mubr.f32.mxu1 %v5031_v9  ;;  %v185_v60 = vld [vmem:[%s5021_s0 + $0x290] sm:$0xff] }
  0xf2   :  { %1342 = vmatprep.subr.mxu0 %v238_v61  ;;  %1502 = vmatpush1.msra.mxu1 %v369_v62  ;;  %v321_v61 = vld [vmem:[#allocation2 + $0x350] sm:$0xff]  ;;  %v450_v62 = vld [vmem:[#allocation2 + $0x758] sm:$0xff] }
  0xf3   :  { %3037 = vmatmul.mubr.msk.f32.gmra.mxu1 %vm629_vm0, %v144_v63  ;;  %1343 = vmatpush1.msra.mxu0 %v237_v0  ;;  %v184_v63 = vld [vmem:[%s5021_s0 + $0x288] sm:$0xff]  ;;  %v318_v0 = vld [vmem:[#allocation2 + $0x338] sm:$0xff] }
  0xf4   :  { %1503 = vmatprep.subr.mxu1 %v366_v1  ;;  %1344 = vmatprep.subr.mxu0 %v234_v2  ;;  %v449_v1 = vld [vmem:[#allocation2 + $0x750] sm:$0xff]  ;;  %v186_v2 = vld [vmem:[%s5021_s0 + $0x298] sm:$0xff] }
  0xf5   :  { %1504 = vmatpush1.msra.mxu1 %v365_v3  ;;  %1100 = vmatprep.mubr.f32.mxu0 %v150_v4  ;;  %v317_v3 = vld [vmem:[#allocation2 + $0x330] sm:$0xff]  ;;  %v446_v4 = vld [vmem:[#allocation2 + $0x738] sm:$0xff] }
  0xf6   :  { %1345 = vmatpush1.msra.mxu0 %v233_v5  ;;  %1505 = vmatprep.subr.mxu1 %v362_v6  ;;  %v314_v5 = vld [vmem:[#allocation2 + $0x318] sm:$0xff]  ;;  %v445_v6 = vld [vmem:[#allocation2 + $0x730] sm:$0xff] }
  0xf7   :  { %1101 = vmatmul.mubr.f32.gmra.mxu0 %v149_v7  ;;  %1261 = vmatprep.mubr.f32.mxu1 %v5031_v9  ;;  %v192_v7 = vld [vmem:[%s5021_s0 + $0x2c8] sm:$0xff] }
  0xf8   :  { %1346 = vmatprep.subr.mxu0 %v230_v8  ;;  %1506 = vmatpush1.msra.mxu1 %v361_v10  ;;  %v313_v8 = vld [vmem:[#allocation2 + $0x310] sm:$0xff]  ;;  %v442_v10 = vld [vmem:[#allocation2 + $0x718] sm:$0xff] }
  0xf9   :  { %3038 = vmatmul.mubr.msk.f32.gmra.mxu1 %vm629_vm0, %v151_v11  ;;  %1347 = vmatpush1.msra.mxu0 %v229_v12  ;;  %v191_v11 = vld [vmem:[%s5021_s0 + $0x2c0] sm:$0xff]  ;;  %v310_v12 = vld [vmem:[#allocation2 + $0x2f8] sm:$0xff] }
  0xfa   :  { %1507 = vmatprep.subr.mxu1 %v358_v13  ;;  %1348 = vmatprep.subr.mxu0 %v226_v14  ;;  %v441_v13 = vld [vmem:[#allocation2 + $0x710] sm:$0xff] }
  0xfb   :  { %1508 = vmatpush1.msra.mxu1 %v357_v15  ;;  %1106 = vmatprep.mubr.f32.mxu0 %v157_v16  ;;  %v193_v14 = vld [vmem:[%s5021_s0 + $0x2d0] sm:$0xff]  ;;  %v438_v16 = vld [vmem:[#allocation2 + $0x6f8] sm:$0xff] }
  0xfc   :  { %1349 = vmatpush1.msra.mxu0 %v225_v17  ;;  %1509 = vmatprep.subr.mxu1 %v354_v18  ;;  %v309_v15 = vld [vmem:[#allocation2 + $0x2f0] sm:$0xff]  ;;  %v306_v17 = vld [vmem:[#allocation2 + $0x2d8] sm:$0xff] }
  0xfd   :  { %1107 = vmatmul.mubr.f32.gmra.mxu0 %v156_v19  ;;  %1267 = vmatprep.mubr.f32.mxu1 %v5031_v9  ;;  %v437_v18 = vld [vmem:[#allocation2 + $0x6f0] sm:$0xff]  ;;  %v199_v19 = vld [vmem:[%s5021_s0 + $0x300] sm:$0xff] }
  0xfe   :  { %1350 = vmatprep.subr.mxu0 %v222_v20  ;;  %1510 = vmatpush1.msra.mxu1 %v353_v21  ;;  %v305_v20 = vld [vmem:[#allocation2 + $0x2d0] sm:$0xff]  ;;  %v434_v21 = vld [vmem:[#allocation2 + $0x6d8] sm:$0xff] }
  0xff   :  { %3039 = vmatmul.mubr.msk.f32.gmra.mxu1 %vm629_vm0, %v158_v22  ;;  %1351 = vmatpush1.msra.mxu0 %v221_v23  ;;  %v198_v22 = vld [vmem:[%s5021_s0 + $0x2f8] sm:$0xff] }
 0x100   :  { %1511 = vmatprep.subr.mxu1 %v350_v24  ;;  %1352 = vmatprep.subr.mxu0 %v218_v25  ;;  %v302_v23 = vld [vmem:[#allocation2 + $0x2b8] sm:$0xff]  ;;  %v433_v24 = vld [vmem:[#allocation2 + $0x6d0] sm:$0xff]  ;;  %v200_v25 = vld [vmem:[%s5021_s0 + $0x308] sm:$0xff] }
 0x101   :  { %1512 = vmatpush1.msra.mxu1 %v349_v26  ;;  %1112 = vmatprep.mubr.f32.mxu0 %v164_v27  ;;  %v301_v26 = vld [vmem:[#allocation2 + $0x2b0] sm:$0xff]  ;;  %v430_v27 = vld [vmem:[#allocation2 + $0x6b8] sm:$0xff] }
 0x102   :  { %1353 = vmatpush1.msra.mxu0 %v217_v28  ;;  %1513 = vmatprep.subr.mxu1 %v346_v29  ;;  %v298_v28 = vld [vmem:[#allocation2 + $0x298] sm:$0xff]  ;;  %v429_v29 = vld [vmem:[#allocation2 + $0x6b0] sm:$0xff] }
 0x103   :  { %1113 = vmatmul.mubr.f32.gmra.mxu0 %v163_v30  ;;  %1273 = vmatprep.mubr.f32.mxu1 %v5031_v9  ;;  %v206_v30 = vld [vmem:[%s5021_s0 + $0x338] sm:$0xff] }
 0x104   :  { %1354 = vmatprep.subr.mxu0 %v342_v31  ;;  %1514 = vmatpush1.msra.mxu1 %v345_v32  ;;  %v297_v31 = vld [vmem:[#allocation2 + $0x290] sm:$0xff]  ;;  %v426_v32 = vld [vmem:[#allocation2 + $0x698] sm:$0xff] }
 0x105   :  { %3040 = vmatmul.mubr.msk.f32.gmra.mxu1 %vm629_vm0, %v165_v33  ;;  %1355 = vmatpush2.msra.mxu0 %v341_v34  ;;  %v205_v33 = vld [vmem:[%s5021_s0 + $0x330] sm:$0xff]  ;;  %v294_v34 = vld [vmem:[#allocation2 + $0x278] sm:$0xff] }
 0x106   :  { %1515 = vmatprep.subr.mxu1 %v470_v35  ;;  %1356 = vmatprep.subr.mxu0 %v338_v36  ;;  %v425_v35 = vld [vmem:[#allocation2 + $0x690] sm:$0xff]  ;;  %v207_v36 = vld [vmem:[%s5021_s0 + $0x340] sm:$0xff] }
 0x107   :  { %1516 = vmatpush2.msra.mxu1 %v469_v37  ;;  %1118 = vmatprep.mubr.f32.mxu0 %v171_v38  ;;  %v293_v37 = vld [vmem:[#allocation2 + $0x270] sm:$0xff]  ;;  %v422_v38 = vld [vmem:[#allocation2 + $0x678] sm:$0xff] }
 0x108   :  { %1357 = vmatpush2.msra.mxu0 %v337_v39  ;;  %1517 = vmatprep.subr.mxu1 %v466_v40  ;;  %v290_v39 = vld [vmem:[#allocation2 + $0x258] sm:$0xff]  ;;  %v421_v40 = vld [vmem:[#allocation2 + $0x670] sm:$0xff] }
 0x109   :  { %1119 = vmatmul.mubr.f32.gmra.mxu0 %v170_v41  ;;  %1279 = vmatprep.mubr.f32.mxu1 %v5031_v9  ;;  %v213_v41 = vld [vmem:[%s5021_s0 + $0x370] sm:$0xff] }
 0x10a   :  { %1358 = vmatprep.subr.mxu0 %v334_v42  ;;  %1518 = vmatpush2.msra.mxu1 %v465_v43  ;;  %v289_v42 = vld [vmem:[#allocation2 + $0x250] sm:$0xff]  ;;  %v418_v43 = vld [vmem:[#allocation2 + $0x658] sm:$0xff] }
 0x10b   :  { %3041 = vmatmul.mubr.msk.f32.gmra.mxu1 %vm629_vm0, %v172_v44  ;;  %1359 = vmatpush2.msra.mxu0 %v333_v45  ;;  %v212_v44 = vld [vmem:[%s5021_s0 + $0x368] sm:$0xff]  ;;  %v286_v45 = vld [vmem:[#allocation2 + $0x238] sm:$0xff] }
 0x10c   :  { %1519 = vmatprep.subr.mxu1 %v462_v46  ;;  %1360 = vmatprep.subr.mxu0 %v330_v47  ;;  %v417_v46 = vld [vmem:[#allocation2 + $0x650] sm:$0xff]  ;;  %v214_v47 = vld [vmem:[%s5021_s0 + $0x378] sm:$0xff] }
 0x10d   :  { %1520 = vmatpush2.msra.mxu1 %v461_v48  ;;  %1124 = vmatprep.mubr.f32.mxu0 %v178_v49  ;;  %v285_v48 = vld [vmem:[#allocation2 + $0x230] sm:$0xff]  ;;  %v414_v49 = vld [vmem:[#allocation2 + $0x638] sm:$0xff] }
 0x10e   :  { %1361 = vmatpush2.msra.mxu0 %v329_v50  ;;  %1521 = vmatprep.subr.mxu1 %v458_v51  ;;  %v282_v50 = vld [vmem:[#allocation2 + $0x218] sm:$0xff]  ;;  %v413_v51 = vld [vmem:[#allocation2 + $0x630] sm:$0xff] }
 0x10f   :  { %1125 = vmatmul.mubr.f32.gmra.mxu0 %v177_v52  ;;  %1285 = vmatprep.mubr.f32.mxu1 %v5031_v9  ;;  %v281_v52 = vld [vmem:[#allocation2 + $0x210] sm:$0xff] }
 0x110   :  { %1362 = vmatprep.subr.mxu0 %v326_v53  ;;  %1522 = vmatpush2.msra.mxu1 %v457_v54  ;;  %v410_v53 = vld [vmem:[#allocation2 + $0x618] sm:$0xff]  ;;  %v409_v54 = vld [vmem:[#allocation2 + $0x610] sm:$0xff] }
 0x111   :  { %3042 = vmatmul.mubr.msk.f32.gmra.mxu1 %vm629_vm0, %v179_v55  ;;  %1363 = vmatpush2.msra.mxu0 %v325_v56  ;;  %v534_v55 = vld [vmem:[#allocation2 + $0x9f8] sm:$0xff]  ;;  %v3271_v56 = vld [vmem:[%s5021_s0 + $0x8] sm:$0xff] }
 0x112   :  { %1523 = vmatprep.subr.mxu1 %v454_v57  ;;  %1364 = vmatprep.subr.mxu0 %v322_v58  ;;  %v533_v57 = vld [vmem:[#allocation2 + $0x9f0] sm:$0xff]  ;;  %v3272_v58 = vld [vmem:[%s5021_s0] sm:$0xff] }
 0x113   :  { %1524 = vmatpush2.msra.mxu1 %v453_v59  ;;  %1130 = vmatprep.mubr.f32.mxu0 %v185_v60  ;;  %v530_v59 = vld [vmem:[#allocation2 + $0x9d8] sm:$0xff] }
 0x114   :  { %1365 = vmatpush2.msra.mxu0 %v321_v61  ;;  %1525 = vmatprep.subr.mxu1 %v450_v62  ;;  %v606_v60 = vld [vmem:[#allocation2 + $0xc38] sm:$0xff]  ;;  %v529_v62 = vld [vmem:[#allocation2 + $0x9d0] sm:$0xff] }
 0x115   :  { %1131 = vmatmul.mubr.f32.gmra.mxu0 %v184_v63  ;;  %1291 = vmatprep.mubr.f32.mxu1 %v5031_v9  ;;  %v3273_v61 = vld [vmem:[%s5021_s0 + $0x18] sm:$0xff]  ;;  %v3274_v63 = vld [vmem:[%s5021_s0 + $0x10] sm:$0xff] }
 0x116   :  { %1366 = vmatprep.subr.mxu0 %v318_v0  ;;  %1526 = vmatpush2.msra.mxu1 %v449_v1  ;;  %v605_v0 = vld [vmem:[#allocation2 + $0xc30] sm:$0xff]  ;;  %v526_v1 = vld [vmem:[#allocation2 + $0x9b8] sm:$0xff] }
 0x117   :  { %3043 = vmatmul.mubr.msk.f32.gmra.mxu1 %vm629_vm0, %v186_v2  ;;  %1367 = vmatpush2.msra.mxu0 %v317_v3  ;;  %v3275_v2 = vld [vmem:[%s5021_s0 + $0x40] sm:$0xff]  ;;  %v525_v3 = vld [vmem:[#allocation2 + $0x9b0] sm:$0xff] }
 0x118   :  { %1527 = vmatprep.subr.mxu1 %v446_v4  ;;  %1368 = vmatprep.subr.mxu0 %v314_v5  ;;  %v3276_v4 = vld [vmem:[%s5021_s0 + $0x38] sm:$0xff] }
 0x119   :  { %1528 = vmatpush2.msra.mxu1 %v445_v6  ;;  %1136 = vmatprep.mubr.f32.mxu0 %v192_v7  ;;  %v522_v5 = vld [vmem:[#allocation2 + $0x998] sm:$0xff]  ;;  %v3277_v6 = vld [vmem:[%s5021_s0 + $0x50] sm:$0xff] }
 0x11a   :  { %1369 = vmatpush2.msra.mxu0 %v313_v8  ;;  %1529 = vmatprep.subr.mxu1 %v442_v10  ;;  %v521_v7 = vld [vmem:[#allocation2 + $0x990] sm:$0xff]  ;;  %v3278_v8 = vld [vmem:[%s5021_s0 + $0x48] sm:$0xff]  ;;  %v518_v10 = vld [vmem:[#allocation2 + $0x978] sm:$0xff] }
 0x11b   :  { %1137 = vmatmul.mubr.f32.gmra.mxu0 %v191_v11  ;;  %1297 = vmatprep.mubr.f32.mxu1 %v5031_v9  ;;  %v3279_v11 = vld [vmem:[%s5021_s0 + $0x78] sm:$0xff] }
 0x11c   :  { %1370 = vmatprep.subr.mxu0 %v310_v12  ;;  %1530 = vmatpush2.msra.mxu1 %v441_v13  ;;  %v517_v12 = vld [vmem:[#allocation2 + $0x970] sm:$0xff]  ;;  %v3280_v13 = vld [vmem:[%s5021_s0 + $0x88] sm:$0xff] }
 0x11d   :  { %3044 = vmatmul.mubr.msk.f32.gmra.mxu1 %vm629_vm0, %v193_v14  ;;  %1371 = vmatpush2.msra.mxu0 %v309_v15  ;;  %v514_v14 = vld [vmem:[#allocation2 + $0x958] sm:$0xff]  ;;  %v3281_v15 = vld [vmem:[%s5021_s0 + $0x70] sm:$0xff] }
 0x11e   :  { %1531 = vmatprep.subr.mxu1 %v438_v16  ;;  %1372 = vmatprep.subr.mxu0 %v306_v17  ;;  %v513_v16 = vld [vmem:[#allocation2 + $0x950] sm:$0xff]  ;;  %v3282_v17 = vld [vmem:[%s5021_s0 + $0x80] sm:$0xff] }
 0x11f   :  { %1532 = vmatpush2.msra.mxu1 %v437_v18  ;;  %1142 = vmatprep.mubr.f32.mxu0 %v199_v19  ;;  %v510_v18 = vld [vmem:[#allocation2 + $0x938] sm:$0xff]  ;;  %v3283_v19 = vld [vmem:[%s5021_s0 + $0xb0] sm:$0xff] }
 0x120   :  { %1373 = vmatpush2.msra.mxu0 %v305_v20  ;;  %1533 = vmatprep.subr.mxu1 %v434_v21  ;;  %v509_v20 = vld [vmem:[#allocation2 + $0x930] sm:$0xff]  ;;  %v3284_v21 = vld [vmem:[%s5021_s0 + $0xc0] sm:$0xff] }
 0x121   :  { %1143 = vmatmul.mubr.f32.gmra.mxu0 %v198_v22  ;;  %1303 = vmatprep.mubr.f32.mxu1 %v5031_v9  ;;  %v506_v22 = vld [vmem:[#allocation2 + $0x918] sm:$0xff] }
 0x122   :  { %1374 = vmatprep.subr.mxu0 %v302_v23  ;;  %1534 = vmatpush2.msra.mxu1 %v433_v24  ;;  %v3285_v23 = vld [vmem:[%s5021_s0 + $0xa8] sm:$0xff]  ;;  %v505_v24 = vld [vmem:[#allocation2 + $0x910] sm:$0xff] }
 0x123   :  { %3045 = vmatmul.mubr.msk.f32.gmra.mxu1 %vm629_vm0, %v200_v25  ;;  %1375 = vmatpush2.msra.mxu0 %v301_v26  ;;  %v3286_v25 = vld [vmem:[%s5021_s0 + $0xb8] sm:$0xff] }
 0x124   :  { %1535 = vmatprep.subr.mxu1 %v430_v27  ;;  %1376 = vmatprep.subr.mxu0 %v298_v28  ;;  %v502_v26 = vld [vmem:[#allocation2 + $0x8f8] sm:$0xff]  ;;  %v609_v27 = vlaneseq  ;;  %v3287_v28 = vld [vmem:[%s5021_s0 + $0xe8] sm:$0xff] }
 0x125   :  { %1536 = vmatpush2.msra.mxu1 %v429_v29  ;;  %1148 = vmatprep.mubr.f32.mxu0 %v206_v30  ;;  %v501_v29 = vld [vmem:[#allocation2 + $0x8f0] sm:$0xff]  ;;  %v3288_v30 = vld [vmem:[%s5021_s0 + $0xf8] sm:$0xff] }
 0x126   :  { %1377 = vmatpush2.msra.mxu0 %v297_v31  ;;  %1537 = vmatprep.subr.mxu1 %v426_v32  ;;  %v498_v31 = vld [vmem:[#allocation2 + $0x8d8] sm:$0xff]  ;;  %v3289_v32 = vld [vmem:[%s5021_s0 + $0xe0] sm:$0xff] }
 0x127   :  { %1149 = vmatmul.mubr.f32.gmra.mxu0 %v205_v33  ;;  %1309 = vmatprep.mubr.f32.mxu1 %v5031_v9  ;;  %v497_v33 = vld [vmem:[#allocation2 + $0x8d0] sm:$0xff] }
 0x128   :  { %1378 = vmatprep.subr.mxu0 %v294_v34  ;;  %1538 = vmatpush2.msra.mxu1 %v425_v35  ;;  %v3290_v34 = vld [vmem:[%s5021_s0 + $0xf0] sm:$0xff]  ;;  %v494_v35 = vld [vmem:[#allocation2 + $0x8b8] sm:$0xff] }
 0x129   :  { %3046 = vmatmul.mubr.msk.f32.gmra.mxu1 %vm629_vm0, %v207_v36  ;;  %1379 = vmatpush2.msra.mxu0 %v293_v37  ;;  %v4037_v36 = vshrl.u32 %v609_v27, 7  ;;  %v3291_v37 = vld [vmem:[%s5021_s0 + $0x120] sm:$0xff]  ;;  %v3309_v27 = vld [vmem:[%s5021_s0 + $0x210] sm:$0xff] }
 0x12a   :  { %1539 = vmatprep.subr.mxu1 %v422_v38  ;;  %1380 = vmatprep.subr.mxu0 %v290_v39  ;;  %v493_v38 = vld [vmem:[#allocation2 + $0x8b0] sm:$0xff] }
 0x12b   :  { %1540 = vmatpush2.msra.mxu1 %v421_v40  ;;  %1154 = vmatprep.mubr.f32.mxu0 %v213_v41  ;;  %5036 = vst [vmem:[#allocation19_spill] sm:$0xff] %v4037_v36  ;;  %v3292_v39 = vld [vmem:[%s5021_s0 + $0x130] sm:$0xff]  ;;  %v490_v40 = vld [vmem:[#allocation2 + $0x898] sm:$0xff] }
 0x12c   :  { %1381 = vmatpush2.msra.mxu0 %v289_v42  ;;  %1541 = vmatprep.subr.mxu1 %v418_v43  ;;  %v3293_v41 = vld [vmem:[%s5021_s0 + $0x118] sm:$0xff]  ;;  %v489_v42 = vld [vmem:[#allocation2 + $0x890] sm:$0xff]  ;;  %v3294_v43 = vld [vmem:[%s5021_s0 + $0x128] sm:$0xff] }
 0x12d   :  { %1155 = vmatmul.mubr.f32.gmra.mxu0 %v212_v44  ;;  %1315 = vmatprep.mubr.f32.mxu1 %v5031_v9  ;;  %v486_v44 = vld [vmem:[#allocation2 + $0x878] sm:$0xff] }
 0x12e   :  { %1382 = vmatprep.subr.mxu0 %v286_v45  ;;  %1542 = vmatpush2.msra.mxu1 %v417_v46  ;;  %v5030_v45 = vsub.s32 0, %v4037_v36  ;;  %v3295_v46 = vld [vmem:[%s5021_s0 + $0x158] sm:$0xff] }
 0x12f   :  { %3047 = vmatmul.mubr.msk.f32.gmra.mxu1 %vm629_vm0, %v214_v47  ;;  %1383 = vmatpush2.msra.mxu0 %v285_v48  ;;  %v485_v47 = vld [vmem:[#allocation2 + $0x870] sm:$0xff]  ;;  %v4055_v48 = vld [vmem:[#allocation5] sm:$0xf] }
 0x130   :  { %1543 = vmatprep.subr.mxu1 %v414_v49  ;;  %1384 = vmatprep.subr.mxu0 %v282_v50  ;;  %v3296_v49 = vld [vmem:[%s5021_s0 + $0x168] sm:$0xff]  ;;  %v482_v50 = vld [vmem:[#allocation2 + $0x858] sm:$0xff] }
 0x131   :  { %1544 = vmatpush2.msra.mxu1 %v413_v51  ;;  %1385 = vmatpush2.msra.mxu0 %v281_v52  ;;  %v3297_v51 = vld [vmem:[%s5021_s0 + $0x150] sm:$0xff] }
 0x132   :  { %1386 = vmatprep.mubr.f32.mxu0 %v3271_v56  ;;  %1545 = vmatprep.subr.mxu1 %v410_v53  ;;  %v481_v52 = vld [vmem:[#allocation2 + $0x850] sm:$0xff]  ;;  %v3298_v53 = vld [vmem:[%s5021_s0 + $0x160] sm:$0xff] }
 0x133   :  { %1387 = vmatmul.mubr.f32.vlgmr.msra.gmra.mxu0 %v3272_v58  ;;  %1546 = vmatpush2.msra.mxu1 %v409_v54  ;;  %v478_v54 = vld [vmem:[#allocation2 + $0x838] sm:$0xff]  ;;  %v3299_v56 = vld [vmem:[%s5021_s0 + $0x190] sm:$0xff]  ;;  %v3300_v58 = vld [vmem:[%s5021_s0 + $0x1a0] sm:$0xff] }
 0x134   :  { %1547 = vmatprep.mubr.f32.mxu1 %v3273_v61  ;;  %1644 = vmatprep.subr.mxu0 %v534_v55  ;;  %v4069_v55 = vrot.slane %v4055_v48, %v5030_v45  ;;  %v473_v61 = vld [vmem:[#allocation2 + $0x810] sm:$0xff] }
 0x135   :  { %1548 = vmatmul.mubr.f32.vlgmr.msra.gmra.mxu1 %v3274_v63  ;;  %1645 = vmatpush1.msra.mxu0 %v533_v57  ;;  %v477_v57 = vld [vmem:[#allocation2 + $0x830] sm:$0xff]  ;;  %v3302_v63 = vld [vmem:[%s5021_s0 + $0x198] sm:$0xff] }
 0x136   :  { %1646 = vmatprep.subr.mxu0 %v530_v59  ;;  %1833 = vmatprep.subr.mxu1 %v606_v60  ;;  %v474_v59 = vld [vmem:[#allocation2 + $0x818] sm:$0xff]  ;;  %v3301_v60 = vld [vmem:[%s5021_s0 + $0x188] sm:$0xff] }
 0x137   :  { %1392 = vmatprep.mubr.f32.mxu0 %v3275_v2  ;;  %1647 = vmatpush1.msra.mxu0 %v529_v62  ;;  %v3303_v2 = vld [vmem:[%s5021_s0 + $0x1c8] sm:$0xff] }
 0x138   :  { %1834 = vmatpush1.msra.mxu1 %v605_v0  ;;  %1393 = vmatmul.mubr.f32.gmra.mxu0 %v3276_v4  ;;  %v598_v0 = vld [vmem:[#allocation2 + $0xbf8] sm:$0xff] }
 0x139   :  { %1553 = vmatprep.mubr.f32.mxu1 %v3277_v6  ;;  %1648 = vmatprep.subr.mxu0 %v526_v1  ;;  %v3304_v6 = vld [vmem:[%s5021_s0 + $0x1d8] sm:$0xff] }
 0x13a   :  { %1554 = vmatmul.mubr.f32.gmra.mxu1 %v3278_v8  ;;  %1649 = vmatpush1.msra.mxu0 %v525_v3  ;;  %v597_v3 = vld [vmem:[#allocation2 + $0xbf0] sm:$0xff]  ;;  %v602_v8 = vld [vmem:[#allocation2 + $0xc18] sm:$0xff] }
 0x13b   :  { %1650 = vmatprep.subr.mxu0 %v522_v5  ;;  %1398 = vmatprep.mubr.f32.mxu0 %v3279_v11  ;;  %v3305_v11 = vld [vmem:[%s5021_s0 + $0x1c0] sm:$0xff] }
 0x13c   :  { %1651 = vmatpush1.msra.mxu0 %v521_v7  ;;  %1559 = vmatprep.mubr.f32.mxu1 %v3280_v13  ;;  %v594_v7 = vld [vmem:[#allocation2 + $0xbd8] sm:$0xff] }
 0x13d   :  { %1399 = vmatmul.mubr.f32.gmra.mxu0 %v3281_v15  ;;  %1652 = vmatprep.subr.mxu0 %v518_v10  ;;  %v601_v15 = vld [vmem:[#allocation2 + $0xc10] sm:$0xff] }
 0x13e   :  { %1560 = vmatmul.mubr.f32.gmra.mxu1 %v3282_v17  ;;  %1653 = vmatpush1.msra.mxu0 %v517_v12  ;;  %v593_v12 = vld [vmem:[#allocation2 + $0xbd0] sm:$0xff]  ;;  %v590_v17 = vld [vmem:[#allocation2 + $0xbb8] sm:$0xff] }
 0x13f   :  { %1654 = vmatprep.subr.mxu0 %v514_v14  ;;  %1404 = vmatprep.mubr.f32.mxu0 %v3283_v19  ;;  %v3306_v14 = vld [vmem:[%s5021_s0 + $0x1d0] sm:$0xff]  ;;  %v3307_v19 = vld [vmem:[%s5021_s0 + $0x200] sm:$0xff] }
 0x140   :  { %1655 = vmatpush1.msra.mxu0 %v513_v16  ;;  %1565 = vmatprep.mubr.f32.mxu1 %v3284_v21  ;;  %v5029_v21 = vsub.s32 1, %v4037_v36 }
 0x141   :  { %1405 = vmatmul.mubr.f32.gmra.mxu0 %v3285_v23  ;;  %1656 = vmatprep.subr.mxu0 %v510_v18 }
 0x142   :  { %1566 = vmatmul.mubr.f32.gmra.mxu1 %v3286_v25  ;;  %1657 = vmatpush1.msra.mxu0 %v509_v20  ;;  %v589_v20 = vld [vmem:[#allocation2 + $0xbb0] sm:$0xff]  ;;  %v586_v25 = vld [vmem:[#allocation2 + $0xb98] sm:$0xff] }
 0x143   :  { %1658 = vmatprep.subr.mxu0 %v506_v22  ;;  %1410 = vmatprep.mubr.f32.mxu0 %v3287_v28  ;;  %v585_v28 = vld [vmem:[#allocation2 + $0xb90] sm:$0xff] }
 0x144   :  { %1659 = vmatpush1.msra.mxu0 %v505_v24  ;;  %1571 = vmatprep.mubr.f32.mxu1 %v3288_v30  ;;  %v3308_v24 = vld [vmem:[%s5021_s0 + $0x1f8] sm:$0xff]  ;;  %v3310_v30 = vld [vmem:[%s5021_s0 + $0x208] sm:$0xff] }
 0x145   :  { %1411 = vmatmul.mubr.f32.gmra.mxu0 %v3289_v32  ;;  %1660 = vmatprep.subr.mxu0 %v502_v26 }
 0x146   :  { %1572 = vmatmul.mubr.f32.gmra.mxu1 %v3290_v34  ;;  %1661 = vmatpush1.msra.mxu0 %v501_v29  ;;  %v581_v34 = vld [vmem:[#allocation2 + $0xb70] sm:$0xff] }
 0x147   :  { %1662 = vmatprep.subr.mxu0 %v498_v31  ;;  %1416 = vmatprep.mubr.f32.mxu0 %v3291_v37  ;;  %v582_v31 = vld [vmem:[#allocation2 + $0xb78] sm:$0xff] }
 0x148   :  { %1663 = vmatpush1.msra.mxu0 %v497_v33  ;;  %1577 = vmatprep.mubr.f32.mxu1 %v3292_v39  ;;  %v3311_v33 = vld [vmem:[%s5021_s0 + $0x238] sm:$0xff]  ;;  %v3312_v39 = vld [vmem:[%s5021_s0 + $0x248] sm:$0xff] }
 0x149   :  { %1417 = vmatmul.mubr.f32.gmra.mxu0 %v3293_v41  ;;  %1664 = vmatprep.subr.mxu0 %v494_v35  ;;  %v4128_v35 = vrot.slane %v4055_v48, %v5029_v21  ;;  %v3314_v48 = vld [vmem:[%s5021_s0 + $0x240] sm:$0xff]  ;;  %v3368_v21 = vld [vmem:[%s5021_s0 + $0x290] sm:$0xff] }
 0x14a   :  { %1578 = vmatmul.mubr.f32.gmra.mxu1 %v3294_v43  ;;  %1665 = vmatpush1.msra.mxu0 %v493_v38  ;;  %v577_v43 = vld [vmem:[#allocation2 + $0xb50] sm:$0xff] }
 0x14b   :  { %1666 = vmatprep.subr.mxu0 %v490_v40  ;;  %1422 = vmatprep.mubr.f32.mxu0 %v3295_v46  ;;  %v578_v40 = vld [vmem:[#allocation2 + $0xb58] sm:$0xff] }
 0x14c   :  { %1667 = vmatpush1.msra.mxu0 %v489_v42  ;;  %1583 = vmatprep.mubr.f32.mxu1 %v3296_v49  ;;  %v3313_v42 = vld [vmem:[%s5021_s0 + $0x230] sm:$0xff]  ;;  %v574_v49 = vld [vmem:[#allocation2 + $0xb38] sm:$0xff] }
 0x14d   :  { %1423 = vmatmul.mubr.f32.gmra.mxu0 %v3297_v51  ;;  %1668 = vmatprep.subr.mxu0 %v486_v44  ;;  %v3315_v51 = vld [vmem:[%s5021_s0 + $0x270] sm:$0xff] }
 0x14e   :  { %1584 = vmatmul.mubr.f32.gmra.mxu1 %v3298_v53  ;;  %1669 = vmatpush1.msra.mxu0 %v485_v47 }
 0x14f   :  { %1670 = vmatprep.subr.mxu0 %v482_v50  ;;  %1428 = vmatprep.mubr.f32.mxu0 %v3299_v56 }
 0x150   :  { %1671 = vmatpush1.msra.mxu0 %v481_v52  ;;  %1589 = vmatprep.mubr.f32.mxu1 %v3300_v58  ;;  %v744_v62 = vpop.f32.mrf.mxu0  ;;  %v573_v52 = vld [vmem:[#allocation2 + $0xb30] sm:$0xff]  ;;  %v570_v58 = vld [vmem:[#allocation2 + $0xb18] sm:$0xff] }
 0x151   :  { %1429 = vmatmul.mubr.f32.gmra.mxu0 %v3301_v60  ;;  %1672 = vmatprep.subr.mxu0 %v478_v54  ;;  %v745_v1 = vadd.f32 %v744_v62, %v4069_v55  ;;  %v3317_v60 = vld [vmem:[%s5021_s0 + $0x268] sm:$0xff] }
 0x152   :  { %1590 = vmatmul.mubr.f32.gmra.mxu1 %v3302_v63  ;;  %1673 = vmatpush1.msra.mxu0 %v477_v57  ;;  %v905_v4 = vpop.f32.mrf.mxu1  ;;  %v4087_v5 = vpop.f32.mrf.mxu0  ;;  %v3316_v57 = vld [vmem:[%s5021_s0 + $0x280] sm:$0xff] }
 0x153   :  { %1674 = vmatprep.subr.mxu0 %v474_v59  ;;  %1434 = vmatprep.mubr.f32.mxu0 %v3303_v2  ;;  %v4092_v10 = vadd.f32 %v905_v4, %v745_v1  ;;  %v3318_v1 = vld [vmem:[%s5021_s0 + $0x278] sm:$0xff]  ;;  %v3319_v4 = vld [vmem:[%s5021_s0 + $0x2a8] sm:$0xff] }
 0x154   :  { %1675 = vmatpush1.msra.mxu0 %v473_v61  ;;  %1595 = vmatprep.mubr.f32.mxu1 %v3304_v6  ;;  %v4097_v13 = vpop.f32.mrf.mxu1  ;;  %v569_v61 = vld [vmem:[#allocation2 + $0xb10] sm:$0xff]  ;;  %v566_v2 = vld [vmem:[#allocation2 + $0xaf8] sm:$0xff] }
 0x155   :  { %1435 = vmatmul.mubr.f32.gmra.mxu0 %v3305_v11  ;;  %1676 = vmatprep.subr.mxu0 %v598_v0  ;;  %v565_v6 = vld [vmem:[#allocation2 + $0xaf0] sm:$0xff] }
 0x156   :  { %1596 = vmatmul.mubr.f32.gmra.mxu1 %v3306_v14  ;;  %1677 = vmatpush2.msra.mxu0 %v597_v3  ;;  %v750_v16 = vpop.f32.mrf.mxu0  ;;  %v562_v14 = vld [vmem:[#allocation2 + $0xad8] sm:$0xff] }
 0x157   :  { %1678 = vmatprep.subr.mxu0 %v594_v7  ;;  %1835 = vmatprep.subr.mxu1 %v602_v8  ;;  %v751_v18 = vadd.f32 %v750_v16, %v4069_v55  ;;  %v911_v22 = vpop.f32.mrf.mxu1  ;;  %v3321_v16 = vld [vmem:[%s5021_s0 + $0x2a0] sm:$0xff] }
 0x158   :  { %1440 = vmatprep.mubr.f32.mxu0 %v3307_v19  ;;  %1679 = vmatpush2.msra.mxu0 %v593_v12  ;;  %v4107_v23 = vpop.f32.mrf.mxu0  ;;  %v3320_v12 = vld [vmem:[%s5021_s0 + $0x2b8] sm:$0xff] }
 0x159   :  { %1836 = vmatpush1.msra.mxu1 %v601_v15  ;;  %1441 = vmatmul.mubr.f32.gmra.mxu0 %v3308_v24  ;;  %v4112_v26 = vadd.f32 %v911_v22, %v751_v18  ;;  %v4117_v29 = vpop.f32.mrf.mxu1  ;;  %v3322_v22 = vld [vmem:[%s5021_s0 + $0x2b0] sm:$0xff]  ;;  %v558_v24 = vld [vmem:[#allocation2 + $0xab8] sm:$0xff] }
 0x15a   :  { %1601 = vmatprep.mubr.f32.mxu1 %v3309_v27  ;;  %1680 = vmatprep.subr.mxu0 %v590_v17  ;;  %v561_v17 = vld [vmem:[#allocation2 + $0xad0] sm:$0xff]  ;;  %v3323_v27 = vld [vmem:[%s5021_s0 + $0x2e0] sm:$0xff] }
 0x15b   :  { %1602 = vmatmul.mubr.f32.gmra.mxu1 %v3310_v30  ;;  %1681 = vmatpush2.msra.mxu0 %v589_v20  ;;  %v756_v32 = vpop.f32.mrf.mxu0 }
 0x15c   :  { %1682 = vmatprep.subr.mxu0 %v586_v25  ;;  %1446 = vmatprep.mubr.f32.mxu0 %v3311_v33  ;;  %v757_v37 = vadd.f32 %v756_v32, %v4069_v55  ;;  %v917_v38 = vpop.f32.mrf.mxu1  ;;  %v3324_v33 = vld [vmem:[%s5021_s0 + $0x2f0] sm:$0xff] }
 0x15d   :  { %1683 = vmatpush2.msra.mxu0 %v585_v28  ;;  %1607 = vmatprep.mubr.f32.mxu1 %v3312_v39  ;;  %v758_v41 = vpop.f32.mrf.mxu0  ;;  %v557_v28 = vld [vmem:[#allocation2 + $0xab0] sm:$0xff] }
 0x15e   :  { %1447 = vmatmul.mubr.f32.gmra.mxu0 %v3313_v42  ;;  %1684 = vmatprep.subr.mxu0 %v582_v31  ;;  %v4137_v44 = vadd.f32 %v917_v38, %v757_v37  ;;  %v759_v46 = vadd.f32 %v758_v41, %v4128_v35  ;;  %v919_v47 = vpop.f32.mrf.mxu1  ;;  %v3325_v38 = vld [vmem:[%s5021_s0 + $0x2d8] sm:$0xff]  ;;  %v553_v39 = vld [vmem:[#allocation2 + $0xa90] sm:$0xff] }
 0x15f   :  { %1608 = vmatmul.mubr.f32.gmra.mxu1 %v3314_v48  ;;  %1685 = vmatpush2.msra.mxu0 %v581_v34  ;;  %v762_v50 = vpop.f32.mrf.mxu0  ;;  %v554_v34 = vld [vmem:[#allocation2 + $0xa98] sm:$0xff] }
 0x160   :  { %1686 = vmatprep.subr.mxu0 %v578_v40  ;;  %1452 = vmatprep.mubr.f32.mxu0 %v3315_v51  ;;  %v4146_v53 = vadd.f32 %v919_v47, %v759_v46  ;;  %v763_v54 = vadd.f32 %v762_v50, %v4069_v55  ;;  %v923_v56 = vpop.f32.mrf.mxu1  ;;  %v550_v46 = vld [vmem:[#allocation2 + $0xa78] sm:$0xff] }
 0x161   :  { %1687 = vmatpush2.msra.mxu0 %v577_v43  ;;  %1613 = vmatprep.mubr.f32.mxu1 %v3316_v57  ;;  %v764_v59 = vpop.f32.mrf.mxu0  ;;  %v3326_v43 = vld [vmem:[%s5021_s0 + $0x2e8] sm:$0xff]  ;;  %v3327_v48 = vld [vmem:[%s5021_s0 + $0x318] sm:$0xff] }
 0x162   :  { %1453 = vmatmul.mubr.f32.gmra.mxu0 %v3317_v60  ;;  %1688 = vmatprep.subr.mxu0 %v574_v49  ;;  %v4155_v62 = vadd.f32 %v923_v56, %v763_v54  ;;  %v765_v63 = vadd.f32 %v764_v59, %v4128_v35  ;;  %v925_v0 = vpop.f32.mrf.mxu1  ;;  %v549_v49 = vld [vmem:[#allocation2 + $0xa70] sm:$0xff]  ;;  %v3328_v54 = vld [vmem:[%s5021_s0 + $0x328] sm:$0xff]  ;;  %v546_v56 = vld [vmem:[#allocation2 + $0xa58] sm:$0xff] }
 0x163   :  { %1614 = vmatmul.mubr.f32.gmra.mxu1 %v3318_v1  ;;  %1689 = vmatpush2.msra.mxu0 %v573_v52  ;;  %v768_v3 = vpop.f32.mrf.mxu0  ;;  %v545_v59 = vld [vmem:[#allocation2 + $0xa50] sm:$0xff]  ;;  %v542_v1 = vld [vmem:[#allocation2 + $0xa38] sm:$0xff] }
 0x164   :  { %1690 = vmatprep.subr.mxu0 %v570_v58  ;;  %1458 = vmatprep.mubr.f32.mxu0 %v3319_v4  ;;  %v4164_v7 = vadd.f32 %v925_v0, %v765_v63  ;;  %v769_v8 = vadd.f32 %v768_v3, %v4069_v55  ;;  %v929_v11 = vpop.f32.mrf.mxu1  ;;  %v3329_v58 = vld [vmem:[%s5021_s0 + $0x310] sm:$0xff]  ;;  %v3330_v0 = vld [vmem:[%s5021_s0 + $0x320] sm:$0xff] }
 0x165   :  { %1691 = vmatpush2.msra.mxu0 %v569_v61  ;;  %1619 = vmatprep.mubr.f32.mxu1 %v3320_v12  ;;  %v770_v15 = vpop.f32.mrf.mxu0  ;;  %v3331_v3 = vld [vmem:[%s5021_s0 + $0x350] sm:$0xff]  ;;  %v3332_v12 = vld [vmem:[%s5021_s0 + $0x360] sm:$0xff] }
 0x166   :  { %1459 = vmatmul.mubr.f32.gmra.mxu0 %v3321_v16  ;;  %1692 = vmatprep.subr.mxu0 %v566_v2  ;;  %v4173_v18 = vadd.f32 %v929_v11, %v769_v8  ;;  %v771_v19 = vadd.f32 %v770_v15, %v4128_v35  ;;  %v931_v20 = vpop.f32.mrf.mxu1  ;;  %v541_v4 = vld [vmem:[#allocation2 + $0xa30] sm:$0xff]  ;;  %v3333_v16 = vld [vmem:[%s5021_s0 + $0x348] sm:$0xff] }
 0x167   :  { %1620 = vmatmul.mubr.f32.gmra.mxu1 %v3322_v22  ;;  %1693 = vmatpush2.msra.mxu0 %v565_v6  ;;  %v774_v25 = vpop.f32.mrf.mxu0 }
 0x168   :  { %1694 = vmatprep.subr.mxu0 %v562_v14  ;;  %1464 = vmatprep.mubr.f32.mxu0 %v3323_v27  ;;  %v4182_v30 = vadd.f32 %v931_v20, %v771_v19  ;;  %v775_v31 = vadd.f32 %v774_v25, %v4069_v55  ;;  %v935_v32 = vpop.f32.mrf.mxu1  ;;  %v538_v14 = vld [vmem:[#allocation2 + $0xa18] sm:$0xff] }
 0x169   :  { %1695 = vmatpush2.msra.mxu0 %v561_v17  ;;  %1625 = vmatprep.mubr.f32.mxu1 %v3324_v33  ;;  %v776_v37 = vpop.f32.mrf.mxu0  ;;  %v537_v17 = vld [vmem:[#allocation2 + $0xa10] sm:$0xff]  ;;  %v2189_v25 = vld [vmem:[#allocation7 + $0xf8] sm:$0xff] }
 0x16a   :  { %1465 = vmatmul.mubr.f32.gmra.mxu0 %v3325_v38  ;;  %1696 = vmatprep.subr.mxu0 %v558_v24  ;;  %v4191_v40 = vadd.f32 %v935_v32, %v775_v31  ;;  %v777_v41 = vadd.f32 %v776_v37, %v4128_v35  ;;  %v937_v42 = vpop.f32.mrf.mxu1  ;;  %v3334_v24 = vld [vmem:[%s5021_s0 + $0x358] sm:$0xff]  ;;  %v3336_v38 = vld [vmem:[%s5021_s0 + $0x20] sm:$0xff] }
 0x16b   :  { %1626 = vmatmul.mubr.f32.gmra.mxu1 %v3326_v43  ;;  %1697 = vmatpush2.msra.mxu0 %v557_v28  ;;  %v780_v47 = vpop.f32.mrf.mxu0  ;;  %v3335_v28 = vld [vmem:[%s5021_s0 + $0x28] sm:$0xff]  ;;  %v3337_v43 = vld [vmem:[%s5021_s0 + $0x30] sm:$0xff] }
 0x16c   :  { %1698 = vmatprep.subr.mxu0 %v554_v34  ;;  %1470 = vmatprep.mubr.f32.mxu0 %v3327_v48  ;;  %v4200_v50 = vadd.f32 %v937_v42, %v777_v41  ;;  %v781_v51 = vadd.f32 %v780_v47, %v4069_v55  ;;  %v941_v52 = vpop.f32.mrf.mxu1  ;;  %v2188_v34 = vld [vmem:[#allocation7 + $0xf0] sm:$0xff] }
 0x16d   :  { %1699 = vmatpush2.msra.mxu0 %v553_v39  ;;  %1631 = vmatprep.mubr.f32.mxu1 %v3328_v54  ;;  %v782_v57 = vpop.f32.mrf.mxu0  ;;  %v2187_v39 = vld [vmem:[#allocation7 + $0xe8] sm:$0xff]  ;;  %v3339_v54 = vld [vmem:[%s5021_s0 + $0x58] sm:$0xff] }
 0x16e   :  { %1471 = vmatmul.mubr.f32.gmra.mxu0 %v3329_v58  ;;  %1700 = vmatprep.subr.mxu0 %v550_v46  ;;  %v4209_v60 = vadd.f32 %v941_v52, %v781_v51  ;;  %v783_v61 = vadd.f32 %v782_v57, %v4128_v35  ;;  %v943_v63 = vpop.f32.mrf.mxu1  ;;  %v3338_v46 = vld [vmem:[%s5021_s0 + $0x60] sm:$0xff]  ;;  %v3340_v58 = vld [vmem:[%s5021_s0 + $0x68] sm:$0xff] }
 0x16f   :  { %1632 = vmatmul.mubr.f32.gmra.mxu1 %v3330_v0  ;;  %1701 = vmatpush2.msra.mxu0 %v549_v49  ;;  %v786_v2 = vpop.f32.mrf.mxu0  ;;  %v2186_v49 = vld [vmem:[#allocation7 + $0xe0] sm:$0xff]  ;;  %v2184_v0 = vld [vmem:[#allocation7 + $0xd0] sm:$0xff] }
 0x170   :  { %1702 = vmatprep.subr.mxu0 %v546_v56  ;;  %1476 = vmatprep.mubr.f32.mxu0 %v3331_v3  ;;  %v4218_v6 = vadd.f32 %v943_v63, %v783_v61  ;;  %v787_v8 = vadd.f32 %v786_v2, %v4069_v55  ;;  %v947_v11 = vpop.f32.mrf.mxu1  ;;  %v2185_v56 = vld [vmem:[#allocation7 + $0xd8] sm:$0xff]  ;;  %v3342_v3 = vld [vmem:[%s5021_s0 + $0x90] sm:$0xff] }
 0x171   :  { %1703 = vmatpush2.msra.mxu0 %v545_v59  ;;  %1637 = vmatprep.mubr.f32.mxu1 %v3332_v12  ;;  %v788_v15 = vpop.f32.mrf.mxu0  ;;  %v3341_v59 = vld [vmem:[%s5021_s0 + $0x98] sm:$0xff]  ;;  %v3344_v12 = vld [vmem:[%s5021_s0 + $0xd0] sm:$0xff] }
 0x172   :  { %1477 = vmatmul.mubr.f32.gmra.mxu0 %v3333_v16  ;;  %1704 = vmatprep.subr.mxu0 %v542_v1  ;;  %v4227_v19 = vadd.f32 %v947_v11, %v787_v8  ;;  %v789_v20 = vadd.f32 %v788_v15, %v4128_v35  ;;  %v949_v22 = vpop.f32.mrf.mxu1  ;;  %v3343_v11 = vld [vmem:[%s5021_s0 + $0xa0] sm:$0xff] }
 0x173   :  { %1638 = vmatmul.mubr.f32.gmra.mxu1 %v3334_v24  ;;  %1705 = vmatpush2.msra.mxu0 %v541_v4  ;;  %v792_v27 = vpop.f32.mrf.mxu0  ;;  %v2183_v4 = vld [vmem:[#allocation7 + $0xc8] sm:$0xff]  ;;  %v2253_v24 = vld [vmem:[#allocation7 + $0x2f8] sm:$0xff] }
 0x174   :  { %1706 = vmatprep.subr.mxu0 %v538_v14  ;;  %1708 = vmatprep.mubr.f32.mxu0 %v3335_v28  ;;  %v4236_v31 = vadd.f32 %v949_v22, %v789_v20  ;;  %v793_v32 = vadd.f32 %v792_v27, %v4069_v55  ;;  %v953_v33 = vpop.f32.mrf.mxu1  ;;  %v2181_v27 = vld [vmem:[#allocation7 + $0xb8] sm:$0xff] }
 0x175   :  { %1707 = vmatpush2.msra.mxu0 %v537_v17  ;;  %1869 = vmatprep.mubr.f32.mxu1 %v5031_v9  ;;  %v4240_v37 = vpop.f32.mrf.mxu0  ;;  %v2182_v17 = vld [vmem:[#allocation7 + $0xc0] sm:$0xff] }
 0x176   :  { %1709 = vmatmul.mubr.f32.vlgmr.msra.gmra.mxu0 %v3336_v38  ;;  %2298 = vmatprep.subr.mxu0 %v2189_v25  ;;  %v4245_v41 = vadd.f32 %v953_v33, %v793_v32  ;;  %v4247_v42 = vpop.f32.mrf.mxu1  ;;  %v3345_v25 = vld [vmem:[%s5021_s0 + $0xc8] sm:$0xff]  ;;  %v2252_v32 = vld [vmem:[#allocation7 + $0x2f0] sm:$0xff] }
 0x177   :  { %3048 = vmatmul.mubr.msk.f32.vlgmr.msra.gmra.mxu1 %vm629_vm0, %v3337_v43  ;;  %1714 = vmatprep.mubr.f32.mxu0 %v3338_v46  ;;  %v798_v47 = vpop.f32.mrf.mxu0  ;;  %v3346_v33 = vld [vmem:[%s5021_s0 + $0xd8] sm:$0xff]  ;;  %v2251_v43 = vld [vmem:[#allocation7 + $0x2e8] sm:$0xff] }
 0x178   :  { %1875 = vmatprep.mubr.f32.mxu1 %v5031_v9  ;;  %2299 = vmatpush1.msra.mxu0 %v2188_v34  ;;  %v799_v48 = vadd.f32 %v798_v47, %v4069_v55  ;;  %v3347_v34 = vld [vmem:[%s5021_s0 + $0x108] sm:$0xff]  ;;  %v2180_v47 = vld [vmem:[#allocation7 + $0xb0] sm:$0xff] }
 0x179   :  { %2300 = vmatprep.subr.mxu0 %v2187_v39  ;;  %v959_v51 = vpop.f32.mrf.mxu1  ;;  %v4258_v52 = vpop.f32.mrf.mxu0  ;;  %2459 = vmatprep.subr.mxu1 %v2253_v24  ;;  %v3352_v24 = vld [vmem:[%s5021_s0 + $0x148] sm:$0xff] }
 0x17a   :  { %1715 = vmatmul.mubr.f32.gmra.mxu0 %v3339_v54  ;;  %v4263_v57 = vadd.f32 %v959_v51, %v799_v48  ;;  %2460 = vmatpush1.msra.mxu1 %v2252_v32  ;;  %v3348_v51 = vld [vmem:[%s5021_s0 + $0x100] sm:$0xff]  ;;  %v2179_v54 = vld [vmem:[#allocation7 + $0xa8] sm:$0xff] }
 0x17b   :  { %3049 = vmatmul.mubr.msk.f32.gmra.mxu1 %vm629_vm0, %v3340_v58  ;;  %1720 = vmatprep.mubr.f32.mxu0 %v3341_v59  ;;  %v4272_v61 = vpop.f32.mrf.mxu1  ;;  %v2250_v58 = vld [vmem:[#allocation7 + $0x2e0] sm:$0xff]  ;;  %v3349_v59 = vld [vmem:[%s5021_s0 + $0x110] sm:$0xff] }
 0x17c   :  { %1881 = vmatprep.mubr.f32.mxu1 %v5031_v9  ;;  %2301 = vmatpush1.msra.mxu0 %v2186_v49  ;;  %v804_v63 = vpop.f32.mrf.mxu0 }
 0x17d   :  { %2302 = vmatprep.subr.mxu0 %v2185_v56  ;;  %v805_v1 = vadd.f32 %v804_v63, %v4069_v55  ;;  %v965_v2 = vpop.f32.mrf.mxu1  ;;  %2461 = vmatprep.subr.mxu1 %v2251_v43  ;;  %v3350_v63 = vld [vmem:[%s5021_s0 + $0x140] sm:$0xff] }
 0x17e   :  { %1721 = vmatmul.mubr.f32.gmra.mxu0 %v3342_v3  ;;  %v4279_v8 = vpop.f32.mrf.mxu0  ;;  %v2178_v3 = vld [vmem:[#allocation7 + $0xa0] sm:$0xff]  ;;  %2462 = vmatpush1.msra.mxu1 %v2250_v58 }
 0x17f   :  { %3050 = vmatmul.mubr.msk.f32.gmra.mxu1 %vm629_vm0, %v3343_v11  ;;  %1726 = vmatprep.mubr.f32.mxu0 %v3344_v12  ;;  %v4288_v14 = vadd.f32 %v965_v2, %v805_v1  ;;  %v4290_v15 = vpop.f32.mrf.mxu1  ;;  %v2249_v2 = vld [vmem:[#allocation7 + $0x2d8] sm:$0xff] }
 0x180   :  { %1887 = vmatprep.mubr.f32.mxu1 %v5031_v9  ;;  %2303 = vmatpush1.msra.mxu0 %v2184_v0  ;;  %v810_v16 = vpop.f32.mrf.mxu0  ;;  %v2177_v11 = vld [vmem:[#allocation7 + $0x98] sm:$0xff] }
 0x181   :  { %2304 = vmatprep.subr.mxu0 %v2183_v4  ;;  %v811_v20 = vadd.f32 %v810_v16, %v4069_v55  ;;  %v971_v22 = vpop.f32.mrf.mxu1  ;;  %2463 = vmatprep.subr.mxu1 %v2249_v2  ;;  %v3355_v58 = vld [vmem:[%s5021_s0 + $0x180] sm:$0xff] }
 0x182   :  { %1727 = vmatmul.mubr.f32.gmra.mxu0 %v3345_v25  ;;  %v4297_v28 = vpop.f32.mrf.mxu0  ;;  %v2175_v25 = vld [vmem:[#allocation7 + $0x88] sm:$0xff] }
 0x183   :  { %3051 = vmatmul.mubr.msk.f32.gmra.mxu1 %vm629_vm0, %v3346_v33  ;;  %1732 = vmatprep.mubr.f32.mxu0 %v3347_v34  ;;  %v4306_v38 = vadd.f32 %v971_v22, %v811_v20  ;;  %v4308_v39 = vpop.f32.mrf.mxu1  ;;  %v2176_v20 = vld [vmem:[#allocation7 + $0x90] sm:$0xff]  ;;  %v2174_v34 = vld [vmem:[#allocation7 + $0x80] sm:$0xff] }
 0x184   :  { %1893 = vmatprep.mubr.f32.mxu1 %v5031_v9  ;;  %2305 = vmatpush1.msra.mxu0 %v2182_v17  ;;  %v816_v46 = vpop.f32.mrf.mxu0  ;;  %v3351_v17 = vld [vmem:[%s5021_s0 + $0x138] sm:$0xff] }
 0x185   :  { %5037 = vst [vmem:[#allocation20_spill] sm:$0xff] %v4306_v38  ;;  %2306 = vmatprep.subr.mxu0 %v2181_v27  ;;  %v817_v48 = vadd.f32 %v816_v46, %v4069_v55  ;;  %v977_v49 = vpop.f32.mrf.mxu1  ;;  %v3353_v33 = vld [vmem:[%s5021_s0 + $0x178] sm:$0xff] }
 0x186   :  { %1733 = vmatmul.mubr.f32.gmra.mxu0 %v3348_v51  ;;  %v4315_v56 = vpop.f32.mrf.mxu0  ;;  %v2173_v46 = vld [vmem:[#allocation7 + $0x78] sm:$0xff]  ;;  %v2172_v51 = vld [vmem:[#allocation7 + $0x70] sm:$0xff] }
 0x187   :  { %3052 = vmatmul.mubr.msk.f32.gmra.mxu1 %vm629_vm0, %v3349_v59  ;;  %1738 = vmatprep.mubr.f32.mxu0 %v3350_v63  ;;  %v4324_v0 = vadd.f32 %v977_v49, %v817_v48  ;;  %v4326_v1 = vpop.f32.mrf.mxu1  ;;  %v3354_v49 = vld [vmem:[%s5021_s0 + $0x170] sm:$0xff] }
 0x188   :  { %1899 = vmatprep.mubr.f32.mxu1 %v5031_v9  ;;  %2307 = vmatpush1.msra.mxu0 %v2180_v47  ;;  %v822_v4 = vpop.f32.mrf.mxu0  ;;  %v2171_v59 = vld [vmem:[#allocation7 + $0x68] sm:$0xff]  ;;  %v2244_v38 = vld [vmem:[#allocation7 + $0x2b0] sm:$0xff] }
 0x189   :  { %5038 = vst [vmem:[#allocation21_spill] sm:$0xff] %v4324_v0  ;;  %2308 = vmatprep.subr.mxu0 %v2179_v54  ;;  %v823_v12 = vadd.f32 %v822_v4, %v4069_v55  ;;  %v983_v16 = vpop.f32.mrf.mxu1  ;;  %v2170_v4 = vld [vmem:[#allocation7 + $0x60] sm:$0xff] }
 0x18a   :  { %1739 = vmatmul.mubr.f32.gmra.mxu0 %v3351_v17  ;;  %v4333_v22 = vpop.f32.mrf.mxu0 }
 0x18b   :  { %5039 = vst [vmem:[#allocation22_spill] sm:$0xff] %v4333_v22  ;;  %3053 = vmatmul.mubr.msk.f32.gmra.mxu1 %vm629_vm0, %v3352_v24  ;;  %2309 = vmatpush1.msra.mxu0 %v2178_v3  ;;  %v4339_v27 = vadd.f32 %v983_v16, %v823_v12  ;;  %v4341_v32 = vpop.f32.mrf.mxu1  ;;  %v3356_v3 = vld [vmem:[%s5021_s0 + $0x1b0] sm:$0xff]  ;;  %v2169_v12 = vld [vmem:[#allocation7 + $0x58] sm:$0xff] }
 0x18c   :  { %5041 = vst [vmem:[#allocation24_spill] sm:$0xff] %v4341_v32  ;;  %1744 = vmatprep.mubr.f32.mxu0 %v3353_v33  ;;  %2310 = vmatprep.subr.mxu0 %v2177_v11  ;;  %v828_v43 = vpop.f32.mrf.mxu0  ;;  %v2168_v24 = vld [vmem:[#allocation7 + $0x50] sm:$0xff] }
 0x18d   :  { %5040 = vst [vmem:[#allocation23_spill] sm:$0xff] %v4339_v27  ;;  %1905 = vmatprep.mubr.f32.mxu1 %v5031_v9  ;;  %2311 = vmatpush1.msra.mxu0 %v2176_v20  ;;  %v829_v47 = vadd.f32 %v828_v43, %v4069_v55  ;;  %v989_v48 = vpop.f32.mrf.mxu1  ;;  %v3357_v20 = vld [vmem:[%s5021_s0 + $0x1a8] sm:$0xff]  ;;  %v3358_v33 = vld [vmem:[%s5021_s0 + $0x1b8] sm:$0xff] }
 0x18e   :  { %1745 = vmatmul.mubr.f32.gmra.mxu0 %v3354_v49  ;;  %2312 = vmatprep.subr.mxu0 %v2175_v25  ;;  %v4351_v54 = vpop.f32.mrf.mxu0  ;;  %v2165_v49 = vld [vmem:[#allocation7 + $0x38] sm:$0xff] }
 0x18f   :  { %5042 = vst [vmem:[#allocation25_spill] sm:$0xff] %v4351_v54  ;;  %3054 = vmatmul.mubr.msk.f32.gmra.mxu1 %vm629_vm0, %v3355_v58  ;;  %2313 = vmatpush1.msra.mxu0 %v2174_v34  ;;  %v4357_v63 = vadd.f32 %v989_v48, %v829_v47  ;;  %v4359_v2 = vpop.f32.mrf.mxu1  ;;  %v2167_v34 = vld [vmem:[#allocation7 + $0x48] sm:$0xff]  ;;  %v2166_v47 = vld [vmem:[#allocation7 + $0x40] sm:$0xff] }
 0x190   :  { %5044 = vst [vmem:[#allocation27_spill] sm:$0xff] %v4359_v2  ;;  %1750 = vmatprep.mubr.f32.mxu0 %v3356_v3  ;;  %2314 = vmatprep.subr.mxu0 %v2173_v46  ;;  %v834_v11 = vpop.f32.mrf.mxu0  ;;  %v3359_v46 = vld [vmem:[%s5021_s0 + $0x1e8] sm:$0xff]  ;;  %v3360_v58 = vld [vmem:[%s5021_s0 + $0x1e0] sm:$0xff]  ;;  %v2204_v2 = vld [vmem:[#allocation7 + $0x170] sm:$0xff] }
 0x191   :  { %5043 = vst [vmem:[#allocation26_spill] sm:$0xff] %v4357_v63  ;;  %1911 = vmatprep.mubr.f32.mxu1 %v5031_v9  ;;  %2315 = vmatpush1.msra.mxu0 %v2172_v51  ;;  %v835_v16 = vadd.f32 %v834_v11, %v4069_v55  ;;  %v995_v17 = vpop.f32.mrf.mxu1  ;;  %v2163_v11 = vld [vmem:[#allocation7 + $0x28] sm:$0xff]  ;;  %v2208_v63 = vld [vmem:[#allocation7 + $0x190] sm:$0xff] }
 0x192   :  { %1751 = vmatmul.mubr.f32.gmra.mxu0 %v3357_v20  ;;  %2316 = vmatprep.subr.mxu0 %v2171_v59  ;;  %v4369_v25 = vpop.f32.mrf.mxu0  ;;  %v2164_v59 = vld [vmem:[#allocation7 + $0x30] sm:$0xff]  ;;  %v2161_v20 = vld [vmem:[#allocation7 + $0x18] sm:$0xff] }
 0x193   :  { %5045 = vst [vmem:[#allocation28_spill] sm:$0xff] %v4369_v25  ;;  %3055 = vmatmul.mubr.msk.f32.gmra.mxu1 %vm629_vm0, %v3358_v33  ;;  %2317 = vmatpush1.msra.mxu0 %v2170_v4  ;;  %v4375_v43 = vadd.f32 %v995_v17, %v835_v16  ;;  %v4377_v55 = vpop.f32.mrf.mxu1  ;;  %v3361_v4 = vld [vmem:[%s5021_s0 + $0x1f0] sm:$0xff]  ;;  %v3362_v16 = vld [vmem:[%s5021_s0 + $0x220] sm:$0xff]  ;;  %v3363_v33 = vld [vmem:[%s5021_s0 + $0x218] sm:$0xff] }
 0x194   :  { %5047 = vst [vmem:[#allocation30_spill] sm:$0xff] %v4377_v55  ;;  %1756 = vmatprep.mubr.f32.mxu0 %v3359_v46  ;;  %2318 = vmatprep.subr.mxu0 %v2169_v12  ;;  %v4382_v48 = vpop.f32.mrf.mxu0  ;;  %v2162_v17 = vld [vmem:[#allocation7 + $0x20] sm:$0xff]  ;;  %v3380_v54 = vld [vmem:[%s5021_s0 + $0x370] sm:$0xff] }
 0x195   :  { %5046 = vst [vmem:[#allocation29_spill] sm:$0xff] %v4375_v43  ;;  %1917 = vmatprep.mubr.f32.mxu1 %v5031_v9  ;;  %2319 = vmatpush1.msra.mxu0 %v2168_v24  ;;  %v4385_v51 = vpop.f32.mrf.mxu1  ;;  %v3364_v46 = vld [vmem:[%s5021_s0 + $0x228] sm:$0xff] }
 0x196   :  { %1757 = vmatmul.mubr.f32.gmra.mxu0 %v3360_v58  ;;  %2320 = vmatprep.subr.mxu0 %v2167_v34  ;;  %v4390_v3 = vpop.f32.mrf.mxu0  ;;  %v2160_v34 = vld [vmem:[#allocation7 + $0x10] sm:$0xff] }
 0x197   :  { %3056 = vmatmul.mubr.msk.f32.gmra.mxu1 %vm629_vm0, %v3361_v4  ;;  %2321 = vmatpush1.msra.mxu0 %v2166_v47  ;;  %v4396_v12 = vpop.f32.mrf.mxu1  ;;  %v2159_v47 = vld [vmem:[#allocation7 + $0x8] sm:$0xff]  ;;  %v2158_v4 = vld [vmem:[#allocation7] sm:$0xff] }
 0x198   :  { %1762 = vmatprep.mubr.f32.mxu0 %v3362_v16  ;;  %2322 = vmatprep.subr.mxu0 %v2165_v49 }
 0x199   :  { %1923 = vmatprep.mubr.f32.mxu1 %v5031_v9  ;;  %2323 = vmatpush1.msra.mxu0 %v2164_v59  ;;  %v4402_v24 = vpop.f32.mrf.mxu0  ;;  %v3365_v59 = vld [vmem:[%s5021_s0 + $0x258] sm:$0xff] }
 0x19a   :  { %1763 = vmatmul.mubr.f32.gmra.mxu0 %v3363_v33  ;;  %2324 = vmatprep.subr.mxu0 %v2163_v11  ;;  %v2221_v11 = vld [vmem:[#allocation7 + $0x1f8] sm:$0xff]  ;;  %v2220_v33 = vld [vmem:[#allocation7 + $0x1f0] sm:$0xff] }
 0x19b   :  { %3057 = vmatmul.mubr.msk.f32.gmra.mxu1 %vm629_vm0, %v3364_v46  ;;  %2325 = vmatpush1.msra.mxu0 %v2162_v17  ;;  %v4411_v49 = vpop.f32.mrf.mxu1  ;;  %v4413_v58 = vpop.f32.mrf.mxu0  ;;  %v3366_v17 = vld [vmem:[%s5021_s0 + $0x250] sm:$0xff]  ;;  %v747_v46 = vadd.f32 %v4087_v5, %v4128_v35  ;;  %v2217_v5 = vld [vmem:[#allocation7 + $0x1d8] sm:$0xff] }
 0x19c   :  { %1768 = vmatprep.mubr.f32.mxu0 %v3365_v59  ;;  %2326 = vmatprep.subr.mxu0 %v2161_v20  ;;  %v3367_v20 = vld [vmem:[%s5021_s0 + $0x260] sm:$0xff] }
 0x19d   :  { %1929 = vmatprep.mubr.f32.mxu1 %v5031_v9  ;;  %2327 = vmatpush1.msra.mxu0 %v2160_v34  ;;  %v4419_v16 = vpop.f32.mrf.mxu1  ;;  %v2219_v34 = vld [vmem:[#allocation7 + $0x1e8] sm:$0xff]  ;;  %v908_v43 = vadd.f32 %v4097_v13, %v747_v46  ;;  %v2213_v13 = vld [vmem:[#allocation7 + $0x1b8] sm:$0xff] }
 0x19e   :  { %1769 = vmatmul.mubr.f32.gmra.mxu0 %v3366_v17  ;;  %2328 = vmatprep.subr.mxu0 %v2159_v47  ;;  %v2218_v47 = vld [vmem:[#allocation7 + $0x1e0] sm:$0xff] }
 0x19f   :  { %3058 = vmatmul.mubr.msk.f32.gmra.mxu1 %vm629_vm0, %v3367_v20  ;;  %2329 = vmatpush1.msra.mxu0 %v2158_v4  ;;  %v4430_v59 = vpop.f32.mrf.mxu0  ;;  %v3369_v4 = vld [vmem:[%s5021_s0 + $0x288] sm:$0xff]  ;;  %v2216_v20 = vld [vmem:[#allocation7 + $0x1d0] sm:$0xff]  ;;  %v1069_v46 = vadd.f32 %v4390_v3, %v908_v43  ;;  %v3374_v3 = vld [vmem:[%s5021_s0 + $0x300] sm:$0xff] }
 0x1a0   :  { %1774 = vmatprep.mubr.f32.mxu0 %v3368_v21  ;;  %2330 = vmatprep.subr.mxu0 %v2221_v11  ;;  %v3370_v21 = vld [vmem:[%s5021_s0 + $0x298] sm:$0xff]  ;;  %v2215_v11 = vld [vmem:[#allocation7 + $0x1c8] sm:$0xff] }
 0x1a1   :  { %1935 = vmatprep.mubr.f32.mxu1 %v5031_v9  ;;  %2331 = vmatpush2.msra.mxu0 %v2220_v33  ;;  %v4436_v17 = vpop.f32.mrf.mxu1  ;;  %v4438_v45 = vpop.f32.mrf.mxu0  ;;  %v3371_v9 = vld [vmem:[%s5021_s0 + $0x2c8] sm:$0xff]  ;;  %v1230_v36 = vadd.f32 %v4396_v12, %v1069_v46  ;;  %v753_v12 = vadd.f32 %v4107_v23, %v4128_v35  ;;  %v3377_v46 = vld [vmem:[%s5021_s0 + $0x338] sm:$0xff]  ;;  %v3378_v23 = vld [vmem:[%s5021_s0 + $0x330] sm:$0xff] }
 0x1a2   :  { %1775 = vmatmul.mubr.f32.gmra.mxu0 %v3369_v4  ;;  %2332 = vmatprep.subr.mxu0 %v2219_v34  ;;  %v2214_v34 = vld [vmem:[#allocation7 + $0x1c0] sm:$0xff]  ;;  %v5048_v4 = vmov 0.0  }
 0x1a3   :  { %3059 = vmatmul.mubr.msk.f32.gmra.mxu1 %vm629_vm0, %v3370_v21  ;;  %2333 = vmatpush2.msra.mxu0 %v2218_v47  ;;  %v4448_v33 = vpop.f32.mrf.mxu1  ;;  %v3372_v47 = vld [vmem:[%s5021_s0 + $0x2c0] sm:$0xff]  ;;  %v2212_v21 = vld [vmem:[#allocation7 + $0x1b0] sm:$0xff]  ;;  %v2031_v25 = vmul.f32 0.2, %v1230_v36  ;;  %vm1967_vm1 = vcmp.gt.f32.partialorder %v1230_v36, 0.0  ;;  %v914_v27 = vadd.f32 %v4117_v29, %v753_v12 }
 0x1a4   :  { %1780 = vmatprep.mubr.f32.mxu0 %v3371_v9  ;;  %2334 = vmatprep.subr.mxu0 %v2217_v5  ;;  %v3373_v9 = vld [vmem:[%s5021_s0 + $0x2d0] sm:$0xff] }
 0x1a5   :  { %1941 = vmatprep.mubr.f32.mxu1 %v5048_v4  ;;  %2335 = vmatpush2.msra.mxu0 %v2216_v20  ;;  %v4455_v55 = vpop.f32.mrf.mxu0  ;;  %v2211_v5 = vld [vmem:[#allocation7 + $0x1a8] sm:$0xff]  ;;  %v2095_v0 = vsel %vm1967_vm1, %v1230_v36, %v2031_v25  ;;  %v2200_v29 = vld [vmem:[#allocation7 + $0x150] sm:$0xff]  ;;  %v1075_v12 = vadd.f32 %v4413_v58, %v914_v27  ;;  %v1067_v36 = vadd.f32 %v4382_v48, %v4092_v10  ;;  %v2246_v27 = vld [vmem:[#allocation7 + $0x2c0] sm:$0xff] }
 0x1a6   :  { %1781 = vmatmul.mubr.f32.gmra.mxu0 %v3372_v47  ;;  %2336 = vmatprep.subr.mxu0 %v2215_v11  ;;  %v2210_v11 = vld [vmem:[#allocation7 + $0x1a0] sm:$0xff]  ;;  %v2209_v47 = vld [vmem:[#allocation7 + $0x198] sm:$0xff]  ;;  %v1081_v48 = vadd.f32 %v4438_v45, %v4146_v53 }
 0x1a7   :  { %3060 = vmatmul.mubr.msk.f32.gmra.mxu1 %vm629_vm0, %v3373_v9  ;;  %2337 = vmatpush2.msra.mxu0 %v2214_v34  ;;  %v4464_v20 = vpop.f32.mrf.mxu1  ;;  %v4466_v43 = vpop.f32.mrf.mxu0  ;;  %v3375_v34 = vld [vmem:[%s5021_s0 + $0x2f8] sm:$0xff]  ;;  %v1236_v10 = vadd.f32 %v4419_v16, %v1075_v12  ;;  %v2242_v16 = vld [vmem:[#allocation7 + $0x2a0] sm:$0xff] }
 0x1a8   :  { %1786 = vmatprep.mubr.f32.mxu0 %v3374_v3  ;;  %2338 = vmatprep.subr.mxu0 %v2213_v13  ;;  %v3376_v13 = vld [vmem:[%s5021_s0 + $0x308] sm:$0xff]  ;;  %v2197_v58 = vld [vmem:[#allocation7 + $0x138] sm:$0xff] }
 0x1a9   :  { %1947 = vmatprep.mubr.f32.mxu1 %v5048_v4  ;;  %2339 = vmatpush2.msra.mxu0 %v2212_v21  ;;  %v4473_v9 = vpop.f32.mrf.mxu1  ;;  %v2207_v21 = vld [vmem:[#allocation7 + $0x188] sm:$0xff]  ;;  %v2193_v12 = vld [vmem:[#allocation7 + $0x118] sm:$0xff]  ;;  %vm1971_vm2 = vcmp.gt.f32.partialorder %v1236_v10, 0.0 }
 0x1aa   :  { %1787 = vmatmul.mubr.f32.gmra.mxu0 %v3375_v34  ;;  %2340 = vmatprep.subr.mxu0 %v2211_v5  ;;  %v2206_v5 = vld [vmem:[#allocation7 + $0x180] sm:$0xff]  ;;  %v2205_v34 = vld [vmem:[#allocation7 + $0x178] sm:$0xff] }
 0x1ab   :  { %3061 = vmatmul.mubr.msk.f32.gmra.mxu1 %vm629_vm0, %v3376_v13  ;;  %2341 = vmatpush2.msra.mxu0 %v2210_v11  ;;  %v4482_v3 = vpop.f32.mrf.mxu0 }
 0x1ac   :  { %1792 = vmatprep.mubr.f32.mxu0 %v3377_v46  ;;  %2342 = vmatprep.subr.mxu0 %v2209_v47  ;;  %v3379_v47 = vld [vmem:[%s5021_s0 + $0x340] sm:$0xff] }
 0x1ad   :  { %1953 = vmatprep.mubr.f32.mxu1 %v5048_v4  ;;  %2343 = vmatpush2.msra.mxu0 %v2208_v63  ;;  %v4490_v13 = vpop.f32.mrf.mxu1  ;;  %v4492_v11 = vpop.f32.mrf.mxu0  ;;  %v2203_v63 = vld [vmem:[#allocation7 + $0x168] sm:$0xff] }
 0x1ae   :  { %1793 = vmatmul.mubr.f32.gmra.mxu0 %v3378_v23  ;;  %2344 = vmatprep.subr.mxu0 %v2207_v21  ;;  %v2202_v21 = vld [vmem:[#allocation7 + $0x160] sm:$0xff]  ;;  %v2201_v23 = vld [vmem:[#allocation7 + $0x158] sm:$0xff] }
 0x1af   :  { %3062 = vmatmul.mubr.msk.f32.gmra.mxu1 %vm629_vm0, %v3379_v47  ;;  %2345 = vmatpush2.msra.mxu0 %v2206_v5  ;;  %v4501_v46 = vpop.f32.mrf.mxu1  ;;  %v3381_v5 = vld [vmem:[%s5021_s0 + $0x368] sm:$0xff]  ;;  %v2248_v47 = vld [vmem:[#allocation7 + $0x2d0] sm:$0xff] }
 0x1b0   :  { %1798 = vmatprep.mubr.f32.mxu0 %v3380_v54  ;;  %2346 = vmatprep.subr.mxu0 %v2205_v34  ;;  %v3382_v54 = vld [vmem:[%s5021_s0 + $0x378] sm:$0xff]  ;;  %v2247_v34 = vld [vmem:[#allocation7 + $0x2c8] sm:$0xff]  ;;  %s3547_s0 = smov [#allocation13]  }
 0x1b1   :  { %1959 = vmatprep.mubr.f32.mxu1 %v5048_v4  ;;  %2347 = vmatpush2.msra.mxu0 %v2204_v2  ;;  %v4508_v32 = vpop.f32.mrf.mxu0  ;;  %v2199_v2 = vld [vmem:[#allocation7 + $0x148] sm:$0xff]  ;;  %s3017_s23 = sshll.u32 %s3547_s0, 4  ;;  %s3018_s23 = int_to_ptr.vmem [resolvable:$true] %s3017_s23 }
 0x1b2   :  { %1799 = vmatmul.mubr.f32.gmra.mxu0 %v3381_v5  ;;  %2348 = vmatprep.subr.mxu0 %v2203_v63  ;;  %v2198_v63 = vld [vmem:[#allocation7 + $0x140] sm:$0xff]  ;;  %s3504_s24 = scalar_lea.vmem %s3018_s23, 2048  ;;  %p3509_p3 = scmp.lt.s32.totalorder %s3018_s23, %s3018_s23 }
 0x1b3   :  { %3063 = vmatmul.mubr.msk.f32.gmra.mxu1 %vm629_vm0, %v3382_v54  ;;  %2349 = vmatpush2.msra.mxu0 %v2202_v21  ;;  %v4520_v25 = vpop.f32.mrf.mxu1  ;;  %v4522_v4 = vpop.f32.mrf.mxu0  ;;  %v2245_v54 = vld [vmem:[#allocation7 + $0x2b8] sm:$0xff]  ;;  %v2196_v21 = vld [vmem:[#allocation7 + $0x130] sm:$0xff]  ;;  %p3505_p2 = scmp.ne.s32.totalorder %s3018_s23, %s3504_s24  ;;  %p3510_p4 = scmp.lt.s32.totalorder %s3504_s24, %s3504_s24 }
 0x1b4   :  { %2350 = vmatprep.subr.mxu0 %v2201_v23  ;;  %2362 = vmatprep.mubr.f32.mxu0 %v2095_v0  ;;  %v1228_v23 = vadd.f32 %v4385_v51, %v1067_v36  ;;  %v1073_v0 = vadd.f32 %v4402_v24, %v4112_v26  ;;  %v2241_v51 = vld [vmem:[#allocation7 + $0x298] sm:$0xff]  ;;  %v2192_v36 = vld [vmem:[#allocation7 + $0x110] sm:$0xff]  ;;  %v1242_v26 = vadd.f32 %v4448_v33, %v1081_v48  ;;  %v2190_v33 = vld [vmem:[#allocation7 + $0x100] sm:$0xff] }
 0x1b5   :  { %2351 = vmatpush2.msra.mxu0 %v2200_v29  ;;  %v4524_v5 = vpop.f32.mrf.mxu1  ;;  %2464 = vmatpush1.msra.mxu1 %v2248_v47  ;;  %v2195_v29 = vld [vmem:[#allocation7 + $0x128] sm:$0xff]  ;;  %v1087_v24 = vadd.f32 %v4466_v43, %v4164_v7  ;;  %v2238_v7 = vld [vmem:[#allocation7 + $0x280] sm:$0xff]  ;;  %v1085_v43 = vadd.f32 %v4455_v55, %v4155_v62  ;;  %v2237_v48 = vld [vmem:[#allocation7 + $0x278] sm:$0xff]  ;;  %p3511_p5 = por %p3510_p4, %p3509_p3 }
 0x1b6   :  { %2352 = vmatprep.subr.mxu0 %v2199_v2  ;;  %2465 = vmatprep.subr.mxu1 %v2247_v34  ;;  %v2243_v47 = vld [vmem:[#allocation7 + $0x2a8] sm:$0xff]  ;;  %v2194_v2 = vld [vmem:[#allocation7 + $0x120] sm:$0xff]  ;;  %v2035_v34 = vmul.f32 0.2, %v1236_v10  ;;  %vm1966_vm3 = vcmp.gt.f32.partialorder %v1228_v23, 0.0  ;;  %vm1975_vm4 = vcmp.gt.f32.partialorder %v1242_v26, 0.0 }
 0x1b7   :  { %2353 = vmatpush2.msra.mxu0 %v2198_v63  ;;  %v4532_v22 = vpop.f32.mrf.mxu0  ;;  %2466 = vmatpush1.msra.mxu1 %v2246_v27  ;;  %v2240_v63 = vld [vmem:[#allocation7 + $0x290] sm:$0xff]  ;;  %v2030_v27 = vmul.f32 0.2, %v1228_v23  ;;  %p3512_p6 = pnand %p3511_p5, %p3505_p2 }
 0x1b8   :  { %2354 = vmatprep.subr.mxu0 %v2197_v58  ;;  %2467 = vmatprep.subr.mxu1 %v2245_v54  ;;  %v1234_v58 = vadd.f32 %v4411_v49, %v1073_v0  ;;  %v1079_v54 = vadd.f32 %v4430_v59, %v4137_v44  ;;  %v2099_v44 = vsel %vm1971_vm2, %v1236_v10, %v2035_v34  ;;  %v2235_v10 = vld [vmem:[#allocation7 + $0x268] sm:$0xff] }
 0x1b9   :  { %2355 = vmatpush2.msra.mxu0 %v2196_v21  ;;  %v4534_v45 = vpop.f32.mrf.mxu1  ;;  %v4536_v53 = vpop.f32.mrf.mxu0  ;;  %2468 = vmatpush1.msra.mxu1 %v2244_v38  ;;  %v2191_v21 = vld [vmem:[#allocation7 + $0x108] sm:$0xff]  ;;  %v1248_v59 = vadd.f32 %v4473_v9, %v1087_v24  ;;  %v1093_v0 = vadd.f32 %v4492_v11, %v4182_v30  ;;  %v2234_v9 = vld [vmem:[#allocation7 + $0x260] sm:$0xff]  ;;  %v1246_v30 = vadd.f32 %v4464_v20, %v1085_v43  ;;  %v2228_v43 = vld [vmem:[#allocation7 + $0x230] sm:$0xff] }
 0x1ba   :  { %2356 = vmatprep.subr.mxu0 %v2195_v29  ;;  %2469 = vmatprep.subr.mxu1 %v2243_v47  ;;  %v2239_v29 = vld [vmem:[#allocation7 + $0x288] sm:$0xff]  ;;  %v2039_v47 = vmul.f32 0.2, %v1242_v26  ;;  %vm1970_vm5 = vcmp.gt.f32.partialorder %v1234_v58, 0.0  ;;  %v1099_v24 = vadd.f32 %v4522_v4, %v4200_v50  ;;  %v1091_v20 = vadd.f32 %v4482_v3, %v4173_v18 }
 0x1bb   :  { %2357 = vmatpush2.msra.mxu0 %v2194_v2  ;;  %v4544_v38 = vpop.f32.mrf.mxu1  ;;  %2470 = vmatpush1.msra.mxu1 %v2242_v16  ;;  %v2236_v2 = vld [vmem:[#allocation7 + $0x270] sm:$0xff]  ;;  %v2094_v16 = vsel %vm1966_vm3, %v1228_v23, %v2030_v27  ;;  %v2233_v23 = vld [vmem:[#allocation7 + $0x258] sm:$0xff]  ;;  %v2043_v34 = vmul.f32 0.2, %v1248_v59  ;;  %vm1979_vm6 = vcmp.gt.f32.partialorder %v1248_v59, 0.0  ;;  %vm1978_vm8 = vcmp.gt.f32.partialorder %v1246_v30, 0.0 }
 0x1bc   :  { %2358 = vmatprep.subr.mxu0 %v2193_v12  ;;  %2471 = vmatprep.subr.mxu1 %v2241_v51  ;;  %v2034_v12 = vmul.f32 0.2, %v1234_v58  ;;  %v1240_v51 = vadd.f32 %v4436_v17, %v1079_v54  ;;  %v1254_v17 = vadd.f32 %v4501_v46, %v1093_v0  ;;  %v2230_v46 = vld [vmem:[#allocation7 + $0x240] sm:$0xff]  ;;  %v2042_v50 = vmul.f32 0.2, %v1246_v30 }
 0x1bd   :  { %2359 = vmatpush2.msra.mxu0 %v2192_v36  ;;  %v4548_v49 = vpop.f32.mrf.mxu0  ;;  %2472 = vmatpush1.msra.mxu1 %v2240_v63  ;;  %v2103_v36 = vsel %vm1975_vm4, %v1242_v26, %v2039_v47  ;;  %v2232_v63 = vld [vmem:[#allocation7 + $0x250] sm:$0xff]  ;;  %v1260_v18 = vadd.f32 %v4524_v5, %v1099_v24  ;;  %v1105_v3 = vadd.f32 %v4536_v53, %v4218_v6  ;;  %v2226_v6 = vld [vmem:[#allocation7 + $0x220] sm:$0xff] }
 0x1be   :  { %2360 = vmatprep.subr.mxu0 %v2191_v21  ;;  %2473 = vmatprep.subr.mxu1 %v2239_v29  ;;  %v2038_v27 = vmul.f32 0.2, %v1240_v51  ;;  %v2098_v54 = vsel %vm1970_vm5, %v1234_v58, %v2034_v12  ;;  %v2231_v29 = vld [vmem:[#allocation7 + $0x248] sm:$0xff]  ;;  %vm1974_vm7 = vcmp.gt.f32.partialorder %v1240_v51, 0.0  ;;  %v2229_v58 = vld [vmem:[#allocation7 + $0x238] sm:$0xff]  ;;  %v1097_v0 = vadd.f32 %v4508_v32, %v4191_v40 }
 0x1bf   :  { %2361 = vmatpush2.msra.mxu0 %v2190_v33  ;;  %v4555_v62 = vpop.f32.mrf.mxu1  ;;  %v1110_v55 = vpop.f32.mrf.mxu0  ;;  %2474 = vmatpush1.msra.mxu1 %v2238_v7  ;;  %v2107_v33 = vsel %vm1979_vm6, %v1248_v59, %v2043_v34  ;;  %v2047_v7 = vmul.f32 0.2, %v1254_v17  ;;  %vm1983_vm9 = vcmp.gt.f32.partialorder %v1254_v17, 0.0  ;;  %v2227_v59 = vld [vmem:[#allocation7 + $0x228] sm:$0xff]  ;;  %v795_v5 = vadd.f32 %v4240_v37, %v4128_v35 }
 0x1c0   :  { %2363 = vmatmul.mubr.f32.vlgmr.msra.gmra.mxu0 %v2094_v16  ;;  %2475 = vmatprep.subr.mxu1 %v2237_v48  ;;  %v1252_v48 = vadd.f32 %v4490_v13, %v1091_v20  ;;  %v2106_v53 = vsel %vm1978_vm8, %v1246_v30, %v2042_v50  ;;  %v1266_v40 = vadd.f32 %v4544_v38, %v1105_v3  ;;  %v2051_v12 = vmul.f32 0.2, %v1260_v18  ;;  %v2222_v38 = vld [vmem:[#allocation7 + $0x200] sm:$0xff] }
 0x1c1   :  { %2368 = vmatprep.mubr.f32.mxu0 %v2099_v44  ;;  %v4558_v11 = vpop.f32.mrf.mxu1  ;;  %2476 = vmatpush1.msra.mxu1 %v2236_v2  ;;  %v2102_v44 = vsel %vm1974_vm7, %v1240_v51, %v2038_v27  ;;  %v2225_v2 = vld [vmem:[#allocation7 + $0x218] sm:$0xff]  ;;  %v2111_v16 = vsel %vm1983_vm9, %v1254_v17, %v2047_v7  ;;  %v1111_v32 = vadd.f32 %v1110_v55, %v4236_v31  ;;  %v2224_v51 = vld [vmem:[#allocation7 + $0x210] sm:$0xff]  ;;  %vm1987_vm10 = vcmp.gt.f32.partialorder %v1260_v18, 0.0 }
 0x1c2   :  { %2477 = vmatprep.subr.mxu1 %v2235_v10  ;;  %v2046_v10 = vmul.f32 0.2, %v1252_v48  ;;  %v1258_v37 = vadd.f32 %v4520_v25, %v1097_v0  ;;  %v956_v17 = vadd.f32 %v4247_v42, %v795_v5  ;;  %v801_v31 = vadd.f32 %v4258_v52, %v4128_v35 }
 0x1c3   :  { %v4566_v21 = vpop.f32.mrf.mxu0  ;;  %2478 = vmatpush1.msra.mxu1 %v2234_v9  ;;  %v1103_v9 = vadd.f32 %v4532_v22, %v4209_v60  ;;  %vm1982_vm11 = vcmp.gt.f32.partialorder %v1252_v48, 0.0  ;;  %v1109_v25 = vadd.f32 %v4548_v49, %v4227_v19  ;;  %v2285_v22 = vld [vmem:[#allocation7 + $0x3f8] sm:$0xff]  ;;  %v2115_v55 = vsel %vm1987_vm10, %v1260_v18, %v2051_v12  ;;  %v2283_v19 = vld [vmem:[#allocation7 + $0x3e8] sm:$0xff] }
 0x1c4   :  { %2369 = vmatmul.mubr.f32.gmra.mxu0 %v2098_v54  ;;  %2479 = vmatprep.subr.mxu1 %v2233_v23  ;;  %v1272_v24 = vadd.f32 %v4558_v11, %v1111_v32  ;;  %v2055_v42 = vmul.f32 0.2, %v1266_v40  ;;  %v2050_v52 = vmul.f32 0.2, %v1258_v37  ;;  %v2110_v54 = vsel %vm1982_vm11, %v1252_v48, %v2046_v10  ;;  %v2282_v11 = vld [vmem:[#allocation7 + $0x3e0] sm:$0xff]  ;;  %v2279_v48 = vld [vmem:[#allocation7 + $0x3c8] sm:$0xff] }
 0x1c5   :  { %2374 = vmatprep.mubr.f32.mxu0 %v2103_v36  ;;  %v4568_v4 = vpop.f32.mrf.mxu1  ;;  %v1116_v26 = vpop.f32.mrf.mxu0  ;;  %2480 = vmatpush1.msra.mxu1 %v2232_v63  ;;  %v2223_v36 = vld [vmem:[#allocation7 + $0x208] sm:$0xff]  ;;  %v2284_v63 = vld [vmem:[#allocation7 + $0x3f0] sm:$0xff]  ;;  %v1264_v27 = vadd.f32 %v4534_v45, %v1103_v9  ;;  %vm1991_vm12 = vcmp.gt.f32.partialorder %v1266_v40, 0.0  ;;  %v962_v49 = vadd.f32 %v4272_v61, %v801_v31  ;;  %vm1986_vm13 = vcmp.gt.f32.partialorder %v1258_v37, 0.0  ;;  %v2274_v9 = vld [vmem:[#allocation7 + $0x3a0] sm:$0xff] }
 0x1c6   :  { %2481 = vmatprep.subr.mxu1 %v2231_v29  ;;  %v1117_v34 = vadd.f32 %v1116_v26, %v956_v17  ;;  %v807_v29 = vadd.f32 %v4279_v8, %v4128_v35  ;;  %v2281_v26 = vld [vmem:[#allocation7 + $0x3d8] sm:$0xff]  ;;  %v2059_v18 = vmul.f32 0.2, %v1272_v24  ;;  %v2280_v8 = vld [vmem:[#allocation7 + $0x3d0] sm:$0xff]  ;;  %v2114_v7 = vsel %vm1986_vm13, %v1258_v37, %v2050_v52 }
 0x1c7   :  { %v4577_v47 = vpop.f32.mrf.mxu1  ;;  %2482 = vmatpush1.msra.mxu1 %v2230_v46  ;;  %v1270_v46 = vadd.f32 %v4555_v62, %v1109_v25  ;;  %v2054_v3 = vmul.f32 0.2, %v1264_v27  ;;  %v1115_v62 = vadd.f32 %v4566_v21, %v4245_v41  ;;  %vm1995_vm14 = vcmp.gt.f32.partialorder %v1272_v24, 0.0 }
 0x1c8   :  { %2375 = vmatmul.mubr.f32.gmra.mxu0 %v2102_v44  ;;  %2483 = vmatprep.subr.mxu1 %v2229_v58  ;;  %v2119_v58 = vsel %vm1991_vm12, %v1266_v40, %v2055_v42  ;;  %v968_v44 = vadd.f32 %v4290_v15, %v807_v29  ;;  %v813_v0 = vadd.f32 %v4297_v28, %v4128_v35  ;;  %vm1990_vm15 = vcmp.gt.f32.partialorder %v1264_v27, 0.0  ;;  %v2276_v15 = vld [vmem:[#allocation7 + $0x3b0] sm:$0xff] }
 0x1c9   :  { %2380 = vmatprep.mubr.f32.mxu0 %v2107_v33  ;;  %v4582_v13 = vpop.f32.mrf.mxu0  ;;  %2484 = vmatpush1.msra.mxu1 %v2228_v43  ;;  %v1278_v33 = vadd.f32 %v4577_v47, %v1117_v34  ;;  %v2278_v47 = vld [vmem:[#allocation7 + $0x3c0] sm:$0xff]  ;;  %vm1994_vm0 = vcmp.gt.f32.partialorder %v1270_v46, 0.0  ;;  %v2123_v41 = vsel %vm1995_vm14, %v1272_v24, %v2059_v18  ;;  %v2118_v28 = vsel %vm1990_vm15, %v1264_v27, %v2054_v3  ;;  %v2265_v3 = vld [vmem:[#allocation7 + $0x358] sm:$0xff] }
 0x1ca   :  { %2485 = vmatprep.subr.mxu1 %v2227_v59  ;;  %v2058_v59 = vmul.f32 0.2, %v1270_v46  ;;  %v1121_v40 = vadd.f32 %v4582_v13, %v4263_v57  ;;  %v974_v10 = vadd.f32 %v4308_v39, %v813_v0  ;;  %v819_v37 = vadd.f32 %v4315_v56, %v4128_v35  ;;  %v2270_v24 = vld [vmem:[#allocation7 + $0x380] sm:$0xff] }
 0x1cb   :  { %v4589_v30 = vpop.f32.mrf.mxu1  ;;  %v1122_v23 = vpop.f32.mrf.mxu0  ;;  %2486 = vmatpush1.msra.mxu1 %v2226_v6  ;;  %v2277_v6 = vld [vmem:[#allocation7 + $0x3b8] sm:$0xff]  ;;  %vm1999_vm1 = vcmp.gt.f32.partialorder %v1278_v33, 0.0 }
 0x1cc   :  { %2381 = vmatmul.mubr.f32.gmra.mxu0 %v2106_v53  ;;  %2487 = vmatprep.subr.mxu1 %v2225_v2  ;;  %v1123_v61 = vadd.f32 %v1122_v23, %v962_v49  ;;  %v2063_v2 = vmul.f32 0.2, %v1278_v33  ;;  %v1282_v39 = vadd.f32 %v4589_v30, %v1121_v40  ;;  %v5049_v34 = vld [vmem:[#allocation22_spill] sm:$0xff] }
 0x1cd   :  { %2386 = vmatprep.mubr.f32.mxu0 %v2111_v16  ;;  %v1283_v60 = vpop.f32.mrf.mxu1  ;;  %2488 = vmatpush1.msra.mxu1 %v2224_v51  ;;  %v1276_v16 = vadd.f32 %v4568_v4, %v1115_v62  ;;  %v2275_v51 = vld [vmem:[#allocation7 + $0x3a8] sm:$0xff]  ;;  %v2122_v4 = vsel %vm1994_vm0, %v1270_v46, %v2058_v59  ;;  %v825_v42 = vadd.f32 %v5049_v34, %v4128_v35 }
 0x1ce   :  { %2489 = vmatprep.subr.mxu1 %v2223_v36  ;;  %v1284_v21 = vadd.f32 %v1283_v60, %v1123_v61  ;;  %v2273_v36 = vld [vmem:[#allocation7 + $0x398] sm:$0xff]  ;;  %v2127_v57 = vsel %vm1999_vm1, %v1278_v33, %v2063_v2  ;;  %v2066_v29 = vmul.f32 0.2, %v1282_v39  ;;  %vm2002_vm5 = vcmp.gt.f32.partialorder %v1282_v39, 0.0  ;;  %v5051_v33 = vld [vmem:[#allocation24_spill] sm:$0xff]  ;;  %v2262_v2 = vld [vmem:[#allocation7 + $0x340] sm:$0xff] }
 0x1cf   :  { %v4600_v20 = vpop.f32.mrf.mxu0  ;;  %2490 = vmatpush1.msra.mxu1 %v2222_v38  ;;  %v2272_v38 = vld [vmem:[#allocation7 + $0x390] sm:$0xff]  ;;  %v2062_v25 = vmul.f32 0.2, %v1276_v16  ;;  %vm1998_vm3 = vcmp.gt.f32.partialorder %v1276_v16, 0.0  ;;  %v986_v61 = vadd.f32 %v5051_v33, %v825_v42 }
 0x1d0   :  { %2387 = vmatmul.mubr.f32.gmra.mxu0 %v2110_v54  ;;  %2491 = vmatprep.subr.mxu1 %v2285_v22  ;;  %v2067_v31 = vmul.f32 0.2, %v1284_v21  ;;  %v1127_v56 = vadd.f32 %v4600_v20, %v4288_v14  ;;  %vm2003_vm2 = vcmp.gt.f32.partialorder %v1284_v21, 0.0  ;;  %v2271_v22 = vld [vmem:[#allocation7 + $0x388] sm:$0xff]  ;;  %v2269_v14 = vld [vmem:[#allocation7 + $0x378] sm:$0xff]  ;;  %v2256_v42 = vld [vmem:[#allocation7 + $0x310] sm:$0xff] }
 0x1d1   :  { %2392 = vmatprep.mubr.f32.mxu0 %v2115_v55  ;;  %v4606_v45 = vpop.f32.mrf.mxu1  ;;  %v1128_v50 = vpop.f32.mrf.mxu0  ;;  %2492 = vmatpush2.msra.mxu1 %v2284_v63  ;;  %v980_v55 = vadd.f32 %v4326_v1, %v819_v37  ;;  %v5050_v63 = vld [vmem:[#allocation20_spill] sm:$0xff]  ;;  %v2126_v46 = vsel %vm1998_vm3, %v1276_v16, %v2062_v25  ;;  %v5060_v33 = vld [vmem:[#allocation29_spill] sm:$0xff] }
 0x1d2   :  { %2493 = vmatprep.subr.mxu1 %v2283_v19  ;;  %v1129_v53 = vadd.f32 %v1128_v50, %v968_v44  ;;  %v2131_v54 = vsel %vm2003_vm2, %v1284_v21, %v2067_v31  ;;  %v2268_v1 = vld [vmem:[#allocation7 + $0x370] sm:$0xff] }
 0x1d3   :  { %v1289_v43 = vpop.f32.mrf.mxu1  ;;  %2494 = vmatpush2.msra.mxu1 %v2282_v11  ;;  %v1288_v11 = vadd.f32 %v4606_v45, %v1127_v56  ;;  %v2264_v44 = vld [vmem:[#allocation7 + $0x350] sm:$0xff] }
 0x1d4   :  { %2393 = vmatmul.mubr.f32.gmra.mxu0 %v2114_v7  ;;  %2495 = vmatprep.subr.mxu1 %v2281_v26  ;;  %v1290_v13 = vadd.f32 %v1289_v43, %v1129_v53  ;;  %v2267_v26 = vld [vmem:[#allocation7 + $0x368] sm:$0xff]  ;;  %v5052_v7 = vld [vmem:[#allocation21_spill] sm:$0xff] }
 0x1d5   :  { %2398 = vmatprep.mubr.f32.mxu0 %v2119_v58  ;;  %v1132_v5 = vpop.f32.mrf.mxu0  ;;  %2496 = vmatpush2.msra.mxu1 %v2280_v8  ;;  %v2266_v58 = vld [vmem:[#allocation7 + $0x360] sm:$0xff]  ;;  %v2070_v0 = vmul.f32 0.2, %v1288_v11  ;;  %vm2006_vm7 = vcmp.gt.f32.partialorder %v1288_v11, 0.0  ;;  %v5056_v31 = vld [vmem:[#allocation28_spill] sm:$0xff] }
 0x1d6   :  { %2497 = vmatprep.subr.mxu1 %v2279_v48  ;;  %v1133_v52 = vadd.f32 %v1132_v5, %v5050_v63  ;;  %v2071_v49 = vmul.f32 0.2, %v1290_v13  ;;  %vm2007_vm4 = vcmp.gt.f32.partialorder %v1290_v13, 0.0 }
 0x1d7   :  { %v1293_v32 = vpop.f32.mrf.mxu1  ;;  %v1134_v12 = vpop.f32.mrf.mxu0  ;;  %2498 = vmatpush2.msra.mxu1 %v2278_v47  ;;  %v2130_v47 = vsel %vm2002_vm5, %v1282_v39, %v2066_v29  ;;  %v2134_v37 = vsel %vm2006_vm7, %v1288_v11, %v2070_v0 }
 0x1d8   :  { %2399 = vmatmul.mubr.f32.gmra.mxu0 %v2118_v28  ;;  %2499 = vmatprep.subr.mxu1 %v2277_v6  ;;  %v1135_v17 = vadd.f32 %v1134_v12, %v974_v10  ;;  %v1294_v18 = vadd.f32 %v1293_v32, %v1133_v52  ;;  %v2135_v45 = vsel %vm2007_vm4, %v1290_v13, %v2071_v49  ;;  %v2263_v6 = vld [vmem:[#allocation7 + $0x348] sm:$0xff]  ;;  %v2261_v28 = vld [vmem:[#allocation7 + $0x338] sm:$0xff]  ;;  %v2260_v10 = vld [vmem:[#allocation7 + $0x330] sm:$0xff] }
 0x1d9   :  { %2404 = vmatprep.mubr.f32.mxu0 %v2123_v41  ;;  %v1295_v23 = vpop.f32.mrf.mxu1  ;;  %2500 = vmatpush2.msra.mxu1 %v2276_v15  ;;  %v5053_v41 = vld [vmem:[#allocation25_spill] sm:$0xff]  ;;  %v5057_v52 = vld [vmem:[#allocation26_spill] sm:$0xff] }
 0x1da   :  { %2501 = vmatprep.subr.mxu1 %v2275_v51  ;;  %v1296_v20 = vadd.f32 %v1295_v23, %v1135_v17  ;;  %v831_v21 = vadd.f32 %v5053_v41, %v4128_v35  ;;  %vm2010_vm8 = vcmp.gt.f32.partialorder %v1294_v18, 0.0  ;;  %v2074_v15 = vmul.f32 0.2, %v1294_v18  ;;  %v2258_v17 = vld [vmem:[#allocation7 + $0x320] sm:$0xff] }
 0x1db   :  { %v1138_v60 = vpop.f32.mrf.mxu0  ;;  %2502 = vmatpush2.msra.mxu1 %v2274_v9  ;;  %v5054_v9 = vld [vmem:[#allocation23_spill] sm:$0xff] }
 0x1dc   :  { %2405 = vmatmul.mubr.f32.gmra.mxu0 %v2122_v4  ;;  %2503 = vmatprep.subr.mxu1 %v2273_v36  ;;  %v1139_v62 = vadd.f32 %v1138_v60, %v5052_v7  ;;  %v2075_v48 = vmul.f32 0.2, %v1296_v20  ;;  %vm2011_vm6 = vcmp.gt.f32.partialorder %v1296_v20, 0.0  ;;  %v2259_v36 = vld [vmem:[#allocation7 + $0x328] sm:$0xff]  ;;  %v2138_v25 = vsel %vm2010_vm8, %v1294_v18, %v2074_v15  ;;  %v2257_v60 = vld [vmem:[#allocation7 + $0x318] sm:$0xff] }
 0x1dd   :  { %2410 = vmatprep.mubr.f32.mxu0 %v2127_v57  ;;  %v1299_v30 = vpop.f32.mrf.mxu1  ;;  %v1140_v27 = vpop.f32.mrf.mxu0  ;;  %2504 = vmatpush2.msra.mxu1 %v2272_v38  ;;  %v5055_v57 = vld [vmem:[#allocation27_spill] sm:$0xff]  ;;  %v837_v38 = vadd.f32 %v5056_v31, %v4128_v35  ;;  %v4653_v7 = vld [vmem:[#allocation5] sm:$0xf] }
 0x1de   :  { %v1141_v19 = vadd.f32 %v1140_v27, %v980_v55  ;;  %2505 = vmatprep.subr.mxu1 %v2271_v22  ;;  %v1300_v40 = vadd.f32 %v1299_v30, %v1139_v62  ;;  %v2139_v32 = vsel %vm2011_vm6, %v1296_v20, %v2075_v48  ;;  %v992_v13 = vadd.f32 %v5055_v57, %v831_v21  ;;  %v2255_v35 = vld [vmem:[#allocation7 + $0x308] sm:$0xff] }
 0x1df   :  { %v1301_v50 = vpop.f32.mrf.mxu1  ;;  %2506 = vmatpush2.msra.mxu1 %v2270_v24 }
 0x1e0   :  { %2411 = vmatmul.mubr.f32.gmra.mxu0 %v2126_v46  ;;  %2507 = vmatprep.subr.mxu1 %v2269_v14  ;;  %v1302_v43 = vadd.f32 %v1301_v50, %v1141_v19  ;;  %v2078_v22 = vmul.f32 0.2, %v1300_v40  ;;  %vm2014_vm10 = vcmp.gt.f32.partialorder %v1300_v40, 0.0  ;;  %v2254_v19 = vld [vmem:[#allocation7 + $0x300] sm:$0xff] }
 0x1e1   :  { %2416 = vmatprep.mubr.f32.mxu0 %v2131_v54  ;;  %v1144_v8 = vpop.f32.mrf.mxu0  ;;  %2508 = vmatpush2.msra.mxu1 %v2268_v1  ;;  %v5058_v54 = vld [vmem:[#allocation19_spill] sm:$0xff]  ;;  %v5059_v1 = vld [vmem:[#allocation30_spill] sm:$0xff] }
 0x1e2   :  { %2509 = vmatprep.subr.mxu1 %v2267_v26  ;;  %v2079_v51 = vmul.f32 0.2, %v1302_v43  ;;  %v1145_v4 = vadd.f32 %v1144_v8, %v5054_v9  ;;  %vm2015_vm9 = vcmp.gt.f32.partialorder %v1302_v43, 0.0  ;;  %v619_v20 = vsub.s32 2, %v5058_v54 }
 0x1e3   :  { %v1305_v59 = vpop.f32.mrf.mxu1  ;;  %v1146_v5 = vpop.f32.mrf.mxu0  ;;  %2510 = vmatpush2.msra.mxu1 %v2266_v58  ;;  %v998_v29 = vadd.f32 %v5059_v1, %v837_v38  ;;  %v2142_v11 = vsel %vm2014_vm10, %v1300_v40, %v2078_v22 }
 0x1e4   :  { %2417 = vmatmul.mubr.f32.gmra.mxu0 %v2130_v47  ;;  %v1147_v53 = vadd.f32 %v1146_v5, %v986_v61  ;;  %2511 = vmatprep.subr.mxu1 %v2265_v3  ;;  %v2143_v24 = vsel %vm2015_vm9, %v1302_v43, %v2079_v51  ;;  %v1306_v63 = vadd.f32 %v1305_v59, %v1145_v4 }
 0x1e5   :  { %2422 = vmatprep.mubr.f32.mxu0 %v2135_v45  ;;  %v1307_v16 = vpop.f32.mrf.mxu1  ;;  %2512 = vmatpush2.msra.mxu1 %v2264_v44  ;;  %v4656_v62 = vrot.slane %v4653_v7, %v619_v20 }
 0x1e6   :  { %v1308_v12 = vadd.f32 %v1307_v16, %v1147_v53  ;;  %2513 = vmatprep.subr.mxu1 %v2263_v6  ;;  %v2082_v26 = vmul.f32 0.2, %v1306_v63  ;;  %vm2018_vm13 = vcmp.gt.f32.partialorder %v1306_v63, 0.0 }
 0x1e7   :  { %v1150_v23 = vpop.f32.mrf.mxu0  ;;  %2514 = vmatpush2.msra.mxu1 %v2262_v2 }
 0x1e8   :  { %2423 = vmatmul.mubr.f32.gmra.mxu0 %v2134_v37  ;;  %2515 = vmatprep.subr.mxu1 %v2261_v28  ;;  %v2083_v34 = vmul.f32 0.2, %v1308_v12  ;;  %v1151_v30 = vadd.f32 %v1150_v23, %v5057_v52  ;;  %vm2019_vm11 = vcmp.gt.f32.partialorder %v1308_v12, 0.0  ;;  %v2146_v47 = vsel %vm2018_vm13, %v1306_v63, %v2082_v26 }
 0x1e9   :  { %2428 = vmatprep.mubr.f32.mxu0 %v2139_v32  ;;  %v1311_v39 = vpop.f32.mrf.mxu1  ;;  %v1152_v56 = vpop.f32.mrf.mxu0  ;;  %2516 = vmatpush2.msra.mxu1 %v2260_v10 }
 0x1ea   :  { %v1153_v55 = vadd.f32 %v1152_v56, %v992_v13  ;;  %2517 = vmatprep.subr.mxu1 %v2259_v36  ;;  %v2147_v46 = vsel %vm2019_vm11, %v1308_v12, %v2083_v34  ;;  %v1312_v58 = vadd.f32 %v1311_v39, %v1151_v30 }
 0x1eb   :  { %v1313_v27 = vpop.f32.mrf.mxu1  ;;  %2518 = vmatpush2.msra.mxu1 %v2258_v17 }
 0x1ec   :  { %2429 = vmatmul.mubr.f32.gmra.mxu0 %v2138_v25  ;;  %v1314_v14 = vadd.f32 %v1313_v27, %v1153_v55  ;;  %2519 = vmatprep.subr.mxu1 %v2257_v60  ;;  %v2086_v44 = vmul.f32 0.2, %v1312_v58  ;;  %vm2022_vm14 = vcmp.gt.f32.partialorder %v1312_v58, 0.0 }
 0x1ed   :  { %2434 = vmatprep.mubr.f32.mxu0 %v2143_v24  ;;  %v1156_v49 = vpop.f32.mrf.mxu0  ;;  %2520 = vmatpush2.msra.mxu1 %v2256_v42 }
 0x1ee   :  { %v2087_v50 = vmul.f32 0.2, %v1314_v14  ;;  %2521 = vmatprep.subr.mxu1 %v2255_v35  ;;  %v1157_v61 = vadd.f32 %v1156_v49, %v5060_v33  ;;  %vm2023_vm12 = vcmp.gt.f32.partialorder %v1314_v14, 0.0  ;;  %v2150_v28 = vsel %vm2022_vm14, %v1312_v58, %v2086_v44 }
 0x1ef   :  { %v1317_v18 = vpop.f32.mrf.mxu1  ;;  %v1158_v8 = vpop.f32.mrf.mxu0  ;;  %2522 = vmatpush2.msra.mxu1 %v2254_v19 }
 0x1f0   :  { %2435 = vmatmul.mubr.f32.gmra.mxu0 %v2142_v11  ;;  %v1159_v3 = vadd.f32 %v1158_v8, %v998_v29  ;;  %v2151_v48 = vsel %vm2023_vm12, %v1314_v14, %v2087_v50  ;;  %v1318_v0 = vadd.f32 %v1317_v18, %v1157_v61 }
 0x1f1   :  { %2440 = vmatprep.mubr.f32.mxu0 %v2147_v46  ;;  %v1319_v45 = vpop.f32.mrf.mxu1 }
 0x1f2   :  { %v1320_v43 = vadd.f32 %v1319_v45, %v1159_v3  ;;  %v2090_v15 = vmul.f32 0.2, %v1318_v0  ;;  %vm2026_vm0 = vcmp.gt.f32.partialorder %v1318_v0, 0.0 }
 0x1f3   :  { %v1388_v59 = vpop.f32.mrf.mxu0 }
 0x1f4   :  { %2441 = vmatmul.mubr.f32.gmra.mxu0 %v2146_v47  ;;  %v1389_v5 = vadd.f32 %v1388_v59, %v4656_v62  ;;  %vm2027_vm15 = vcmp.gt.f32.partialorder %v1320_v43, 0.0  ;;  %v2091_v6 = vmul.f32 0.2, %v1320_v43  ;;  %v2154_v37 = vsel %vm2026_vm0, %v1318_v0, %v2090_v15 }
 0x1f5   :  { %v1549_v41 = vpop.f32.mrf.mxu1  ;;  %v4659_v21 = vpop.f32.mrf.mxu0  ;;  %2446 = vmatprep.mubr.f32.mxu0 %v2151_v48 }
 0x1f6   :  { %v4661_v53 = vadd.f32 %v1549_v41, %v1389_v5  ;;  %v2155_v2 = vsel %vm2027_vm15, %v1320_v43, %v2091_v6 }
 0x1f7   :  { %v4663_v16 = vpop.f32.mrf.mxu1 }
 0x1f8   :  { %2447 = vmatmul.mubr.f32.gmra.mxu0 %v2150_v28  ;;  %v1394_v40 = vpop.f32.mrf.mxu0 }
 0x1f9   :  { %v1395_v32 = vadd.f32 %v1394_v40, %v4656_v62  ;;  %2452 = vmatprep.mubr.f32.mxu0 %v2155_v2 }
 0x1fa   :  { %v1555_v12 = vpop.f32.mrf.mxu1  ;;  %v4666_v51 = vpop.f32.mrf.mxu0 }
 0x1fb   :  { %v4668_v10 = vadd.f32 %v1555_v12, %v1395_v32 }
 0x1fc   :  { %v4670_v9 = vpop.f32.mrf.mxu1  ;;  %2453 = vmatmul.mubr.f32.gmra.mxu0 %v2154_v37 }
 0x1fd   :  { %v1400_v4 = vpop.f32.mrf.mxu0 }
 0x1fe   :  { %v1401_v23 = vadd.f32 %v1400_v4, %v4656_v62  ;;  %v1561_v36 = vpop.f32.mrf.mxu1 }
 0x1ff   :  { %v4673_v57 = vpop.f32.mrf.mxu0 }
 0x200   :  { %v4675_v13 = vadd.f32 %v1561_v36, %v1401_v23  ;;  %v4677_v17 = vpop.f32.mrf.mxu1 }
 0x201   :  { %v1406_v31 = vpop.f32.mrf.mxu0 }
 0x202   :  { %v1407_v38 = vadd.f32 %v1406_v31, %v4656_v62  ;;  %v1567_v25 = vpop.f32.mrf.mxu1 }
 0x203   :  { %v4680_v39 = vpop.f32.mrf.mxu0 }
 0x204   :  { %v4682_v56 = vadd.f32 %v1567_v25, %v1407_v38  ;;  %v4684_v60 = vpop.f32.mrf.mxu1 }
 0x205   :  { %v1412_v22 = vpop.f32.mrf.mxu0 }
 0x206   :  { %v1413_v55 = vadd.f32 %v1412_v22, %v4656_v62  ;;  %v1573_v24 = vpop.f32.mrf.mxu1 }
 0x207   :  { %v4687_v34 = vpop.f32.mrf.mxu0 }
 0x208   :  { %v4689_v42 = vadd.f32 %v1573_v24, %v1413_v55  ;;  %v4691_v63 = vpop.f32.mrf.mxu1 }
 0x209   :  { %v1418_v52 = vpop.f32.mrf.mxu0 }
 0x20a   :  { %v1419_v30 = vadd.f32 %v1418_v52, %v4656_v62  ;;  %v1579_v27 = vpop.f32.mrf.mxu1 }
 0x20b   :  { %v4694_v35 = vpop.f32.mrf.mxu0 }
 0x20c   :  { %v4696_v14 = vadd.f32 %v1579_v27, %v1419_v30  ;;  %v4698_v20 = vpop.f32.mrf.mxu1 }
 0x20d   :  { %v1424_v19 = vpop.f32.mrf.mxu0 }
 0x20e   :  { %v1425_v49 = vadd.f32 %v1424_v19, %v4656_v62  ;;  %v1585_v1 = vpop.f32.mrf.mxu1  ;;  %v623_v19 = vsub.s32 3, %v5058_v54 }
 0x20f   :  { %v4701_v29 = vpop.f32.mrf.mxu0 }
 0x210   :  { %v4703_v11 = vadd.f32 %v1585_v1, %v1425_v49  ;;  %v4705_v46 = vpop.f32.mrf.mxu1 }
 0x211   :  { %v1430_v50 = vpop.f32.mrf.mxu0 }
 0x212   :  { %v1431_v26 = vadd.f32 %v1430_v50, %v4656_v62  ;;  %v1591_v58 = vpop.f32.mrf.mxu1 }
 0x213   :  { %v4708_v33 = vpop.f32.mrf.mxu0 }
 0x214   :  { %v4710_v61 = vadd.f32 %v1591_v58, %v1431_v26  ;;  %v4712_v18 = vpop.f32.mrf.mxu1 }
 0x215   :  { %v1436_v8 = vpop.f32.mrf.mxu0 }
 0x216   :  { %v1437_v3 = vadd.f32 %v1436_v8, %v4656_v62  ;;  %v1597_v45 = vpop.f32.mrf.mxu1 }
 0x217   :  { %v4715_v43 = vpop.f32.mrf.mxu0 }
 0x218   :  { %v4717_v48 = vadd.f32 %v1597_v45, %v1437_v3  ;;  %v4719_v44 = vpop.f32.mrf.mxu1  ;;  %v4758_v3 = vrot.slane %v4653_v7, %v623_v19 }
 0x219   :  { %v1442_v0 = vpop.f32.mrf.mxu0 }
 0x21a   :  { %v1443_v47 = vadd.f32 %v1442_v0, %v4656_v62 }
 0x21b   :  { %v1603_v59 = vpop.f32.mrf.mxu1  ;;  %v4722_v5 = vpop.f32.mrf.mxu0 }
 0x21c   :  { %v4724_v6 = vadd.f32 %v1603_v59, %v1443_v47 }
 0x21d   :  { %v4726_v41 = vpop.f32.mrf.mxu1 }
 0x21e   :  { %v1448_v2 = vpop.f32.mrf.mxu0 }
 0x21f   :  { %v1449_v15 = vadd.f32 %v1448_v2, %v4656_v62  ;;  %v1609_v28 = vpop.f32.mrf.mxu1 }
 0x220   :  { %v4729_v40 = vpop.f32.mrf.mxu0 }
 0x221   :  { %v4731_v32 = vadd.f32 %v1609_v28, %v1449_v15  ;;  %v4733_v12 = vpop.f32.mrf.mxu1  ;;  %v1391_v28 = vadd.f32 %v4659_v21, %v4758_v3 }
 0x222   :  { %v1454_v37 = vpop.f32.mrf.mxu0 }
 0x223   :  { %v1455_v4 = vadd.f32 %v1454_v37, %v4656_v62  ;;  %v1615_v23 = vpop.f32.mrf.mxu1 }
 0x224   :  { %v4736_v36 = vpop.f32.mrf.mxu0 }
 0x225   :  { %v4738_v31 = vadd.f32 %v1615_v23, %v1455_v4  ;;  %v4740_v38 = vpop.f32.mrf.mxu1 }
 0x226   :  { %v1460_v25 = vpop.f32.mrf.mxu0 }
 0x227   :  { %v1461_v22 = vadd.f32 %v1460_v25, %v4656_v62  ;;  %v1621_v55 = vpop.f32.mrf.mxu1 }
 0x228   :  { %v4743_v24 = vpop.f32.mrf.mxu0 }
 0x229   :  { %v4745_v52 = vadd.f32 %v1621_v55, %v1461_v22  ;;  %v4747_v30 = vpop.f32.mrf.mxu1  ;;  %v1552_v55 = vadd.f32 %v4663_v16, %v1391_v28 }
 0x22a   :  { %v1466_v27 = vpop.f32.mrf.mxu0 }
 0x22b   :  { %v1467_v49 = vadd.f32 %v1466_v27, %v4656_v62  ;;  %v1627_v1 = vpop.f32.mrf.mxu1  ;;  %v1397_v27 = vadd.f32 %v4666_v51, %v4758_v3 }
 0x22c   :  { %v4751_v50 = vpop.f32.mrf.mxu0 }
 0x22d   :  { %v4753_v26 = vadd.f32 %v1627_v1, %v1467_v49  ;;  %v4755_v58 = vpop.f32.mrf.mxu1 }
 0x22e   :  { %v1472_v8 = vpop.f32.mrf.mxu0 }
 0x22f   :  { %v1473_v45 = vadd.f32 %v1472_v8, %v4656_v62  ;;  %v1633_v0 = vpop.f32.mrf.mxu1 }
 0x230   :  { %v4761_v47 = vpop.f32.mrf.mxu0 }
 0x231   :  { %v4763_v59 = vadd.f32 %v1633_v0, %v1473_v45  ;;  %v4765_v2 = vpop.f32.mrf.mxu1  ;;  %v1558_v0 = vadd.f32 %v4670_v9, %v1397_v27  ;;  %v1409_v9 = vadd.f32 %v4680_v39, %v4758_v3 }
 0x232   :  { %v1478_v15 = vpop.f32.mrf.mxu0 }
 0x233   :  { %v1479_v37 = vadd.f32 %v1478_v15, %v4656_v62  ;;  %v1639_v4 = vpop.f32.mrf.mxu1  ;;  %v1403_v15 = vadd.f32 %v4673_v57, %v4758_v3 }
 0x234   :  { %v4770_v23 = vpop.f32.mrf.mxu0 }
 0x235   :  { %v4772_v7 = vadd.f32 %v1639_v4, %v1479_v37  ;;  %v4774_v25 = vpop.f32.mrf.mxu1 }
 0x236   :  { %v1710_v22 = vpop.f32.mrf.mxu0 }
 0x237   :  { %5061 = vst [vmem:[#allocation22_spill] sm:$0xff] %v4772_v7  ;;  %v1711_v19 = vadd.f32 %v1710_v22, %v4661_v53  ;;  %v1871_v49 = vpop.f32.mrf.mxu1 }
 0x238   :  { %v1712_v1 = vpop.f32.mrf.mxu0 }
 0x239   :  { %v1872_v21 = vadd.f32 %v1871_v49, %v1711_v19  ;;  %v1713_v8 = vadd.f32 %v1712_v1, %v1552_v55  ;;  %v1873_v62 = vpop.f32.mrf.mxu1  ;;  %v1564_v55 = vadd.f32 %v4677_v17, %v1403_v15  ;;  %v2731_v1 = vld [vmem:[#allocation10 + $0x78] sm:$0xff] }
 0x23a   :  { %v1716_v45 = vpop.f32.mrf.mxu0 }
 0x23b   :  { %v1874_v37 = vadd.f32 %v1873_v62, %v1713_v8  ;;  %v1717_v4 = vadd.f32 %v1716_v45, %v4668_v10  ;;  %v1877_v16 = vpop.f32.mrf.mxu1  ;;  %v2032_v28 = vmul.f32 0.2, %v1872_v21  ;;  %vm1968_vm1 = vcmp.gt.f32.partialorder %v1872_v21, 0.0  ;;  %v2747_v10 = vld [vmem:[#allocation10 + $0xf8] sm:$0xff]  ;;  %v2746_v8 = vld [vmem:[#allocation10 + $0xf0] sm:$0xff] }
 0x23c   :  { %v1718_v54 = vpop.f32.mrf.mxu0  ;;  %3081 = vmatprep.subr.mxu0 %v2747_v10  ;;  %3161 = vmatprep.subr.mxu1 %v2747_v10 }
 0x23d   :  { %v2033_v51 = vmul.f32 0.2, %v1874_v37  ;;  %v1878_v53 = vadd.f32 %v1877_v16, %v1717_v4  ;;  %v1719_v22 = vadd.f32 %v1718_v54, %v1558_v0  ;;  %v1879_v7 = vpop.f32.mrf.mxu1  ;;  %vm1969_vm2 = vcmp.gt.f32.partialorder %v1874_v37, 0.0  ;;  %v2730_v0 = vld [vmem:[#allocation10 + $0x70] sm:$0xff]  ;;  %3082 = vmatpush3.msra.mxu0 %v2731_v1 }
 0x23e   :  { %v1722_v19 = vpop.f32.mrf.mxu0  ;;  %v2096_v62 = vsel %vm1968_vm1, %v1872_v21, %v2032_v28  ;;  %3083 = vmatprep.subr.mxu0 %v2746_v8  ;;  %v1570_v28 = vadd.f32 %v4684_v60, %v1409_v9 }
 0x23f   :  { %v1880_v27 = vadd.f32 %v1879_v7, %v1719_v22  ;;  %v1723_v57 = vadd.f32 %v1722_v19, %v4675_v13  ;;  %v1883_v49 = vpop.f32.mrf.mxu1  ;;  %vm1972_vm3 = vcmp.gt.f32.partialorder %v1878_v53, 0.0  ;;  %v2036_v45 = vmul.f32 0.2, %v1878_v53  ;;  %v2745_v13 = vld [vmem:[#allocation10 + $0xe8] sm:$0xff]  ;;  %3084 = vmatpush3.msra.mxu0 %v2730_v0 }
 0x240   :  { %v1724_v4 = vpop.f32.mrf.mxu0  ;;  %v2097_v54 = vsel %vm1969_vm2, %v1874_v37, %v2033_v51  ;;  %v1415_v7 = vadd.f32 %v4687_v34, %v4758_v3  ;;  %v2729_v19 = vld [vmem:[#allocation10 + $0x68] sm:$0xff]  ;;  %3085 = vmatprep.subr.mxu0 %v2745_v13  ;;  %v2744_v34 = vld [vmem:[#allocation10 + $0xe0] sm:$0xff] }
 0x241   :  { %v2037_v16 = vmul.f32 0.2, %v1880_v27  ;;  %v1884_v17 = vadd.f32 %v1883_v49, %v1723_v57  ;;  %v1725_v15 = vadd.f32 %v1724_v4, %v1564_v55  ;;  %2523 = vmatprep.mubr.f32.mxu1 %v2097_v54  ;;  %v1885_v39 = vpop.f32.mrf.mxu1  ;;  %vm1973_vm4 = vcmp.gt.f32.partialorder %v1880_v27, 0.0  ;;  %3086 = vmatpush3.msra.mxu0 %v2729_v19 }
 0x242   :  { %2524 = vmatmul.mubr.f32.vlgmr.msra.gmra.mxu1 %v2096_v62  ;;  %v1728_v21 = vpop.f32.mrf.mxu0  ;;  %v2100_v10 = vsel %vm1972_vm3, %v1878_v53, %v2036_v45  ;;  %v1421_v53 = vadd.f32 %v4694_v35, %v4758_v3  ;;  %3087 = vmatprep.subr.mxu0 %v2744_v34 }
 0x243   :  { %v1886_v37 = vadd.f32 %v1885_v39, %v1725_v15  ;;  %v1729_v51 = vadd.f32 %v1728_v21, %v4682_v56  ;;  %v1889_v22 = vpop.f32.mrf.mxu1  ;;  %3177 = vmatpush3.msra.mxu1 %v2731_v1  ;;  %vm1976_vm5 = vcmp.gt.f32.partialorder %v1884_v17, 0.0  ;;  %v2040_v55 = vmul.f32 0.2, %v1884_v17  ;;  %v2728_v56 = vld [vmem:[#allocation10 + $0x60] sm:$0xff]  ;;  %v2743_v15 = vld [vmem:[#allocation10 + $0xd8] sm:$0xff]  ;;  %v4802_v21 = vld [vmem:[#allocation10 + $0xd0] sm:$0xff] }
 0x244   :  { %v1730_v57 = vpop.f32.mrf.mxu0  ;;  %v2101_v49 = vsel %vm1973_vm4, %v1880_v27, %v2037_v16  ;;  %3162 = vmatprep.subr.mxu1 %v2746_v8  ;;  %v1576_v1 = vadd.f32 %v4691_v63, %v1415_v7  ;;  %v4798_v16 = vld [vmem:[#allocation10 + $0x58] sm:$0xff]  ;;  %3088 = vmatpush3.msra.mxu0 %v2728_v56 }
 0x245   :  { %v2041_v62 = vmul.f32 0.2, %v1886_v37  ;;  %v1890_v4 = vadd.f32 %v1889_v22, %v1729_v51  ;;  %v1731_v60 = vadd.f32 %v1730_v57, %v1570_v28  ;;  %2529 = vmatprep.mubr.f32.mxu1 %v2101_v49  ;;  %v1891_v9 = vpop.f32.mrf.mxu1  ;;  %vm1977_vm6 = vcmp.gt.f32.partialorder %v1886_v37, 0.0  ;;  %3178 = vmatpush3.msra.mxu1 %v2730_v0 }
 0x246   :  { %2530 = vmatmul.mubr.f32.gmra.mxu1 %v2100_v10  ;;  %v1734_v54 = vpop.f32.mrf.mxu0  ;;  %3163 = vmatprep.subr.mxu1 %v2745_v13  ;;  %v2104_v7 = vsel %vm1976_vm5, %v1884_v17, %v2040_v55  ;;  %v4804_v13 = vld [vmem:[#allocation10 + $0x50] sm:$0xff]  ;;  %v1427_v22 = vadd.f32 %v4701_v29, %v4758_v3  ;;  %v4809_v17 = vld [vmem:[#allocation10 + $0xc8] sm:$0xff] }
 0x247   :  { %v1892_v27 = vadd.f32 %v1891_v9, %v1731_v60  ;;  %v1735_v8 = vadd.f32 %v1734_v54, %v4689_v42  ;;  %v1895_v45 = vpop.f32.mrf.mxu1  ;;  %vm1980_vm7 = vcmp.gt.f32.partialorder %v1890_v4, 0.0  ;;  %v2044_v0 = vmul.f32 0.2, %v1890_v4  ;;  %3179 = vmatpush3.msra.mxu1 %v2729_v19  ;;  %3089 = vmatprep.subr.mxu0 %v2743_v15  ;;  %v4814_v10 = vld [vmem:[#allocation10 + $0x48] sm:$0xff] }
 0x248   :  { %v1736_v39 = vpop.f32.mrf.mxu0  ;;  %v2105_v63 = vsel %vm1977_vm6, %v1886_v37, %v2041_v62  ;;  %3090 = vmatpush3.msra.mxu0 %v4798_v16  ;;  %v1582_v19 = vadd.f32 %v4698_v20, %v1421_v53  ;;  %3164 = vmatprep.subr.mxu1 %v2744_v34  ;;  %v4819_v20 = vld [vmem:[#allocation10 + $0xc0] sm:$0xff] }
 0x249   :  { %v2045_v35 = vmul.f32 0.2, %v1892_v27  ;;  %v1896_v28 = vadd.f32 %v1895_v45, %v1735_v8  ;;  %v1737_v51 = vadd.f32 %v1736_v39, %v1576_v1  ;;  %2535 = vmatprep.mubr.f32.mxu1 %v2105_v63  ;;  %v1897_v42 = vpop.f32.mrf.mxu1  ;;  %vm1981_vm8 = vcmp.gt.f32.partialorder %v1892_v27, 0.0  ;;  %3091 = vmatprep.subr.mxu0 %v4802_v21  ;;  %v4822_v34 = vld [vmem:[#allocation10 + $0x40] sm:$0xff]  ;;  %v4832_v63 = vld [vmem:[#allocation10 + $0x38] sm:$0xff] }
 0x24a   :  { %2536 = vmatmul.mubr.f32.gmra.mxu1 %v2104_v7  ;;  %v1740_v37 = vpop.f32.mrf.mxu0  ;;  %v2108_v9 = vsel %vm1980_vm7, %v1890_v4, %v2044_v0  ;;  %3092 = vmatpush3.msra.mxu0 %v4804_v13  ;;  %v1588_v8 = vadd.f32 %v4705_v46, %v1427_v22  ;;  %v4826_v4 = vld [vmem:[#allocation10 + $0xb8] sm:$0xff] }
 0x24b   :  { %v1898_v55 = vadd.f32 %v1897_v42, %v1737_v51  ;;  %v1741_v57 = vadd.f32 %v1740_v37, %v4696_v14  ;;  %v1901_v49 = vpop.f32.mrf.mxu1  ;;  %vm1984_vm9 = vcmp.gt.f32.partialorder %v1896_v28, 0.0  ;;  %v2048_v62 = vmul.f32 0.2, %v1896_v28  ;;  %3180 = vmatpush3.msra.mxu1 %v2728_v56  ;;  %3093 = vmatprep.subr.mxu0 %v4809_v17  ;;  %v4841_v37 = vld [vmem:[#allocation10 + $0x30] sm:$0xff] }
 0x24c   :  { %v1742_v29 = vpop.f32.mrf.mxu0  ;;  %v2109_v60 = vsel %vm1981_vm8, %v1892_v27, %v2045_v35  ;;  %3094 = vmatpush3.msra.mxu0 %v4814_v10  ;;  %v1433_v56 = vadd.f32 %v4708_v33, %v4758_v3  ;;  %3165 = vmatprep.subr.mxu1 %v2743_v15  ;;  %v4838_v33 = vld [vmem:[#allocation10 + $0xb0] sm:$0xff] }
 0x24d   :  { %v2049_v1 = vmul.f32 0.2, %v1898_v55  ;;  %v1902_v14 = vadd.f32 %v1901_v49, %v1741_v57  ;;  %v1743_v54 = vadd.f32 %v1742_v29, %v1582_v19  ;;  %2541 = vmatprep.mubr.f32.mxu1 %v2109_v60  ;;  %v1903_v53 = vpop.f32.mrf.mxu1  ;;  %vm1985_vm10 = vcmp.gt.f32.partialorder %v1898_v55, 0.0  ;;  %3095 = vmatprep.subr.mxu0 %v4819_v20  ;;  %v4852_v29 = vld [vmem:[#allocation10 + $0x28] sm:$0xff] }
 0x24e   :  { %2542 = vmatmul.mubr.f32.gmra.mxu1 %v2108_v9  ;;  %v1746_v27 = vpop.f32.mrf.mxu0  ;;  %v2112_v51 = vsel %vm1984_vm9, %v1896_v28, %v2048_v62  ;;  %3096 = vmatpush3.msra.mxu0 %v4822_v34  ;;  %v1439_v19 = vadd.f32 %v4715_v43, %v4758_v3 }
 0x24f   :  { %v1904_v45 = vadd.f32 %v1903_v53, %v1743_v54  ;;  %v1747_v0 = vadd.f32 %v1746_v27, %v4703_v11  ;;  %v1907_v39 = vpop.f32.mrf.mxu1  ;;  %vm1988_vm11 = vcmp.gt.f32.partialorder %v1902_v14, 0.0  ;;  %v2052_v46 = vmul.f32 0.2, %v1902_v14  ;;  %3181 = vmatpush3.msra.mxu1 %v4798_v16  ;;  %3097 = vmatprep.subr.mxu0 %v4826_v4  ;;  %v4846_v16 = vld [vmem:[#allocation10 + $0xa8] sm:$0xff] }
 0x250   :  { %v1748_v7 = vpop.f32.mrf.mxu0  ;;  %v2113_v35 = vsel %vm1985_vm10, %v1898_v55, %v2049_v1  ;;  %3098 = vmatpush3.msra.mxu0 %v4832_v63  ;;  %v1594_v55 = vadd.f32 %v4712_v18, %v1433_v56  ;;  %3166 = vmatprep.subr.mxu1 %v4802_v21  ;;  %v4858_v18 = vld [vmem:[#allocation10 + $0xa0] sm:$0xff] }
 0x251   :  { %v2053_v11 = vmul.f32 0.2, %v1904_v45  ;;  %v1908_v42 = vadd.f32 %v1907_v39, %v1747_v0  ;;  %v1749_v22 = vadd.f32 %v1748_v7, %v1588_v8  ;;  %2547 = vmatprep.mubr.f32.mxu1 %v2113_v35  ;;  %v1909_v15 = vpop.f32.mrf.mxu1  ;;  %vm1989_vm12 = vcmp.gt.f32.partialorder %v1904_v45, 0.0  ;;  %3099 = vmatprep.subr.mxu0 %v4838_v33 }
 0x252   :  { %2548 = vmatmul.mubr.f32.gmra.mxu1 %v2112_v51  ;;  %v1752_v28 = vpop.f32.mrf.mxu0  ;;  %v2116_v1 = vsel %vm1988_vm11, %v1902_v14, %v2052_v46  ;;  %3100 = vmatpush3.msra.mxu0 %v4841_v37  ;;  %v1600_v8 = vadd.f32 %v4719_v44, %v1439_v19  ;;  %v1445_v14 = vadd.f32 %v4722_v5, %v4758_v3 }
 0x253   :  { %v1910_v57 = vadd.f32 %v1909_v15, %v1749_v22  ;;  %v1753_v49 = vadd.f32 %v1752_v28, %v4710_v61  ;;  %v1913_v62 = vpop.f32.mrf.mxu1  ;;  %vm1992_vm13 = vcmp.gt.f32.partialorder %v1908_v42, 0.0  ;;  %v2056_v43 = vmul.f32 0.2, %v1908_v42  ;;  %3182 = vmatpush3.msra.mxu1 %v4804_v13  ;;  %3101 = vmatprep.subr.mxu0 %v4846_v16 }
 0x254   :  { %v1754_v60 = vpop.f32.mrf.mxu0  ;;  %v2117_v9 = vsel %vm1989_vm12, %v1904_v45, %v2053_v11  ;;  %3102 = vmatpush3.msra.mxu0 %v4852_v29  ;;  %3167 = vmatprep.subr.mxu1 %v4809_v17  ;;  %v1606_v17 = vadd.f32 %v4726_v41, %v1445_v14  ;;  %v1451_v11 = vadd.f32 %v4729_v40, %v4758_v3 }
 0x255   :  { %v2057_v61 = vmul.f32 0.2, %v1910_v57  ;;  %v1914_v54 = vadd.f32 %v1913_v62, %v1753_v49  ;;  %v1755_v53 = vadd.f32 %v1754_v60, %v1594_v55  ;;  %2553 = vmatprep.mubr.f32.mxu1 %v2117_v9  ;;  %v1915_v21 = vpop.f32.mrf.mxu1  ;;  %vm1993_vm14 = vcmp.gt.f32.partialorder %v1910_v57, 0.0  ;;  %3103 = vmatprep.subr.mxu0 %v4858_v18 }
 0x256   :  { %2554 = vmatmul.mubr.f32.gmra.mxu1 %v2116_v1  ;;  %v1758_v27 = vpop.f32.mrf.mxu0  ;;  %v2120_v44 = vsel %vm1992_vm13, %v1908_v42, %v2056_v43  ;;  %v1612_v40 = vadd.f32 %v4733_v12, %v1451_v11 }
 0x257   :  { %v1916_v13 = vadd.f32 %v1915_v21, %v1755_v53  ;;  %v1759_v56 = vadd.f32 %v1758_v27, %v4717_v48  ;;  %v1919_v45 = vpop.f32.mrf.mxu1  ;;  %vm1996_vm15 = vcmp.gt.f32.partialorder %v1914_v54, 0.0  ;;  %v2060_v0 = vmul.f32 0.2, %v1914_v54  ;;  %3183 = vmatpush3.msra.mxu1 %v4814_v10 }
 0x258   :  { %v1760_v39 = vpop.f32.mrf.mxu0  ;;  %v2121_v46 = vsel %vm1993_vm14, %v1910_v57, %v2057_v61  ;;  %3168 = vmatprep.subr.mxu1 %v4819_v20 }
 0x259   :  { %v2061_v7 = vmul.f32 0.2, %v1916_v13  ;;  %v1920_v35 = vadd.f32 %v1919_v45, %v1759_v56  ;;  %v1761_v51 = vadd.f32 %v1760_v39, %v1600_v8  ;;  %2559 = vmatprep.mubr.f32.mxu1 %v2121_v46  ;;  %v1921_v5 = vpop.f32.mrf.mxu1  ;;  %vm1997_vm0 = vcmp.gt.f32.partialorder %v1916_v13, 0.0  ;;  %3184 = vmatpush3.msra.mxu1 %v4822_v34 }
 0x25a   :  { %2560 = vmatmul.mubr.f32.gmra.mxu1 %v2120_v44  ;;  %v1764_v48 = vpop.f32.mrf.mxu0  ;;  %v2124_v55 = vsel %vm1996_vm15, %v1914_v54, %v2060_v0  ;;  %3169 = vmatprep.subr.mxu1 %v4826_v4  ;;  %v1457_v34 = vadd.f32 %v4736_v36, %v4758_v3 }
 0x25b   :  { %v1922_v22 = vadd.f32 %v1921_v5, %v1761_v51  ;;  %v1765_v42 = vadd.f32 %v1764_v48, %v4724_v6  ;;  %v1925_v15 = vpop.f32.mrf.mxu1  ;;  %vm2000_vm1 = vcmp.gt.f32.partialorder %v1920_v35, 0.0  ;;  %v2064_v10 = vmul.f32 0.2, %v1920_v35  ;;  %3185 = vmatpush3.msra.mxu1 %v4832_v63 }
 0x25c   :  { %v1766_v19 = vpop.f32.mrf.mxu0  ;;  %v2125_v28 = vsel %vm1997_vm0, %v1916_v13, %v2061_v7  ;;  %3170 = vmatprep.subr.mxu1 %v4838_v33  ;;  %v1618_v36 = vadd.f32 %v4740_v38, %v1457_v34 }
 0x25d   :  { %v2065_v20 = vmul.f32 0.2, %v1922_v22  ;;  %v1926_v57 = vadd.f32 %v1925_v15, %v1765_v42  ;;  %v1767_v41 = vadd.f32 %v1766_v19, %v1606_v17  ;;  %2565 = vmatprep.mubr.f32.mxu1 %v2125_v28  ;;  %v1927_v49 = vpop.f32.mrf.mxu1  ;;  %vm2001_vm2 = vcmp.gt.f32.partialorder %v1922_v22, 0.0  ;;  %3186 = vmatpush3.msra.mxu1 %v4841_v37 }
 0x25e   :  { %2566 = vmatmul.mubr.f32.gmra.mxu1 %v2124_v55  ;;  %v1770_v6 = vpop.f32.mrf.mxu0  ;;  %v2128_v63 = vsel %vm2000_vm1, %v1920_v35, %v2064_v10  ;;  %3171 = vmatprep.subr.mxu1 %v4846_v16  ;;  %v1463_v37 = vadd.f32 %v4743_v24, %v4758_v3 }
 0x25f   :  { %v1928_v62 = vadd.f32 %v1927_v49, %v1767_v41  ;;  %v1771_v4 = vadd.f32 %v1770_v6, %v4731_v32  ;;  %v1931_v43 = vpop.f32.mrf.mxu1  ;;  %vm2004_vm3 = vcmp.gt.f32.partialorder %v1926_v57, 0.0  ;;  %v2068_v60 = vmul.f32 0.2, %v1926_v57  ;;  %3187 = vmatpush3.msra.mxu1 %v4852_v29 }
 0x260   :  { %v1772_v9 = vpop.f32.mrf.mxu0  ;;  %v2129_v1 = vsel %vm2001_vm2, %v1922_v22, %v2065_v20  ;;  %3172 = vmatprep.subr.mxu1 %v4858_v18  ;;  %v1624_v24 = vadd.f32 %v4747_v30, %v1463_v37 }
 0x261   :  { %v2069_v33 = vmul.f32 0.2, %v1928_v62  ;;  %v1932_v61 = vadd.f32 %v1931_v43, %v1771_v4  ;;  %v1773_v12 = vadd.f32 %v1772_v9, %v1612_v40  ;;  %2571 = vmatprep.mubr.f32.mxu1 %v2129_v1  ;;  %v1933_v54 = vpop.f32.mrf.mxu1  ;;  %vm2005_vm4 = vcmp.gt.f32.partialorder %v1928_v62, 0.0 }
 0x262   :  { %2572 = vmatmul.mubr.f32.gmra.mxu1 %v2128_v63  ;;  %v1776_v32 = vpop.f32.mrf.mxu0  ;;  %v2132_v13 = vsel %vm2004_vm3, %v1926_v57, %v2068_v60 }
 0x263   :  { %v1934_v53 = vadd.f32 %v1933_v54, %v1773_v12  ;;  %v1777_v16 = vadd.f32 %v1776_v32, %v4738_v31  ;;  %v1937_v21 = vpop.f32.mrf.mxu1  ;;  %vm2008_vm5 = vcmp.gt.f32.partialorder %v1932_v61, 0.0  ;;  %v2072_v8 = vmul.f32 0.2, %v1932_v61 }
 0x264   :  { %v1778_v27 = vpop.f32.mrf.mxu0  ;;  %v2133_v14 = vsel %vm2005_vm4, %v1928_v62, %v2069_v33  ;;  %v1469_v31 = vadd.f32 %v4751_v50, %v4758_v3 }
 0x265   :  { %v2073_v29 = vmul.f32 0.2, %v1934_v53  ;;  %v1938_v56 = vadd.f32 %v1937_v21, %v1777_v16  ;;  %v1779_v45 = vadd.f32 %v1778_v27, %v1618_v36  ;;  %2577 = vmatprep.mubr.f32.mxu1 %v2133_v14  ;;  %v1939_v18 = vpop.f32.mrf.mxu1  ;;  %vm2009_vm6 = vcmp.gt.f32.partialorder %v1934_v53, 0.0 }
 0x266   :  { %2578 = vmatmul.mubr.f32.gmra.mxu1 %v2132_v13  ;;  %v1782_v38 = vpop.f32.mrf.mxu0  ;;  %v2136_v51 = vsel %vm2008_vm5, %v1932_v61, %v2072_v8  ;;  %v1630_v50 = vadd.f32 %v4755_v58, %v1469_v31  ;;  %v5062_v61 = vld [vmem:[#allocation22_spill] sm:$0xff]  ;;  %v2734_v31 = vld [vmem:[#allocation10 + $0x90] sm:$0xff] }
 0x267   :  { %v1940_v0 = vadd.f32 %v1939_v18, %v1779_v45  ;;  %v1783_v39 = vadd.f32 %v1782_v38, %v4745_v52  ;;  %v1943_v46 = vpop.f32.mrf.mxu1  ;;  %vm2012_vm7 = vcmp.gt.f32.partialorder %v1938_v56, 0.0  ;;  %v2076_v44 = vmul.f32 0.2, %v1938_v56  ;;  %v2720_v18 = vld [vmem:[#allocation10 + $0x20] sm:$0xff]  ;;  %v2735_v38 = vld [vmem:[#allocation10 + $0x98] sm:$0xff] }
 0x268   :  { %v1784_v7 = vpop.f32.mrf.mxu0  ;;  %v2137_v35 = vsel %vm2009_vm6, %v1934_v53, %v2073_v29  ;;  %v1475_v52 = vadd.f32 %v4761_v47, %v4758_v3  ;;  %3104 = vmatpush3.msra.mxu0 %v2720_v18  ;;  %3188 = vmatpush3.msra.mxu1 %v2720_v18 }
 0x269   :  { %v2077_v5 = vmul.f32 0.2, %v1940_v0  ;;  %v1944_v48 = vadd.f32 %v1943_v46, %v1783_v39  ;;  %v1785_v17 = vadd.f32 %v1784_v7, %v1624_v24  ;;  %2583 = vmatprep.mubr.f32.mxu1 %v2137_v35  ;;  %v1945_v11 = vpop.f32.mrf.mxu1  ;;  %vm2013_vm8 = vcmp.gt.f32.partialorder %v1940_v0, 0.0  ;;  %3105 = vmatprep.subr.mxu0 %v2735_v38  ;;  %v2719_v24 = vld [vmem:[#allocation10 + $0x18] sm:$0xff]  ;;  %v2733_v39 = vld [vmem:[#allocation10 + $0x88] sm:$0xff]  ;;  %v2716_v7 = vld [vmem:[#allocation10] sm:$0xff] }
 0x26a   :  { %2584 = vmatmul.mubr.f32.gmra.mxu1 %v2136_v51  ;;  %v1788_v30 = vpop.f32.mrf.mxu0  ;;  %v2140_v55 = vsel %vm2012_vm7, %v1938_v56, %v2076_v44  ;;  %v1636_v47 = vadd.f32 %v4765_v2, %v1475_v52  ;;  %3173 = vmatprep.subr.mxu1 %v2735_v38  ;;  %v2717_v46 = vld [vmem:[#allocation10 + $0x8] sm:$0xff]  ;;  %v2732_v44 = vld [vmem:[#allocation10 + $0x80] sm:$0xff] }
 0x26b   :  { %v1946_v22 = vadd.f32 %v1945_v11, %v1785_v17  ;;  %v1789_v42 = vadd.f32 %v1788_v30, %v4753_v26  ;;  %v1949_v15 = vpop.f32.mrf.mxu1  ;;  %vm2016_vm9 = vcmp.gt.f32.partialorder %v1944_v48, 0.0  ;;  %v2080_v10 = vmul.f32 0.2, %v1944_v48  ;;  %3106 = vmatpush3.msra.mxu0 %v2719_v24  ;;  %3189 = vmatpush3.msra.mxu1 %v2719_v24 }
 0x26c   :  { %v1790_v19 = vpop.f32.mrf.mxu0  ;;  %v2141_v28 = vsel %vm2013_vm8, %v1940_v0, %v2077_v5  ;;  %v1481_v26 = vadd.f32 %v4770_v23, %v4758_v3  ;;  %3107 = vmatprep.subr.mxu0 %v2734_v31  ;;  %v2718_v0 = vld [vmem:[#allocation10 + $0x10] sm:$0xff]  ;;  %3174 = vmatprep.subr.mxu1 %v2734_v31 }
 0x26d   :  { %v2081_v20 = vmul.f32 0.2, %v1946_v22  ;;  %v1950_v57 = vadd.f32 %v1949_v15, %v1789_v42  ;;  %v1791_v41 = vadd.f32 %v1790_v19, %v1630_v50  ;;  %2589 = vmatprep.mubr.f32.mxu1 %v2141_v28  ;;  %v1951_v49 = vpop.f32.mrf.mxu1  ;;  %vm2017_vm10 = vcmp.gt.f32.partialorder %v1946_v22, 0.0  ;;  %3108 = vmatpush3.msra.mxu0 %v2718_v0 }
 0x26e   :  { %2590 = vmatmul.mubr.f32.gmra.mxu1 %v2140_v55  ;;  %v1794_v58 = vpop.f32.mrf.mxu0  ;;  %v2144_v60 = vsel %vm2016_vm9, %v1944_v48, %v2080_v10  ;;  %v1642_v3 = vadd.f32 %v4774_v25, %v1481_v26  ;;  %3109 = vmatprep.subr.mxu0 %v2733_v39  ;;  %v2286_v55 = vld [vmem:[#allocation8] sm:$0x3] }
 0x26f   :  { %v1952_v6 = vadd.f32 %v1951_v49, %v1791_v41  ;;  %v1795_v40 = vadd.f32 %v1794_v58, %v4763_v59  ;;  %v1955_v34 = vpop.f32.mrf.mxu1  ;;  %vm2020_vm11 = vcmp.gt.f32.partialorder %v1950_v57, 0.0  ;;  %v2084_v62 = vmul.f32 0.2, %v1950_v57  ;;  %3190 = vmatpush3.msra.mxu1 %v2718_v0  ;;  %3110 = vmatpush3.msra.mxu0 %v2717_v46 }
 0x270   :  { %v1796_v4 = vpop.f32.mrf.mxu0  ;;  %v2145_v43 = vsel %vm2017_vm10, %v1946_v22, %v2081_v20  ;;  %3175 = vmatprep.subr.mxu1 %v2733_v39  ;;  %3111 = vmatprep.subr.mxu0 %v2732_v44 }
 0x271   :  { %v2085_v9 = vmul.f32 0.2, %v1952_v6  ;;  %v1956_v1 = vadd.f32 %v1955_v34, %v1795_v40  ;;  %v1797_v63 = vadd.f32 %v1796_v4, %v1636_v47  ;;  %2595 = vmatprep.mubr.f32.mxu1 %v2145_v43  ;;  %v1957_v33 = vpop.f32.mrf.mxu1  ;;  %vm2021_vm12 = vcmp.gt.f32.partialorder %v1952_v6, 0.0  ;;  %3191 = vmatpush3.msra.mxu1 %v2717_v46 }
 0x272   :  { %2596 = vmatmul.mubr.f32.gmra.mxu1 %v2144_v60  ;;  %v1800_v2 = vpop.f32.mrf.mxu0  ;;  %v2148_v37 = vsel %vm2020_vm11, %v1950_v57, %v2084_v62  ;;  %3176 = vmatprep.subr.mxu1 %v2732_v44  ;;  %v5063_v57 = vld [vmem:[#allocation19_spill] sm:$0xff] }
 0x273   :  { %v1958_v23 = vadd.f32 %v1957_v33, %v1797_v63  ;;  %v1801_v59 = vadd.f32 %v1800_v2, %v5062_v61  ;;  %v1961_v12 = vpop.f32.mrf.mxu1  ;;  %v2088_v54 = vmul.f32 0.2, %v1956_v1  ;;  %v2149_v36 = vsel %vm2021_vm12, %v1952_v6, %v2085_v9  ;;  %3112 = vmatpush3.msra.mxu0 %v2716_v7  ;;  %3192 = vmatpush3.msra.mxu1 %v2716_v7 }
 0x274   :  { %v1802_v32 = vpop.f32.mrf.mxu0  ;;  %2601 = vmatprep.mubr.f32.mxu1 %v2149_v36  ;;  %vm2024_vm14 = vcmp.gt.f32.partialorder %v1956_v1, 0.0  ;;  %v5064_v41 = vsub.s32 0, %v5063_v57  ;;  %v5065_v58 = vsub.s32 1, %v5063_v57 }
 0x275   :  { %v2089_v53 = vmul.f32 0.2, %v1958_v23  ;;  %v1962_v16 = vadd.f32 %v1961_v12, %v1801_v59  ;;  %v1803_v21 = vadd.f32 %v1802_v32, %v1642_v3  ;;  %vm2025_vm13 = vcmp.gt.f32.partialorder %v1958_v23, 0.0  ;;  %v1963_v8 = vpop.f32.mrf.mxu1 }
 0x276   :  { %2602 = vmatmul.mubr.f32.gmra.mxu1 %v2148_v37  ;;  %v2152_v29 = vsel %vm2024_vm14, %v1956_v1, %v2088_v54  ;;  %v4926_v49 = vrot.slane %v2286_v55, %v5064_v41  ;;  %v4930_v47 = vrot.slane %v2286_v55, %v5065_v58 }
 0x277   :  { %v1964_v27 = vadd.f32 %v1963_v8, %v1803_v21  ;;  %v2153_v14 = vsel %vm2025_vm13, %v1958_v23, %v2089_v53  ;;  %v2092_v25 = vmul.f32 0.2, %v1962_v16  ;;  %vm2028_vm0 = vcmp.gt.f32.partialorder %v1962_v16, 0.0 }
 0x278   :  { %2607 = vmatprep.mubr.f32.mxu1 %v2153_v14 }
 0x279   :  { %v2093_v13 = vmul.f32 0.2, %v1964_v27  ;;  %vm2029_vm15 = vcmp.gt.f32.partialorder %v1964_v27, 0.0  ;;  %v2156_v45 = vsel %vm2028_vm0, %v1962_v16, %v2092_v25 }
 0x27a   :  { %2608 = vmatmul.mubr.f32.gmra.mxu1 %v2152_v29 }
 0x27b   :  { %v2157_v56 = vsel %vm2029_vm15, %v1964_v27, %v2093_v13 }
 0x27c   :  { %2613 = vmatprep.mubr.f32.mxu1 %v2157_v56 }
 0x27e   :  { %2614 = vmatmul.mubr.f32.gmra.mxu1 %v2156_v45 }
 0x280   :  { %v2364_v35 = vpop.f32.mrf.mxu0 }
 0x281   :  { %v2365_v6 = vadd.f32 %v2364_v35, %v4926_v49 }
 0x282   :  { %v2366_v51 = vpop.f32.mrf.mxu0 }
 0x283   :  { %v2367_v34 = vadd.f32 %v2366_v51, %v4930_v47 }
 0x284   :  { %v2370_v5 = vpop.f32.mrf.mxu0 }
 0x285   :  { %v2371_v60 = vadd.f32 %v2370_v5, %v4926_v49 }
 0x286   :  { %v2372_v48 = vpop.f32.mrf.mxu0 }
 0x287   :  { %v2373_v1 = vadd.f32 %v2372_v48, %v4930_v47 }
 0x288   :  { %v2376_v17 = vpop.f32.mrf.mxu0 }
 0x289   :  { %v2377_v59 = vadd.f32 %v2376_v17, %v4926_v49 }
 0x28a   :  { %v2378_v11 = vpop.f32.mrf.mxu0 }
 0x28b   :  { %v2379_v32 = vadd.f32 %v2378_v11, %v4930_v47 }
 0x28c   :  { %v2382_v30 = vpop.f32.mrf.mxu0 }
 0x28d   :  { %v2383_v14 = vadd.f32 %v2382_v30, %v4926_v49 }
 0x28e   :  { %v2384_v50 = vpop.f32.mrf.mxu0 }
 0x28f   :  { %v2385_v29 = vadd.f32 %v2384_v50, %v4930_v47 }
 0x290   :  { %v2388_v52 = vpop.f32.mrf.mxu0 }
 0x291   :  { %v2389_v39 = vadd.f32 %v2388_v52, %v4926_v49 }
 0x292   :  { %v2390_v22 = vpop.f32.mrf.mxu0 }
 0x293   :  { %v2391_v7 = vadd.f32 %v2390_v22, %v4930_v47 }
 0x294   :  { %v4912_v42 = vpop.f32.mrf.mxu0 }
 0x295   :  { %v2395_v50 = vadd.f32 %v4912_v42, %v4926_v49 }
 0x296   :  { %v4914_v15 = vpop.f32.mrf.mxu0 }
 0x297   :  { %v2397_v22 = vadd.f32 %v4914_v15, %v4930_v47 }
 0x298   :  { %v4916_v10 = vpop.f32.mrf.mxu0 }
 0x299   :  { %v2401_v42 = vadd.f32 %v4916_v10, %v4926_v49 }
 0x29a   :  { %v4918_v19 = vpop.f32.mrf.mxu0 }
 0x29b   :  { %v2403_v15 = vadd.f32 %v4918_v19, %v4930_v47 }
 0x29c   :  { %v4920_v28 = vpop.f32.mrf.mxu0 }
 0x29d   :  { %v2407_v10 = vadd.f32 %v4920_v28, %v4926_v49 }
 0x29e   :  { %v4922_v20 = vpop.f32.mrf.mxu0 }
 0x29f   :  { %v2409_v19 = vadd.f32 %v4922_v20, %v4930_v47 }
 0x2a0   :  { %v4932_v26 = vpop.f32.mrf.mxu0 }
 0x2a1   :  { %v2413_v28 = vadd.f32 %v4932_v26, %v4926_v49 }
 0x2a2   :  { %v4936_v62 = vpop.f32.mrf.mxu0 }
 0x2a3   :  { %v2415_v20 = vadd.f32 %v4936_v62, %v4930_v47 }
 0x2a4   :  { %v4940_v2 = vpop.f32.mrf.mxu0 }
 0x2a6   :  { %v4944_v16 = vpop.f32.mrf.mxu0 }
 0x2a8   :  { %v4948_v38 = vpop.f32.mrf.mxu0 }
 0x2aa   :  { %v4952_v48 = vpop.f32.mrf.mxu0 }
 0x302   :  { %v2525_v40 = vpop.f32.mrf.mxu1 }
 0x303   :  { %v2526_v4 = vadd.f32 %v2525_v40, %v2365_v6  ;;  %v4958_v6 = vpop.f32.mrf.mxu0 }
 0x304   :  { %v2527_v43 = vpop.f32.mrf.mxu1 }
 0x305   :  { %v2528_v9 = vadd.f32 %v2527_v43, %v2367_v34  ;;  %v2652_v63 = vmul.f32 0.2, %v2526_v4  ;;  %vm2620_vm1 = vcmp.gt.f32.partialorder %v2526_v4, 0.0 }
 0x306   :  { %v2531_v33 = vpop.f32.mrf.mxu1 }
 0x307   :  { %v2653_v3 = vmul.f32 0.2, %v2528_v9  ;;  %v2532_v23 = vadd.f32 %v2531_v33, %v2371_v60  ;;  %vm2621_vm2 = vcmp.gt.f32.partialorder %v2528_v9, 0.0  ;;  %v2684_v36 = vsel %vm2620_vm1, %v2526_v4, %v2652_v63  ;;  %v4964_v33 = vpop.f32.mrf.mxu0 }
 0x308   :  { %v2533_v61 = vpop.f32.mrf.mxu1 }
 0x309   :  { %v2534_v12 = vadd.f32 %v2533_v61, %v2373_v1  ;;  %v2685_v54 = vsel %vm2621_vm2, %v2528_v9, %v2653_v3  ;;  %v2654_v37 = vmul.f32 0.2, %v2532_v23  ;;  %vm2622_vm3 = vcmp.gt.f32.partialorder %v2532_v23, 0.0 }
 0x30a   :  { %v2537_v53 = vpop.f32.mrf.mxu1  ;;  %2819 = vmatprep.mubr.f32.mxu0 %v2685_v54 }
 0x30b   :  { %v2655_v21 = vmul.f32 0.2, %v2534_v12  ;;  %v2538_v8 = vadd.f32 %v2537_v53, %v2377_v59  ;;  %2820 = vmatmul.mubr.f32.vlgmr.msra.gmra.mxu0 %v2684_v36  ;;  %vm2623_vm4 = vcmp.gt.f32.partialorder %v2534_v12, 0.0  ;;  %v2686_v18 = vsel %vm2622_vm3, %v2532_v23, %v2654_v37  ;;  %v4970_v37 = vpop.f32.mrf.mxu0 }
 0x30c   :  { %v2539_v27 = vpop.f32.mrf.mxu1 }
 0x30d   :  { %v2540_v25 = vadd.f32 %v2539_v27, %v2379_v32  ;;  %v2687_v13 = vsel %vm2623_vm4, %v2534_v12, %v2655_v21  ;;  %v2656_v56 = vmul.f32 0.2, %v2538_v8  ;;  %vm2624_vm5 = vcmp.gt.f32.partialorder %v2538_v8, 0.0 }
 0x30e   :  { %v2543_v45 = vpop.f32.mrf.mxu1  ;;  %2824 = vmatprep.mubr.f32.mxu0 %v2687_v13 }
 0x30f   :  { %v2657_v24 = vmul.f32 0.2, %v2540_v25  ;;  %v2544_v31 = vadd.f32 %v2543_v45, %v2383_v14  ;;  %2825 = vmatmul.mubr.f32.gmra.mxu0 %v2686_v18  ;;  %vm2625_vm6 = vcmp.gt.f32.partialorder %v2540_v25, 0.0  ;;  %v2688_v5 = vsel %vm2624_vm5, %v2538_v8, %v2656_v56  ;;  %v2438_v56 = vpop.f32.mrf.mxu0 }
 0x310   :  { %v2545_v0 = vpop.f32.mrf.mxu1 }
 0x311   :  { %v2546_v46 = vadd.f32 %v2545_v0, %v2385_v29  ;;  %v2689_v44 = vsel %vm2625_vm6, %v2540_v25, %v2657_v24  ;;  %v2658_v35 = vmul.f32 0.2, %v2544_v31  ;;  %vm2626_vm7 = vcmp.gt.f32.partialorder %v2544_v31, 0.0 }
 0x312   :  { %v2549_v51 = vpop.f32.mrf.mxu1  ;;  %2829 = vmatprep.mubr.f32.mxu0 %v2689_v44 }
 0x313   :  { %v2659_v17 = vmul.f32 0.2, %v2546_v46  ;;  %v2550_v11 = vadd.f32 %v2549_v51, %v2389_v39  ;;  %2830 = vmatmul.mubr.f32.gmra.mxu0 %v2688_v5  ;;  %vm2627_vm8 = vcmp.gt.f32.partialorder %v2546_v46, 0.0  ;;  %v2690_v58 = vsel %vm2626_vm7, %v2544_v31, %v2658_v35 }
 0x314   :  { %v2551_v30 = vpop.f32.mrf.mxu1  ;;  %v2419_v31 = vadd.f32 %v4940_v2, %v4926_v49  ;;  %v2421_v39 = vadd.f32 %v4944_v16, %v4930_v47 }
 0x315   :  { %v2552_v52 = vadd.f32 %v2551_v30, %v2391_v7  ;;  %v2691_v55 = vsel %vm2627_vm8, %v2546_v46, %v2659_v17  ;;  %v2660_v57 = vmul.f32 0.2, %v2550_v11  ;;  %vm2628_vm9 = vcmp.gt.f32.partialorder %v2550_v11, 0.0  ;;  %v2442_v7 = vpop.f32.mrf.mxu0 }
 0x316   :  { %v2555_v41 = vpop.f32.mrf.mxu1  ;;  %2834 = vmatprep.mubr.f32.mxu0 %v2691_v55  ;;  %v2425_v17 = vadd.f32 %v4948_v38, %v4926_v49  ;;  %v2427_v30 = vadd.f32 %v4952_v48, %v4930_v47 }
 0x317   :  { %v2661_v40 = vmul.f32 0.2, %v2552_v52  ;;  %v2556_v34 = vadd.f32 %v2555_v41, %v2395_v50  ;;  %2835 = vmatmul.mubr.f32.gmra.mxu0 %v2690_v58  ;;  %vm2629_vm10 = vcmp.gt.f32.partialorder %v2552_v52, 0.0  ;;  %v2692_v63 = vsel %vm2628_vm9, %v2550_v11, %v2660_v57  ;;  %v2444_v55 = vpop.f32.mrf.mxu0 }
 0x318   :  { %v2557_v4 = vpop.f32.mrf.mxu1  ;;  %v2431_v58 = vadd.f32 %v4958_v6, %v4926_v49 }
 0x319   :  { %v2558_v43 = vadd.f32 %v2557_v4, %v2397_v22  ;;  %v2693_v60 = vsel %vm2629_vm10, %v2552_v52, %v2661_v40  ;;  %v2662_v9 = vmul.f32 0.2, %v2556_v34  ;;  %vm2630_vm11 = vcmp.gt.f32.partialorder %v2556_v34, 0.0 }
 0x31a   :  { %v2561_v1 = vpop.f32.mrf.mxu1  ;;  %2839 = vmatprep.mubr.f32.mxu0 %v2693_v60 }
 0x31b   :  { %v2663_v3 = vmul.f32 0.2, %v2558_v43  ;;  %v2562_v23 = vadd.f32 %v2561_v1, %v2401_v42  ;;  %2840 = vmatmul.mubr.f32.gmra.mxu0 %v2692_v63  ;;  %vm2631_vm12 = vcmp.gt.f32.partialorder %v2558_v43, 0.0  ;;  %v2694_v36 = vsel %vm2630_vm11, %v2556_v34, %v2662_v9 }
 0x31c   :  { %v2563_v61 = vpop.f32.mrf.mxu1  ;;  %v2433_v34 = vadd.f32 %v4964_v33, %v4930_v47  ;;  %v2437_v1 = vadd.f32 %v4970_v37, %v4926_v49  ;;  %v2445_v37 = vadd.f32 %v2444_v55, %v4930_v47 }
 0x31d   :  { %v2564_v59 = vadd.f32 %v2563_v61, %v2403_v15  ;;  %v2695_v12 = vsel %vm2631_vm12, %v2558_v43, %v2663_v3  ;;  %v2664_v54 = vmul.f32 0.2, %v2562_v23  ;;  %vm2632_vm13 = vcmp.gt.f32.partialorder %v2562_v23, 0.0  ;;  %v2448_v43 = vpop.f32.mrf.mxu0 }
 0x31e   :  { %v2567_v32 = vpop.f32.mrf.mxu1  ;;  %2844 = vmatprep.mubr.f32.mxu0 %v2695_v12  ;;  %v2439_v3 = vadd.f32 %v2438_v56, %v4930_v47 }
 0x31f   :  { %v2665_v53 = vmul.f32 0.2, %v2564_v59  ;;  %v2568_v21 = vadd.f32 %v2567_v32, %v2407_v10  ;;  %2845 = vmatmul.mubr.f32.gmra.mxu0 %v2694_v36  ;;  %vm2633_vm14 = vcmp.gt.f32.partialorder %v2564_v59, 0.0  ;;  %v2696_v29 = vsel %vm2632_vm13, %v2562_v23, %v2664_v54  ;;  %v2450_v10 = vpop.f32.mrf.mxu0 }
 0x320   :  { %v2569_v8 = vpop.f32.mrf.mxu1  ;;  %v2443_v54 = vadd.f32 %v2442_v7, %v4926_v49  ;;  %v2451_v56 = vadd.f32 %v2450_v10, %v4930_v47 }
 0x321   :  { %v2570_v27 = vadd.f32 %v2569_v8, %v2409_v19  ;;  %v2697_v14 = vsel %vm2633_vm14, %v2564_v59, %v2665_v53  ;;  %v2666_v25 = vmul.f32 0.2, %v2568_v21  ;;  %vm2634_vm15 = vcmp.gt.f32.partialorder %v2568_v21, 0.0 }
 0x322   :  { %v2573_v13 = vpop.f32.mrf.mxu1  ;;  %2849 = vmatprep.mubr.f32.mxu0 %v2697_v14 }
 0x323   :  { %v2667_v45 = vmul.f32 0.2, %v2570_v27  ;;  %v2574_v18 = vadd.f32 %v2573_v13, %v2413_v28  ;;  %2850 = vmatmul.mubr.f32.gmra.mxu0 %v2696_v29  ;;  %vm2635_vm0 = vcmp.gt.f32.partialorder %v2570_v27, 0.0  ;;  %v2698_v44 = vsel %vm2634_vm15, %v2568_v21, %v2666_v25  ;;  %v2454_v28 = vpop.f32.mrf.mxu0 }
 0x324   :  { %v2575_v24 = vpop.f32.mrf.mxu1  ;;  %v2449_v25 = vadd.f32 %v2448_v43, %v4926_v49 }
 0x325   :  { %v2576_v26 = vadd.f32 %v2575_v24, %v2415_v20  ;;  %v2699_v0 = vsel %vm2635_vm0, %v2570_v27, %v2667_v45  ;;  %v2668_v62 = vmul.f32 0.2, %v2574_v18  ;;  %vm2636_vm1 = vcmp.gt.f32.partialorder %v2574_v18, 0.0 }
 0x326   :  { %v2579_v46 = vpop.f32.mrf.mxu1  ;;  %2854 = vmatprep.mubr.f32.mxu0 %v2699_v0 }
 0x327   :  { %v2669_v35 = vmul.f32 0.2, %v2576_v26  ;;  %v2580_v51 = vadd.f32 %v2579_v46, %v2419_v31  ;;  %2855 = vmatmul.mubr.f32.gmra.mxu0 %v2698_v44  ;;  %vm2637_vm2 = vcmp.gt.f32.partialorder %v2576_v26, 0.0  ;;  %v2700_v16 = vsel %vm2636_vm1, %v2574_v18, %v2668_v62  ;;  %v2456_v31 = vpop.f32.mrf.mxu0 }
 0x328   :  { %v2581_v5 = vpop.f32.mrf.mxu1  ;;  %v2455_v62 = vadd.f32 %v2454_v28, %v4926_v49  ;;  %v2457_v7 = vadd.f32 %v2456_v31, %v4930_v47 }
 0x329   :  { %v2582_v2 = vadd.f32 %v2581_v5, %v2421_v39  ;;  %v2701_v11 = vsel %vm2637_vm2, %v2576_v26, %v2669_v35  ;;  %v2670_v50 = vmul.f32 0.2, %v2580_v51  ;;  %vm2638_vm3 = vcmp.gt.f32.partialorder %v2580_v51, 0.0 }
 0x32a   :  { %v2585_v52 = vpop.f32.mrf.mxu1  ;;  %2859 = vmatprep.mubr.f32.mxu1 %v2701_v11 }
 0x32b   :  { %v2671_v22 = vmul.f32 0.2, %v2582_v2  ;;  %v2586_v57 = vadd.f32 %v2585_v52, %v2425_v17  ;;  %2860 = vmatmul.mubr.f32.vlgmr.msra.gmra.mxu1 %v2700_v16  ;;  %vm2639_vm4 = vcmp.gt.f32.partialorder %v2582_v2, 0.0  ;;  %v2702_v42 = vsel %vm2638_vm3, %v2580_v51, %v2670_v50 }
 0x32c   :  { %v2587_v41 = vpop.f32.mrf.mxu1 }
 0x32d   :  { %v2588_v38 = vadd.f32 %v2587_v41, %v2427_v30  ;;  %v2703_v40 = vsel %vm2639_vm4, %v2582_v2, %v2671_v22  ;;  %v2672_v48 = vmul.f32 0.2, %v2586_v57  ;;  %vm2640_vm5 = vcmp.gt.f32.partialorder %v2586_v57, 0.0 }
 0x32e   :  { %v2591_v4 = vpop.f32.mrf.mxu1  ;;  %2864 = vmatprep.mubr.f32.mxu1 %v2703_v40 }
 0x32f   :  { %v2673_v60 = vmul.f32 0.2, %v2588_v38  ;;  %v2592_v15 = vadd.f32 %v2591_v4, %v2431_v58  ;;  %2865 = vmatmul.mubr.f32.gmra.mxu1 %v2702_v42  ;;  %vm2641_vm6 = vcmp.gt.f32.partialorder %v2588_v38, 0.0  ;;  %v2704_v61 = vsel %vm2640_vm5, %v2586_v57, %v2672_v48  ;;  %v4997_v57 = vld [vmem:[#allocation11] ss:$0 sm:$0xff] }
 0x330   :  { %v2593_v9 = vpop.f32.mrf.mxu1 }
 0x331   :  { %v2594_v6 = vadd.f32 %v2593_v9, %v2433_v34  ;;  %v2705_v63 = vsel %vm2641_vm6, %v2588_v38, %v2673_v60  ;;  %v2674_v23 = vmul.f32 0.2, %v2592_v15  ;;  %vm2642_vm7 = vcmp.gt.f32.partialorder %v2592_v15, 0.0 }
 0x332   :  { %v2597_v33 = vpop.f32.mrf.mxu1  ;;  %2869 = vmatprep.mubr.f32.mxu1 %v2705_v63 }
 0x333   :  { %v2675_v59 = vmul.f32 0.2, %v2594_v6  ;;  %v2598_v12 = vadd.f32 %v2597_v33, %v2437_v1  ;;  %2870 = vmatmul.mubr.f32.gmra.mxu1 %v2704_v61  ;;  %vm2643_vm8 = vcmp.gt.f32.partialorder %v2594_v6, 0.0  ;;  %v2706_v8 = vsel %vm2642_vm7, %v2592_v15, %v2674_v23 }
 0x334   :  { %v2599_v19 = vpop.f32.mrf.mxu1 }
 0x335   :  { %v2600_v32 = vadd.f32 %v2599_v19, %v2439_v3  ;;  %v2707_v36 = vsel %vm2643_vm8, %v2594_v6, %v2675_v59  ;;  %v2676_v53 = vmul.f32 0.2, %v2598_v12  ;;  %vm2644_vm9 = vcmp.gt.f32.partialorder %v2598_v12, 0.0 }
 0x336   :  { %v2603_v21 = vpop.f32.mrf.mxu1  ;;  %2874 = vmatprep.mubr.f32.mxu1 %v2707_v36 }
 0x337   :  { %v2677_v27 = vmul.f32 0.2, %v2600_v32  ;;  %v2604_v14 = vadd.f32 %v2603_v21, %v2443_v54  ;;  %2875 = vmatmul.mubr.f32.gmra.mxu1 %v2706_v8  ;;  %vm2645_vm10 = vcmp.gt.f32.partialorder %v2600_v32, 0.0  ;;  %v2708_v24 = vsel %vm2644_vm9, %v2598_v12, %v2676_v53 }
 0x338   :  { %v2605_v20 = vpop.f32.mrf.mxu1 }
 0x339   :  { %v2606_v13 = vadd.f32 %v2605_v20, %v2445_v37  ;;  %v2709_v29 = vsel %vm2645_vm10, %v2600_v32, %v2677_v27  ;;  %v2678_v45 = vmul.f32 0.2, %v2604_v14  ;;  %vm2646_vm11 = vcmp.gt.f32.partialorder %v2604_v14, 0.0 }
 0x33a   :  { %v2609_v18 = vpop.f32.mrf.mxu1  ;;  %2879 = vmatprep.mubr.f32.mxu1 %v2709_v29 }
 0x33b   :  { %v2679_v26 = vmul.f32 0.2, %v2606_v13  ;;  %v2610_v0 = vadd.f32 %v2609_v18, %v2449_v25  ;;  %2880 = vmatmul.mubr.f32.gmra.mxu1 %v2708_v24  ;;  %vm2647_vm12 = vcmp.gt.f32.partialorder %v2606_v13, 0.0  ;;  %v2710_v5 = vsel %vm2646_vm11, %v2604_v14, %v2678_v45 }
 0x33c   :  { %v2611_v39 = vpop.f32.mrf.mxu1 }
 0x33d   :  { %v2612_v46 = vadd.f32 %v2611_v39, %v2451_v56  ;;  %v2711_v44 = vsel %vm2647_vm12, %v2606_v13, %v2679_v26  ;;  %v2680_v35 = vmul.f32 0.2, %v2610_v0  ;;  %vm2648_vm13 = vcmp.gt.f32.partialorder %v2610_v0, 0.0 }
 0x33e   :  { %v2615_v51 = vpop.f32.mrf.mxu1  ;;  %2884 = vmatprep.mubr.f32.mxu1 %v2711_v44 }
 0x33f   :  { %v2681_v17 = vmul.f32 0.2, %v2612_v46  ;;  %v2616_v2 = vadd.f32 %v2615_v51, %v2455_v62  ;;  %2885 = vmatmul.mubr.f32.gmra.mxu1 %v2710_v5  ;;  %vm2649_vm14 = vcmp.gt.f32.partialorder %v2612_v46, 0.0  ;;  %v2712_v52 = vsel %vm2648_vm13, %v2610_v0, %v2680_v35 }
 0x340   :  { %v2617_v11 = vpop.f32.mrf.mxu1 }
 0x341   :  { %v2618_v30 = vadd.f32 %v2617_v11, %v2457_v7  ;;  %v2713_v16 = vsel %vm2649_vm14, %v2612_v46, %v2681_v17  ;;  %v2682_v50 = vmul.f32 0.2, %v2616_v2  ;;  %vm2650_vm15 = vcmp.gt.f32.partialorder %v2616_v2, 0.0 }
 0x342   :  { %2889 = vmatprep.mubr.f32.mxu1 %v2713_v16 }
 0x343   :  { %v2683_v49 = vmul.f32 0.2, %v2618_v30  ;;  %2890 = vmatmul.mubr.f32.gmra.mxu1 %v2712_v52  ;;  %vm2651_vm0 = vcmp.gt.f32.partialorder %v2618_v30, 0.0  ;;  %v2714_v55 = vsel %vm2650_vm15, %v2616_v2, %v2682_v50 }
 0x345   :  { %v2715_v47 = vsel %vm2651_vm0, %v2618_v30, %v2683_v49 }
 0x346   :  { %2894 = vmatprep.mubr.f32.mxu1 %v2715_v47 }
 0x347   :  { %2895 = vmatmul.mubr.f32.gmra.mxu1 %v2714_v55 }
 0x3cb   :  { %v3113_v22 = vpop.f32.mrf.mxu0 }
 0x3cd   :  { %v3114_v41 = vpop.f32.mrf.mxu0 }
 0x3ce   :  { %v3115_v58 = vadd.f32 %v3114_v41, %v3113_v22 }
 0x3cf   :  { %v3116_v38 = vpop.f32.mrf.mxu0 }
 0x3d0   :  { %v2822_v40 = vadd.f32 %v3115_v58, %v4997_v57 }
 0x3d1   :  { %v3117_v34 = vpop.f32.mrf.mxu0 }
 0x3d2   :  { %v3065_v48 = vmul.f32 -1.442695, %v2822_v40  ;;  %v3118_v4 = vadd.f32 %v3117_v34, %v3116_v38 }
 0x3d3   :  { %v3119_v42 = vpop.f32.mrf.mxu0 }
 0x3d4   :  { %3207 = vpow2.f32 %v3065_v48  ;;  %v2827_v43 = vadd.f32 %v3118_v4, %v4997_v57 }
 0x3d5   :  { %v3120_v60 = vpop.f32.mrf.mxu0 }
 0x3d6   :  { %v3066_v15 = vmul.f32 -1.442695, %v2827_v43  ;;  %v3121_v9 = vadd.f32 %v3120_v60, %v3119_v42 }
 0x3d7   :  { %v3122_v1 = vpop.f32.mrf.mxu0 }
 0x3d8   :  { %3209 = vpow2.f32 %v3066_v15  ;;  %v2832_v6 = vadd.f32 %v3121_v9, %v4997_v57 }
 0x3d9   :  { %v3123_v63 = vpop.f32.mrf.mxu0 }
 0x3da   :  { %v3067_v3 = vmul.f32 -1.442695, %v2832_v6  ;;  %v3124_v23 = vadd.f32 %v3123_v63, %v3122_v1 }
 0x3db   :  { %v3125_v33 = vpop.f32.mrf.mxu0 }
 0x3dc   :  { %3211 = vpow2.f32 %v3067_v3  ;;  %v2837_v61 = vadd.f32 %v3124_v23, %v4997_v57 }
 0x3dd   :  { %v3126_v10 = vpop.f32.mrf.mxu0 }
 0x3de   :  { %v3068_v59 = vmul.f32 -1.442695, %v2837_v61  ;;  %v3127_v12 = vadd.f32 %v3126_v10, %v3125_v33 }
 0x3df   :  { %v3128_v19 = vpop.f32.mrf.mxu0 }
 0x3e0   :  { %3213 = vpow2.f32 %v3068_v59  ;;  %v2842_v54 = vadd.f32 %v3127_v12, %v4997_v57 }
 0x3e1   :  { %v3208_v32 = vpop.eup %3207  ;;  %v3129_v36 = vpop.f32.mrf.mxu0 }
 0x3e2   :  { %v2948_v37 = vadd.f32 1.0, %v3208_v32  ;;  %v3069_v53 = vmul.f32 -1.442695, %v2842_v54  ;;  %v3130_v21 = vadd.f32 %v3129_v36, %v3128_v19 }
 0x3e3   :  { %v3131_v8 = vpop.f32.mrf.mxu0 }
 0x3e4   :  { %3215 = vrcp.f32 %v2948_v37  ;;  %v2847_v28 = vadd.f32 %v3130_v21, %v4997_v57 }
 0x3e5   :  { %v3210_v27 = vpop.eup %3209  ;;  %3217 = vpow2.f32 %v3069_v53  ;;  %v3132_v14 = vpop.f32.mrf.mxu0 }
 0x3e6   :  { %v2949_v20 = vadd.f32 1.0, %v3210_v27  ;;  %v3070_v25 = vmul.f32 -1.442695, %v2847_v28  ;;  %v3133_v13 = vadd.f32 %v3132_v14, %v3131_v8 }
 0x3e7   :  { %v3134_v29 = vpop.f32.mrf.mxu0 }
 0x3e8   :  { %3219 = vrcp.f32 %v2949_v20  ;;  %v2852_v56 = vadd.f32 %v3133_v13, %v4997_v57 }
 0x3e9   :  { %v3212_v45 = vpop.eup %3211  ;;  %3221 = vpow2.f32 %v3070_v25  ;;  %v3135_v18 = vpop.f32.mrf.mxu0 }
 0x3ea   :  { %v2950_v24 = vadd.f32 1.0, %v3212_v45  ;;  %v3071_v31 = vmul.f32 -1.442695, %v2852_v56  ;;  %v3136_v26 = vadd.f32 %v3135_v18, %v3134_v29 }
 0x3eb   :  { %v3137_v0 = vpop.f32.mrf.mxu1 }
 0x3ec   :  { %3223 = vrcp.f32 %v2950_v24  ;;  %v2857_v39 = vadd.f32 %v3136_v26, %v4997_v57 }
 0x3ed   :  { %v3214_v62 = vpop.eup %3213  ;;  %3225 = vpow2.f32 %v3071_v31  ;;  %v3138_v46 = vpop.f32.mrf.mxu1 }
 0x3ee   :  { %v2951_v44 = vadd.f32 1.0, %v3214_v62  ;;  %v3072_v7 = vmul.f32 -1.442695, %v2857_v39  ;;  %v3139_v35 = vadd.f32 %v3138_v46, %v3137_v0 }
 0x3ef   :  { %v3140_v51 = vpop.f32.mrf.mxu1 }
 0x3f0   :  { %3227 = vrcp.f32 %v2951_v44  ;;  %v2862_v5 = vadd.f32 %v3139_v35, %v4997_v57 }
 0x3f1   :  { %v3216_v17 = vpop.eup %3215  ;;  %3229 = vpow2.f32 %v3072_v7  ;;  %v3141_v2 = vpop.f32.mrf.mxu1 }
 0x3f2   :  { %v3218_v11 = vpop.eup %3217  ;;  %2996 = vst [vmem:[#allocation13] sm:$0xff] %v3216_v17  ;;  %v3073_v30 = vmul.f32 -1.442695, %v2862_v5  ;;  %v3142_v16 = vadd.f32 %v3141_v2, %v3140_v51 }
 0x3f3   :  { %v2952_v50 = vadd.f32 1.0, %v3218_v11  ;;  %v3143_v52 = vpop.f32.mrf.mxu1 }
 0x3f4   :  { %3231 = vpow2.f32 %v3073_v30  ;;  %v2867_v49 = vadd.f32 %v3142_v16, %v4997_v57 }
 0x3f5   :  { %v3220_v47 = vpop.eup %3219  ;;  %3233 = vrcp.f32 %v2952_v50  ;;  %v3144_v55 = vpop.f32.mrf.mxu1 }
 0x3f6   :  { %v3222_v22 = vpop.eup %3221  ;;  %2997 = vst [vmem:[#allocation13 + $0x8] sm:$0xff] %v3220_v47  ;;  %v3074_v41 = vmul.f32 -1.442695, %v2867_v49  ;;  %v3145_v58 = vadd.f32 %v3144_v55, %v3143_v52 }
 0x3f7   :  { %v2953_v38 = vadd.f32 1.0, %v3222_v22  ;;  %v3146_v40 = vpop.f32.mrf.mxu1 }
 0x3f8   :  { %3235 = vpow2.f32 %v3074_v41  ;;  %v2872_v34 = vadd.f32 %v3145_v58, %v4997_v57 }
 0x3f9   :  { %v3224_v48 = vpop.eup %3223  ;;  %3237 = vrcp.f32 %v2953_v38  ;;  %v3147_v4 = vpop.f32.mrf.mxu1 }
 0x3fa   :  { %v3226_v42 = vpop.eup %3225  ;;  %2998 = vst [vmem:[#allocation13 + $0x10] sm:$0xff] %v3224_v48  ;;  %v3075_v43 = vmul.f32 -1.442695, %v2872_v34  ;;  %v3148_v60 = vadd.f32 %v3147_v4, %v3146_v40 }
 0x3fb   :  { %v2954_v15 = vadd.f32 1.0, %v3226_v42  ;;  %v3149_v9 = vpop.f32.mrf.mxu1 }
 0x3fc   :  { %3239 = vpow2.f32 %v3075_v43  ;;  %v2877_v1 = vadd.f32 %v3148_v60, %v4997_v57 }
 0x3fd   :  { %v3228_v6 = vpop.eup %3227  ;;  %3241 = vrcp.f32 %v2954_v15  ;;  %v3150_v63 = vpop.f32.mrf.mxu1 }
 0x3fe   :  { %v3230_v3 = vpop.eup %3229  ;;  %2999 = vst [vmem:[#allocation13 + $0x18] sm:$0xff] %v3228_v6  ;;  %v3076_v23 = vmul.f32 -1.442695, %v2877_v1  ;;  %v3151_v33 = vadd.f32 %v3150_v63, %v3149_v9 }
 0x3ff   :  { %v2955_v61 = vadd.f32 1.0, %v3230_v3  ;;  %v3152_v10 = vpop.f32.mrf.mxu1 }
 0x400   :  { %3243 = vpow2.f32 %v3076_v23  ;;  %v2882_v59 = vadd.f32 %v3151_v33, %v4997_v57 }
 0x401   :  { %v3232_v12 = vpop.eup %3231  ;;  %3245 = vrcp.f32 %v2955_v61  ;;  %v3153_v19 = vpop.f32.mrf.mxu1 }
 0x402   :  { %v3234_v54 = vpop.eup %3233  ;;  %v2956_v32 = vadd.f32 1.0, %v3232_v12  ;;  %v3077_v36 = vmul.f32 -1.442695, %v2882_v59  ;;  %v3154_v37 = vadd.f32 %v3153_v19, %v3152_v10 }
 0x403   :  { %3000 = vst [vmem:[#allocation13 + $0x20] sm:$0xff] %v3234_v54  ;;  %v3155_v53 = vpop.f32.mrf.mxu1 }
 0x404   :  { %3247 = vrcp.f32 %v2956_v32  ;;  %v2887_v21 = vadd.f32 %v3154_v37, %v4997_v57 }
 0x405   :  { %v3236_v8 = vpop.eup %3235  ;;  %3249 = vpow2.f32 %v3077_v36  ;;  %v3156_v28 = vpop.f32.mrf.mxu1 }
 0x406   :  { %v3238_v27 = vpop.eup %3237  ;;  %v2957_v14 = vadd.f32 1.0, %v3236_v8  ;;  %v3078_v20 = vmul.f32 -1.442695, %v2887_v21  ;;  %v3157_v25 = vadd.f32 %v3156_v28, %v3155_v53 }
 0x407   :  { %3001 = vst [vmem:[#allocation13 + $0x28] sm:$0xff] %v3238_v27  ;;  %v3158_v13 = vpop.f32.mrf.mxu1 }
 0x408   :  { %3251 = vrcp.f32 %v2957_v14  ;;  %v2892_v29 = vadd.f32 %v3157_v25, %v4997_v57 }
 0x409   :  { %v3240_v56 = vpop.eup %3239  ;;  %3253 = vpow2.f32 %v3078_v20  ;;  %v3159_v45 = vpop.f32.mrf.mxu1 }
 0x40a   :  { %v3242_v18 = vpop.eup %3241  ;;  %v2958_v24 = vadd.f32 1.0, %v3240_v56  ;;  %v3079_v31 = vmul.f32 -1.442695, %v2892_v29  ;;  %v3160_v26 = vadd.f32 %v3159_v45, %v3158_v13 }
 0x40b   :  { %3002 = vst [vmem:[#allocation13 + $0x30] sm:$0xff] %v3242_v18 }
 0x40c   :  { %3255 = vrcp.f32 %v2958_v24  ;;  %v2897_v0 = vadd.f32 %v3160_v26, %v4997_v57 }
 0x40d   :  { %v3244_v39 = vpop.eup %3243  ;;  %3257 = vpow2.f32 %v3079_v31 }
 0x40e   :  { %v3246_v62 = vpop.eup %3245  ;;  %v2959_v46 = vadd.f32 1.0, %v3244_v39  ;;  %v3080_v44 = vmul.f32 -1.442695, %v2897_v0 }
 0x40f   :  { %3003 = vst [vmem:[#allocation13 + $0x38] sm:$0xff] %v3246_v62 }
 0x410   :  { %3259 = vrcp.f32 %v2959_v46 }
 0x411   :  { %v3248_v7 = vpop.eup %3247  ;;  %3261 = vpow2.f32 %v3080_v44 }
 0x412   :  { %v3250_v35 = vpop.eup %3249  ;;  %3004 = vst [vmem:[#allocation13 + $0x40] sm:$0xff] %v3248_v7 }
 0x413   :  { %v2960_v51 = vadd.f32 1.0, %v3250_v35 }
 0x415   :  { %v3252_v5 = vpop.eup %3251  ;;  %3263 = vrcp.f32 %v2960_v51 }
 0x416   :  { %v3254_v17 = vpop.eup %3253  ;;  %3005 = vst [vmem:[#allocation13 + $0x48] sm:$0xff] %v3252_v5 }
 0x417   :  { %v2961_v2 = vadd.f32 1.0, %v3254_v17 }
 0x419   :  { %v3256_v11 = vpop.eup %3255  ;;  %3265 = vrcp.f32 %v2961_v2 }
 0x41a   :  { %v3258_v57 = vpop.eup %3257  ;;  %3006 = vst [vmem:[#allocation13 + $0x50] sm:$0xff] %v3256_v11 }
 0x41b   :  { %v2962_v30 = vadd.f32 1.0, %v3258_v57 }
 0x41d   :  { %v3260_v16 = vpop.eup %3259  ;;  %3267 = vrcp.f32 %v2962_v30 }
 0x41e   :  { %v3262_v50 = vpop.eup %3261  ;;  %3007 = vst [vmem:[#allocation13 + $0x58] sm:$0xff] %v3260_v16 }
 0x41f   :  { %v2963_v52 = vadd.f32 1.0, %v3262_v50 }
 0x421   :  { %3269 = vrcp.f32 %v2963_v52 }
 0x422   :  { %v3264_v49 = vpop.eup %3263 }
 0x423   :  { %3008 = vst [vmem:[#allocation13 + $0x60] sm:$0xff] %v3264_v49 }
 0x426   :  { %v3266_v47 = vpop.eup %3265 }
 0x427   :  { %3009 = vst [vmem:[#allocation13 + $0x68] sm:$0xff] %v3266_v47 }
 0x42a   :  { %v3268_v55 = vpop.eup %3267 }
 0x42b   :  { %3010 = vst [vmem:[#allocation13 + $0x70] sm:$0xff] %v3268_v55 }
 0x42e   :  { %v3270_v22 = vpop.eup %3269 }
 0x42f   :  { %3011 = vst [vmem:[#allocation13 + $0x78] sm:$0xff] %v3270_v22 }
 0x430   :  { %3515 = shalt.err (!%p3512_p6)
}
 0x431   :  { %3023 = dma.vmem_to_hbm [thread:$0]  %s3018_s23, 2048, %s5028_s7, [#allocation4], %s3543_s25, %s3543_s25, %s3544_s26  }
 0x432   :  { %3532 = dma.done.wait [#allocation4], 2048  }
 0x433   :  { %3533 = vsyncadd [#allocation4], 4294965248 }
 0x434   :  { %3027 = vsyncpa [#allocation3], 1 }
 0x435   :  { %3028 = vsyncpa [#allocation6], 1 }
 0x436   :  { %3029 = vsyncpa [#allocation9], 1 }
 0x437   :  { %3030 = vsyncpa [#allocation12], 1 }
 0x438   :  { %3031 = vsyncpa [#allocation4], 1 }

</bundles_post_ra>
